<compile_context>
chip_gen: v7x
topology: tpu7x:2x2x1
jax: 0.10.0
libtpu: 0.0.40
codegen_flags: <defaults>
</compile_context>

<pallas_src>
import functools

import jax
import jax.numpy as jnp
from jax.experimental import pallas as pl
from jax.experimental.pallas import tpu as pltpu


def _attention_kernel(x_ref, wqkv_ref, bqkv_ref, wp_ref, bp_ref, o_ref,
                      *, n_heads: int, head_dim: int, n_valid: int):
    """One grid step == one batch element, full (padded) sequence resident in VMEM."""
    cdt = x_ref.dtype                         # MXU operand dtype (bf16 after wrapper cast)
    f32 = jnp.float32
    x = x_ref[0]                              # (Np, D)
    Np, D = x.shape

    # Fused QKV projection: one (Np, D) x (D, 3D) MXU matmul, f32 accumulation.
    # Softmax scale is already folded into the Q columns of wqkv / bqkv by the wrapper.
    qkv = jnp.dot(x, wqkv_ref[...], preferred_element_type=f32) + bqkv_ref[...]  # (Np, 3D) f32
    qkv = qkv.astype(cdt)                     # bf16 operands for the attention matmuls
    q = qkv[:, :D]
    k = qkv[:, D:2 * D]
    v = qkv[:, 2 * D:]

    # Static key-padding bias (0 for valid keys, -1e30 for padded keys). Hoisted out of
    # the head loop; broadcast over query rows happens inside the cheap VPU add.
    if n_valid < Np:
        key_ok = jax.lax.broadcasted_iota(jnp.int32, (1, Np), 1) < n_valid
        key_bias = jnp.where(key_ok, 0.0, -1e30)                 # (1, Np) f32
    else:
        key_bias = None

    head_outs = []
    for h in range(n_heads):                  # small static loop; see TODO for fori_loop
        lo = h * head_dim
        q_h = q[:, lo:lo + head_dim]          # (Np, hd)
        k_h = k[:, lo:lo + head_dim]          # (Np, hd)
        v_h = v[:, lo:lo + head_dim]          # (Np, hd)

        # scores = q_h @ k_h^T without an explicit transpose: contract the last dims.
        s = jax.lax.dot_general(q_h, k_h, (((1,), (1,)), ((), ())),
                                preferred_element_type=f32)      # (Np, Np) f32
        if key_bias is not None:
            s = s + key_bias                                     # mask padded keys

        # f32 softmax (numerically-stable); padded keys underflow to exactly 0.
        m = jnp.max(s, axis=-1, keepdims=True)
        p = jnp.exp(s - m)
        denom = jnp.sum(p, axis=-1, keepdims=True)               # (Np, 1)

        o_h = jnp.dot(p.astype(cdt), v_h, preferred_element_type=f32)   # (Np, hd) f32
        # Exact reciprocal (EUP), folded into the small (Np, hd) head output instead of
        # dividing the (Np, Np) probability matrix.
        o_h = o_h * pl.reciprocal(denom, approx=False)
        head_outs.append(o_h.astype(cdt))

    # Single lane-dense (Np, D) slab (no per-head masked stores), one dense projection.
    heads = jnp.concatenate(head_outs, axis=-1)                  # (Np, D)
    y = jnp.dot(heads, wp_ref[...], preferred_element_type=f32) + bp_ref[...]
    o_ref[0] = y.astype(o_ref.dtype)


def attention_forward(x, wqkv, bqkv, wproj, bproj, *, n_heads: int,
                      compute_dtype=None, vmem_limit_bytes=48 * 1024 * 1024):
    """ViT Attention forward. x: (B, N, D); wqkv: (3D, D); bqkv: (3D,); wproj: (D, D)."""
    B, N, D = x.shape
    assert D % n_heads == 0, "dim must be divisible by n_heads"
    head_dim = D // n_heads
    scale = head_dim ** (-0.5)

    # MXU operand dtype: bf16 for f32 callers (v6e/v7x peak is bf16-only); f32 accumulation
    # and softmax math remain f32 inside the kernel.
    if compute_dtype is None:
        compute_dtype = jnp.bfloat16 if x.dtype == jnp.float32 else x.dtype
    cdt = jnp.dtype(compute_dtype)

    # Pad tokens to a lane-dense multiple of 128 (min 128); padded keys are masked in-kernel,
    # padded query rows are sliced off below.
    Np = max(128, ((N + 127) // 128) * 128)
    x_p = jnp.pad(x, ((0, 0), (0, Np - N), (0, 0))) if Np != N else x
    x_p = x_p.astype(cdt)

    # Re-pack PyTorch (out, in) weights into (in, out), folding the softmax scale into the
    # Q columns. Weights in the MXU operand dtype; biases stay f32 (added post-accumulation).
    w_qkv = wqkv.astype(jnp.float32).T                         # (D, 3D)
    w_qkv = w_qkv.at[:, :D].multiply(scale)
    b_qkv = bqkv.astype(jnp.float32).at[:D].multiply(scale).reshape(1, 3 * D)
    w_qkv = w_qkv.astype(cdt)
    w_p = wproj.astype(jnp.float32).T.astype(cdt)              # (D, D)
    b_p = bproj.astype(jnp.float32).reshape(1, D)

    kernel = functools.partial(_attention_kernel,
                               n_heads=n_heads, head_dim=head_dim, n_valid=N)
    const = lambda b: (0, 0)   # weights/biases: same tile every step (fetched once)

    out = pl.pallas_call(
        kernel,
        out_shape=jax.ShapeDtypeStruct((B, Np, D), x.dtype),
        grid_spec=pltpu.PrefetchScalarGridSpec(
            num_scalar_prefetch=0,
            grid=(B,),                         # one step per batch element: Q/K/V computed once
            in_specs=[
                pl.BlockSpec((1, Np, D), lambda b: (b, 0, 0)),   # x (full padded sequence)
                pl.BlockSpec((D, 3 * D), const),                 # W_qkv (scale folded, cdt)
                pl.BlockSpec((1, 3 * D), const),                 # b_qkv (f32)
                pl.BlockSpec((D, D), const),                     # W_proj (cdt)
                pl.BlockSpec((1, D), const),                     # b_proj (f32)
            ],
            out_specs=pl.BlockSpec((1, Np, D), lambda b: (b, 0, 0)),
        ),
        compiler_params=pltpu.CompilerParams(
            dimension_semantics=("parallel",),                   # batch sharded across cores
            # Per-generation tuning knob: raise toward ~96 MiB on v5e/v6e for larger configs;
            # keep <= ~48 MiB on v7x (64 MiB physical VMEM per TC).
            vmem_limit_bytes=vmem_limit_bytes,
        ),
    )(x_p, w_qkv, b_qkv, w_p, b_p)

    return out[:, :N, :] if Np != N else out


def attention_reference(x, wqkv, bqkv, wproj, bproj, *, n_heads: int):
    """Pure-JAX f32 reference mirroring the PyTorch forward."""
    B, N, D = x.shape
    head_dim = D // n_heads
    scale = head_dim ** (-0.5)
    qkv = jnp.einsum('bnd,od->bno', x, wqkv) + bqkv             # (B, N, 3D)
    qkv = qkv.reshape(B, N, 3, n_heads, head_dim)
    qkv = jnp.transpose(qkv, (2, 0, 3, 1, 4))                   # (3, B, H, N, hd)
    q, k, v = qkv[0], qkv[1], qkv[2]
    dot = jnp.einsum('bhqd,bhkd->bhqk', q, k) * scale
    attn = jax.nn.softmax(dot, axis=-1)
    wavg = jnp.einsum('bhqk,bhkd->bhqd', attn, v)               # (B, H, N, hd)
    wavg = jnp.transpose(wavg, (0, 2, 1, 3)).reshape(B, N, D)
    return jnp.einsum('bnd,od->bno', wavg, wproj) + bproj


if __name__ == "__main__":
    # Small demo: batch=2, tokens=16 (padded to 128 in-wrapper), dim=128, heads=4 (head_dim=32).
    B, N, D, H = 2, 16, 128, 4
    key = jax.random.PRNGKey(0)
    kx, kw1, kb1, kw2, kb2 = jax.random.split(key, 5)

    x = jax.random.normal(kx, (B, N, D), dtype=jnp.float32)
    # Deterministic parameter init (PyTorch-Linear-like uniform bound 1/sqrt(fan_in)).
    bound = 1.0 / (D ** 0.5)
    wqkv = jax.random.uniform(kw1, (3 * D, D), jnp.float32, -bound, bound)
    bqkv = jax.random.uniform(kb1, (3 * D,), jnp.float32, -bound, bound)
    wproj = jax.random.uniform(kw2, (D, D), jnp.float32, -bound, bound)
    bproj = jax.random.uniform(kb2, (D,), jnp.float32, -bound, bound)

    out = attention_forward(x, wqkv, bqkv, wproj, bproj, n_heads=H)
    out = jax.block_until_ready(out)

    ref = attention_reference(x, wqkv, bqkv, wproj, bproj, n_heads=H)
    # Tolerance reflects bf16 MXU operands (f32 accumulation / f32 softmax); the softmax
    # reciprocal itself is exact.
    assert jnp.allclose(out, ref, atol=2e-2, rtol=2e-2), "mismatch vs reference"

    print("KERNEL_OK")
</pallas_src>

<mosaic_0001>
module attributes {stable_mosaic.version = 11 : i64} {
  func.func @_attention_kernel(%arg0: i32, %arg1: memref<1x128x128xbf16, #tpu.memory_space<vmem>>, %arg2: memref<128x384xbf16, #tpu.memory_space<vmem>>, %arg3: memref<1x384xf32, #tpu.memory_space<vmem>>, %arg4: memref<128x128xbf16, #tpu.memory_space<vmem>>, %arg5: memref<1x128xf32, #tpu.memory_space<vmem>>, %arg6: memref<1x128x128xf32, #tpu.memory_space<vmem>>) attributes {dimension_semantics = [#tpu.dimension_semantics<parallel>], iteration_bounds = array<i64: 2>, scalar_prefetch = 0 : i64, scratch_operands = 0 : i64, tpu.core_type = #tpu.core_type<tc>, window_params = [{transform_indices = @transform_0, window_bounds = array<i64: 1, 128, 128>}, {pipeline_mode = #tpu.pipeline_mode<synchronous>, transform_indices = @transform_1, window_bounds = array<i64: 128, 384>}, {pipeline_mode = #tpu.pipeline_mode<synchronous>, transform_indices = @transform_2, window_bounds = array<i64: 1, 384>}, {pipeline_mode = #tpu.pipeline_mode<synchronous>, transform_indices = @transform_3, window_bounds = array<i64: 128, 128>}, {pipeline_mode = #tpu.pipeline_mode<synchronous>, transform_indices = @transform_4, window_bounds = array<i64: 1, 128>}, {transform_indices = @transform_5, window_bounds = array<i64: 1, 128, 128>}]} {
    %c0 = arith.constant 0 : index
    %c0_0 = arith.constant 0 : index
    %c0_1 = arith.constant 0 : index
    %0 = vector.load %arg1[%c0, %c0_0, %c0_1] : memref<1x128x128xbf16, #tpu.memory_space<vmem>>, vector<1x128x128xbf16>
    %1 = vector.shape_cast %0 : vector<1x128x128xbf16> to vector<128x128xbf16>
    %c0_2 = arith.constant 0 : index
    %c0_3 = arith.constant 0 : index
    %2 = vector.load %arg2[%c0_2, %c0_3] : memref<128x384xbf16, #tpu.memory_space<vmem>>, vector<128x384xbf16>
    %cst = arith.constant dense<0.000000e+00> : vector<128x384xf32>
    %3 = tpu.matmul %1, %2, %cst {dimension_numbers = #tpu.dot_dimension_numbers<[1], [0], [0], [1], [0, 0, 1, 1], [], []>} : vector<128x128xbf16>, vector<128x384xbf16>, vector<128x384xf32> -> vector<128x384xf32>
    %c0_4 = arith.constant 0 : index
    %c0_5 = arith.constant 0 : index
    %4 = vector.load %arg3[%c0_4, %c0_5] : memref<1x384xf32, #tpu.memory_space<vmem>>, vector<1x384xf32>
    %5 = vector.broadcast %4 : vector<1x384xf32> to vector<128x384xf32>
    %6 = arith.addf %3, %5 : vector<128x384xf32>
    %7 = arith.truncf %6 : vector<128x384xf32> to vector<128x384xbf16>
    %8 = vector.extract_strided_slice %7 {offsets = [0, 0], sizes = [128, 128], strides = [1, 1]} : vector<128x384xbf16> to vector<128x128xbf16>
    %9 = vector.extract_strided_slice %7 {offsets = [0, 128], sizes = [128, 128], strides = [1, 1]} : vector<128x384xbf16> to vector<128x128xbf16>
    %10 = vector.extract_strided_slice %7 {offsets = [0, 256], sizes = [128, 128], strides = [1, 1]} : vector<128x384xbf16> to vector<128x128xbf16>
    %11 = tpu.iota {dimensions = array<i32: 1>} : vector<1x128xi32>
    %c16_i32 = arith.constant 16 : i32
    %12 = vector.broadcast %c16_i32 : i32 to vector<1x128xi32>
    %13 = arith.cmpi slt, %11, %12 : vector<1x128xi32>
    %cst_6 = arith.constant 0.000000e+00 : f32
    %cst_7 = arith.constant -1.000000e+30 : f32
    %14 = vector.broadcast %cst_6 : f32 to vector<1x128xf32>
    %15 = vector.broadcast %cst_7 : f32 to vector<1x128xf32>
    %16 = arith.select %13, %14, %15 : vector<1x128xi1>, vector<1x128xf32>
    %17 = vector.extract_strided_slice %8 {offsets = [0, 0], sizes = [128, 32], strides = [1, 1]} : vector<128x128xbf16> to vector<128x32xbf16>
    %18 = vector.extract_strided_slice %9 {offsets = [0, 0], sizes = [128, 32], strides = [1, 1]} : vector<128x128xbf16> to vector<128x32xbf16>
    %19 = vector.extract_strided_slice %10 {offsets = [0, 0], sizes = [128, 32], strides = [1, 1]} : vector<128x128xbf16> to vector<128x32xbf16>
    %cst_8 = arith.constant dense<0.000000e+00> : vector<128x128xf32>
    %20 = tpu.matmul %17, %18, %cst_8 {dimension_numbers = #tpu.dot_dimension_numbers<[1], [1], [0], [0], [0, 0, 1, 0], [], []>} : vector<128x32xbf16>, vector<128x32xbf16>, vector<128x128xf32> -> vector<128x128xf32>
    %21 = vector.broadcast %16 : vector<1x128xf32> to vector<128x128xf32>
    %22 = arith.addf %20, %21 : vector<128x128xf32>
    %cst_9 = arith.constant dense<0xFF800000> : vector<128xf32>
    %23 = vector.multi_reduction <maximumf>, %22, %cst_9 [1] : vector<128x128xf32> to vector<128xf32>
    %24 = vector.shape_cast %23 : vector<128xf32> to vector<128x1xf32>
    %25 = vector.broadcast %24 : vector<128x1xf32> to vector<128x128xf32>
    %26 = arith.subf %22, %25 : vector<128x128xf32>
    %27 = math.exp %26 : vector<128x128xf32>
    %cst_10 = arith.constant dense<0.000000e+00> : vector<128xf32>
    %28 = vector.multi_reduction <add>, %27, %cst_10 [1] : vector<128x128xf32> to vector<128xf32>
    %29 = vector.shape_cast %28 : vector<128xf32> to vector<128x1xf32>
    %30 = arith.truncf %27 : vector<128x128xf32> to vector<128x128xbf16>
    %cst_11 = arith.constant dense<0.000000e+00> : vector<128x32xf32>
    %31 = tpu.matmul %30, %19, %cst_11 {dimension_numbers = #tpu.dot_dimension_numbers<[1], [0], [0], [1], [0, 0, 1, 1], [], []>} : vector<128x128xbf16>, vector<128x32xbf16>, vector<128x32xf32> -> vector<128x32xf32>
    %32 = tpu.reciprocal %29 : vector<128x1xf32> -> vector<128x1xf32>
    %33 = vector.broadcast %32 : vector<128x1xf32> to vector<128x32xf32>
    %34 = arith.mulf %31, %33 : vector<128x32xf32>
    %35 = arith.truncf %34 : vector<128x32xf32> to vector<128x32xbf16>
    %36 = vector.extract_strided_slice %8 {offsets = [0, 32], sizes = [128, 32], strides = [1, 1]} : vector<128x128xbf16> to vector<128x32xbf16>
    %37 = vector.extract_strided_slice %9 {offsets = [0, 32], sizes = [128, 32], strides = [1, 1]} : vector<128x128xbf16> to vector<128x32xbf16>
    %38 = vector.extract_strided_slice %10 {offsets = [0, 32], sizes = [128, 32], strides = [1, 1]} : vector<128x128xbf16> to vector<128x32xbf16>
    %cst_12 = arith.constant dense<0.000000e+00> : vector<128x128xf32>
    %39 = tpu.matmul %36, %37, %cst_12 {dimension_numbers = #tpu.dot_dimension_numbers<[1], [1], [0], [0], [0, 0, 1, 0], [], []>} : vector<128x32xbf16>, vector<128x32xbf16>, vector<128x128xf32> -> vector<128x128xf32>
    %40 = vector.broadcast %16 : vector<1x128xf32> to vector<128x128xf32>
    %41 = arith.addf %39, %40 : vector<128x128xf32>
    %cst_13 = arith.constant dense<0xFF800000> : vector<128xf32>
    %42 = vector.multi_reduction <maximumf>, %41, %cst_13 [1] : vector<128x128xf32> to vector<128xf32>
    %43 = vector.shape_cast %42 : vector<128xf32> to vector<128x1xf32>
    %44 = vector.broadcast %43 : vector<128x1xf32> to vector<128x128xf32>
    %45 = arith.subf %41, %44 : vector<128x128xf32>
    %46 = math.exp %45 : vector<128x128xf32>
    %cst_14 = arith.constant dense<0.000000e+00> : vector<128xf32>
    %47 = vector.multi_reduction <add>, %46, %cst_14 [1] : vector<128x128xf32> to vector<128xf32>
    %48 = vector.shape_cast %47 : vector<128xf32> to vector<128x1xf32>
    %49 = arith.truncf %46 : vector<128x128xf32> to vector<128x128xbf16>
    %cst_15 = arith.constant dense<0.000000e+00> : vector<128x32xf32>
    %50 = tpu.matmul %49, %38, %cst_15 {dimension_numbers = #tpu.dot_dimension_numbers<[1], [0], [0], [1], [0, 0, 1, 1], [], []>} : vector<128x128xbf16>, vector<128x32xbf16>, vector<128x32xf32> -> vector<128x32xf32>
    %51 = tpu.reciprocal %48 : vector<128x1xf32> -> vector<128x1xf32>
    %52 = vector.broadcast %51 : vector<128x1xf32> to vector<128x32xf32>
    %53 = arith.mulf %50, %52 : vector<128x32xf32>
    %54 = arith.truncf %53 : vector<128x32xf32> to vector<128x32xbf16>
    %55 = vector.extract_strided_slice %8 {offsets = [0, 64], sizes = [128, 32], strides = [1, 1]} : vector<128x128xbf16> to vector<128x32xbf16>
    %56 = vector.extract_strided_slice %9 {offsets = [0, 64], sizes = [128, 32], strides = [1, 1]} : vector<128x128xbf16> to vector<128x32xbf16>
    %57 = vector.extract_strided_slice %10 {offsets = [0, 64], sizes = [128, 32], strides = [1, 1]} : vector<128x128xbf16> to vector<128x32xbf16>
    %cst_16 = arith.constant dense<0.000000e+00> : vector<128x128xf32>
    %58 = tpu.matmul %55, %56, %cst_16 {dimension_numbers = #tpu.dot_dimension_numbers<[1], [1], [0], [0], [0, 0, 1, 0], [], []>} : vector<128x32xbf16>, vector<128x32xbf16>, vector<128x128xf32> -> vector<128x128xf32>
    %59 = vector.broadcast %16 : vector<1x128xf32> to vector<128x128xf32>
    %60 = arith.addf %58, %59 : vector<128x128xf32>
    %cst_17 = arith.constant dense<0xFF800000> : vector<128xf32>
    %61 = vector.multi_reduction <maximumf>, %60, %cst_17 [1] : vector<128x128xf32> to vector<128xf32>
    %62 = vector.shape_cast %61 : vector<128xf32> to vector<128x1xf32>
    %63 = vector.broadcast %62 : vector<128x1xf32> to vector<128x128xf32>
    %64 = arith.subf %60, %63 : vector<128x128xf32>
    %65 = math.exp %64 : vector<128x128xf32>
    %cst_18 = arith.constant dense<0.000000e+00> : vector<128xf32>
    %66 = vector.multi_reduction <add>, %65, %cst_18 [1] : vector<128x128xf32> to vector<128xf32>
    %67 = vector.shape_cast %66 : vector<128xf32> to vector<128x1xf32>
    %68 = arith.truncf %65 : vector<128x128xf32> to vector<128x128xbf16>
    %cst_19 = arith.constant dense<0.000000e+00> : vector<128x32xf32>
    %69 = tpu.matmul %68, %57, %cst_19 {dimension_numbers = #tpu.dot_dimension_numbers<[1], [0], [0], [1], [0, 0, 1, 1], [], []>} : vector<128x128xbf16>, vector<128x32xbf16>, vector<128x32xf32> -> vector<128x32xf32>
    %70 = tpu.reciprocal %67 : vector<128x1xf32> -> vector<128x1xf32>
    %71 = vector.broadcast %70 : vector<128x1xf32> to vector<128x32xf32>
    %72 = arith.mulf %69, %71 : vector<128x32xf32>
    %73 = arith.truncf %72 : vector<128x32xf32> to vector<128x32xbf16>
    %74 = vector.extract_strided_slice %8 {offsets = [0, 96], sizes = [128, 32], strides = [1, 1]} : vector<128x128xbf16> to vector<128x32xbf16>
    %75 = vector.extract_strided_slice %9 {offsets = [0, 96], sizes = [128, 32], strides = [1, 1]} : vector<128x128xbf16> to vector<128x32xbf16>
    %76 = vector.extract_strided_slice %10 {offsets = [0, 96], sizes = [128, 32], strides = [1, 1]} : vector<128x128xbf16> to vector<128x32xbf16>
    %cst_20 = arith.constant dense<0.000000e+00> : vector<128x128xf32>
    %77 = tpu.matmul %74, %75, %cst_20 {dimension_numbers = #tpu.dot_dimension_numbers<[1], [1], [0], [0], [0, 0, 1, 0], [], []>} : vector<128x32xbf16>, vector<128x32xbf16>, vector<128x128xf32> -> vector<128x128xf32>
    %78 = vector.broadcast %16 : vector<1x128xf32> to vector<128x128xf32>
    %79 = arith.addf %77, %78 : vector<128x128xf32>
    %cst_21 = arith.constant dense<0xFF800000> : vector<128xf32>
    %80 = vector.multi_reduction <maximumf>, %79, %cst_21 [1] : vector<128x128xf32> to vector<128xf32>
    %81 = vector.shape_cast %80 : vector<128xf32> to vector<128x1xf32>
    %82 = vector.broadcast %81 : vector<128x1xf32> to vector<128x128xf32>
    %83 = arith.subf %79, %82 : vector<128x128xf32>
    %84 = math.exp %83 : vector<128x128xf32>
    %cst_22 = arith.constant dense<0.000000e+00> : vector<128xf32>
    %85 = vector.multi_reduction <add>, %84, %cst_22 [1] : vector<128x128xf32> to vector<128xf32>
    %86 = vector.shape_cast %85 : vector<128xf32> to vector<128x1xf32>
    %87 = arith.truncf %84 : vector<128x128xf32> to vector<128x128xbf16>
    %cst_23 = arith.constant dense<0.000000e+00> : vector<128x32xf32>
    %88 = tpu.matmul %87, %76, %cst_23 {dimension_numbers = #tpu.dot_dimension_numbers<[1], [0], [0], [1], [0, 0, 1, 1], [], []>} : vector<128x128xbf16>, vector<128x32xbf16>, vector<128x32xf32> -> vector<128x32xf32>
    %89 = tpu.reciprocal %86 : vector<128x1xf32> -> vector<128x1xf32>
    %90 = vector.broadcast %89 : vector<128x1xf32> to vector<128x32xf32>
    %91 = arith.mulf %88, %90 : vector<128x32xf32>
    %92 = arith.truncf %91 : vector<128x32xf32> to vector<128x32xbf16>
    %93 = tpu.concatenate %35, %54, %73, %92 in 1 : vector<128x32xbf16>, vector<128x32xbf16>, vector<128x32xbf16>, vector<128x32xbf16> -> vector<128x128xbf16>
    %c0_24 = arith.constant 0 : index
    %c0_25 = arith.constant 0 : index
    %94 = vector.load %arg4[%c0_24, %c0_25] : memref<128x128xbf16, #tpu.memory_space<vmem>>, vector<128x128xbf16>
    %cst_26 = arith.constant dense<0.000000e+00> : vector<128x128xf32>
    %95 = tpu.matmul %93, %94, %cst_26 {dimension_numbers = #tpu.dot_dimension_numbers<[1], [0], [0], [1], [0, 0, 1, 1], [], []>} : vector<128x128xbf16>, vector<128x128xbf16>, vector<128x128xf32> -> vector<128x128xf32>
    %c0_27 = arith.constant 0 : index
    %c0_28 = arith.constant 0 : index
    %96 = vector.load %arg5[%c0_27, %c0_28] : memref<1x128xf32, #tpu.memory_space<vmem>>, vector<1x128xf32>
    %97 = vector.broadcast %96 : vector<1x128xf32> to vector<128x128xf32>
    %98 = arith.addf %95, %97 : vector<128x128xf32>
    %c0_29 = arith.constant 0 : index
    %c0_30 = arith.constant 0 : index
    %c0_31 = arith.constant 0 : index
    %99 = vector.load %arg6[%c0_29, %c0_30, %c0_31] : memref<1x128x128xf32, #tpu.memory_space<vmem>>, vector<1x128x128xf32>
    %100 = vector.shape_cast %99 : vector<1x128x128xf32> to vector<128x128xf32>
    %101 = vector.shape_cast %98 : vector<128x128xf32> to vector<1x128x128xf32>
    tpu.vector_store %arg6[%c0_29, %c0_30, %c0_31], %101 {strides = array<i32>} : memref<1x128x128xf32, #tpu.memory_space<vmem>>, vector<1x128x128xf32>,
    return
  }
  func.func @transform_0(%arg0: i32) -> (i32, i32, i32) {
    %c0_i32 = arith.constant 0 : i32
    %c0_i32_0 = arith.constant 0 : i32
    %c0_i32_1 = arith.constant 0 : i32
    return %arg0, %c0_i32, %c0_i32_0 : i32, i32, i32
  }
  func.func @transform_1(%arg0: i32) -> (i32, i32) {
    %c0_i32 = arith.constant 0 : i32
    %c0_i32_0 = arith.constant 0 : i32
    %c0_i32_1 = arith.constant 0 : i32
    return %c0_i32, %c0_i32_0 : i32, i32
  }
  func.func @transform_2(%arg0: i32) -> (i32, i32) {
    %c0_i32 = arith.constant 0 : i32
    %c0_i32_0 = arith.constant 0 : i32
    %c0_i32_1 = arith.constant 0 : i32
    return %c0_i32, %c0_i32_0 : i32, i32
  }
  func.func @transform_3(%arg0: i32) -> (i32, i32) {
    %c0_i32 = arith.constant 0 : i32
    %c0_i32_0 = arith.constant 0 : i32
    %c0_i32_1 = arith.constant 0 : i32
    return %c0_i32, %c0_i32_0 : i32, i32
  }
  func.func @transform_4(%arg0: i32) -> (i32, i32) {
    %c0_i32 = arith.constant 0 : i32
    %c0_i32_0 = arith.constant 0 : i32
    %c0_i32_1 = arith.constant 0 : i32
    return %c0_i32, %c0_i32_0 : i32, i32
  }
  func.func @transform_5(%arg0: i32) -> (i32, i32, i32) {
    %c0_i32 = arith.constant 0 : i32
    %c0_i32_0 = arith.constant 0 : i32
    %c0_i32_1 = arith.constant 0 : i32
    return %arg0, %c0_i32, %c0_i32_0 : i32, i32, i32
  }
}

</mosaic_0001>

<bundles_post_ra>
// kernel: tpu_custom_call.1
= control target key start
LH: loop header
LB: loop body
LE: loop exit
PB: predicated region body
PF: predicated region fallthrough
CT: control target
= control target key end

     0   :  { %10 = vsyncpa [#allocation3], 0  ;;  %s5756_s0 = inlined_call_operand.hbm [shape: bf16[2,128,128], index: 0, kind: input, shape index: {}]   ;;  %s5757_s1 = inlined_call_operand.hbm [shape: bf16[128,384], index: 1, kind: input, shape index: {}]   ;;  %s5758_s2 = inlined_call_operand.vmem [shape: f32[1,384], index: 2, kind: input, shape index: {}]   ;;  %s5759_s3 = inlined_call_operand.hbm [shape: bf16[128,128], index: 3, kind: input, shape index: {}]   ;;  %s5760_s4 = inlined_call_operand.vmem [shape: f32[1,128], index: 4, kind: input, shape index: {}]   ;;  %s5761_s5 = inlined_call_operand.hbm [shape: f32[2,128,128], index: 5, kind: output, shape index: {}]  }
   0x1   :  { %12 = vsyncpa [#allocation3 + $0x1], 0 }
   0x2   :  { %13 = vsyncpa [#allocation6], 0 }
   0x3   :  { %14 = vsyncpa [#allocation4], 0 }
   0x4   :  { %16 = vsyncpa [#allocation4 + $0x1], 0  ;;  %s4187_s18 = smov 0   ;;  %s4189_s19 = smov 0  }
   0x5   :  { %s4191_s20 = smov 0   ;;  %s4193_s21 = smov 0  }
   0x6 LB: > { %s4208_s22 = sadd.s32 4294967295, %s4140_s21   ;;  %s2981_s23 = sadd.s32 4294967294, %s4140_s21   ;;  %s4140_s21 = sphi %s4193_s21, %s5901_s21   ;;  %s4136_s20 = sphi %s4191_s20, %s5900_s20   ;;  %s4132_s19 = sphi %s4189_s19, %s5899_s19   ;;  %s4128_s18 = sphi %s4187_s18, %s5898_s18  }
   0x7   : > { %p42_p0 = scmp.ne.s32.totalorder %s4132_s19, %s4128_s18  ;;  %p5762_p1 = scmp.eq.s32.totalorder %s4208_s22, 0 }
   0x8   : > { %p156_p3 = scmp.eq.s32.totalorder %s2981_s23, 1  ;;  %p2982_p5 = scmp.ge.s32.totalorder %s4140_s21, 1 }
   0x9   : > { %p4217_p4 = por %p5762_p1, %p42_p0  ;;  %p163_p7 = scmp.lt.s32.totalorder %s4140_s21, 3 }
   0xa   : > { %p4222_p6 = por %p156_p3, %p42_p0  ;;  %s4142_s27 = smov [#allocation5]  }
   0xb   : > { %s5775_s24 = scalar_select %p4217_p4, 1, 0 }
   0xc   : > { %s5776_s25 = scalar_select %p4222_p6, 1, 0 }
   0xd   : > { %p4227_p8 = pnand %p2982_p5, %p163_p7  ;;  %s175_s28 = sshll.u32 %s4142_s27, 4  ;;  %s4231_s28 = int_to_ptr.vmem [resolvable:$true] %s175_s28 }
   0xe   : > { %s4143_s30 = smov [#allocation7]   ;;  %s3984_s9 = scalar_lea.hbm %s5757_s1, 3072 }
   0xf   : > { %p3614_p9 = pneg %p4227_p8  ;;  %s191_s6 = sshll.u32 %s4143_s30, 4  ;;  %s4242_s6 = int_to_ptr.vmem [resolvable:$true] %s191_s6 }
  0x10   : > { %p3985_p12 = scmp.ne.s32.totalorder %s5757_s1, %s3984_s9  ;;  %p3991_p5 = scmp.lt.u32.totalorder %s3984_s9, %s5757_s1 }
  0x11   : > { %p4238_p11 = pnand %p3614_p9, %p5762_p1 }
  0x13   : > { %p3986_p13 = pneg %p4238_p11 }
  0x15   : > { %p3987_p0 = pnand %p3986_p13, %p3985_p12 }
  0x17   : > { %p3988_p3 = pneg %p3987_p0 }
  0x19   : > { %p3993_p7 = pnand %p3991_p5, %p3988_p3 }
  0x1b   : > { %3996 = shalt.err (!%p3993_p7)
}
  0x1c   : > { %s3997_s14 = scalar_lea.vmem %s4231_s28, 3072  ;;  %p4005_p2 = scmp.lt.s32.totalorder %s4231_s28, %s4231_s28 }
  0x1d   : > { %p3998_p9 = scmp.ne.s32.totalorder %s4231_s28, %s3997_s14  ;;  %p4006_p12 = scmp.lt.s32.totalorder %s3997_s14, %s3997_s14 }
  0x1f   : > { %p4000_p10 = pnand %p3998_p9, %p3986_p13  ;;  %p4007_p0 = por %p4006_p12, %p4005_p2 }
  0x21   : > { %p4001_p1 = pneg %p4000_p10 }
  0x23   : > { %p4008_p6 = pnand %p4007_p0, %p4001_p1 }
  0x25   : > { %4011 = shalt.err (!%p4008_p6)
}
  0x26   : > { %s4144_s15 = smov 192   ;;  %s4145_s16 = smov 12  }
  0x27   : > { %3617 = dma.hbm_to_vmem [thread:$0]  (!%p4238_p11), %s5757_s1, 3072, %s4231_s28, [#allocation6], %s4144_s15, %s4144_s15, %s4145_s16  }
  0x28   : > { %s4012_s7 = scalar_lea.hbm %s5759_s3, 1024 }
  0x29   : > { %p4013_p2 = scmp.ne.s32.totalorder %s5759_s3, %s4012_s7  ;;  %p4019_p10 = scmp.lt.u32.totalorder %s4012_s7, %s5759_s3 }
  0x2b   : > { %p4015_p1 = pnand %p4013_p2, %p3986_p13 }
  0x2d   : > { %p4016_p6 = pneg %p4015_p1 }
  0x2f   : > { %p4021_p3 = pnand %p4019_p10, %p4016_p6 }
  0x31   : > { %4024 = shalt.err (!%p4021_p3)
}
  0x32   : > { %s4025_s28 = scalar_lea.vmem %s4242_s6, 1024  ;;  %p4033_p12 = scmp.lt.s32.totalorder %s4242_s6, %s4242_s6 }
  0x33   : > { %p4026_p5 = scmp.ne.s32.totalorder %s4242_s6, %s4025_s28  ;;  %p4034_p0 = scmp.lt.s32.totalorder %s4025_s28, %s4025_s28 }
  0x35   : > { %p4028_p7 = pnand %p4026_p5, %p3986_p13  ;;  %p4035_p2 = por %p4034_p0, %p4033_p12 }
  0x37   : > { %p4029_p9 = pneg %p4028_p7 }
  0x39   : > { %p4036_p1 = pnand %p4035_p2, %p4029_p9 }
  0x3b   : > { %4039 = shalt.err (!%p4036_p1)
}
  0x3c   : > { %s4146_s12 = smov 64   ;;  %s4147_s13 = smov 4  }
  0x3d   : > { %3620 = dma.hbm_to_vmem [thread:$0]  (!%p4238_p11), %s5759_s3, 1024, %s4242_s6, [#allocation6], %s4146_s12, %s4146_s12, %s4147_s13  }
  0x3e   : > { %s4300_s16 = sadd.s32 1, %s4140_s21   ;;  %s29_s23 = sadd.s32 1, %s4136_s20 }
  0x3f   : > { %s26_s17 = ssub.s32 %s4140_s21, %s4300_s16  ;;  %p36_p6 = scmp.ne.s32.totalorder %s4136_s20, %s4132_s19 }
  0x40   : > { %p27_p13 = scmp.eq.s32.totalorder %s26_s17, 0  ;;  %p37_p10 = scmp.eq.s32.totalorder %s4140_s21, 0 }
  0x41   : > { %p5779_p5 = scmp.eq.s32.totalorder %s4208_s22, 1  ;;  %p3631_p9 = scmp.lt.s32.totalorder %s4140_s21, 2 }
  0x42   : > { %s4309_s27 = scalar_select %p27_p13, %s4136_s20, %s29_s23  }
  0x43   : > { %p38_p3 = por %p37_p10, %p36_p6  ;;  %p4313_p7 = por %p5779_p5, %p36_p6 }
  0x44   : > { %s208_s30 = sand.u32 1, %s4136_s20   ;;  %s3072_s6 = sshll.u32 %s4140_s21, 10 }
  0x45   : > { %s5780_s29 = scalar_select %p4313_p7, 1, 0 }
  0x46   : > { %s2986_s7 = sshll.u32 %s208_s30, 6  ;;  %s4323_s10 = scalar_lea.hbm %s5756_s0, %s3072_s6 }
  0x47   : > { %s212_s11 = scalar_lea.vmem [#allocation2], %s2986_s7  ;;  %p4327_p11 = pnand %p3631_p9, %p38_p3 }
  0x48   : > { %s219_s28 = sshll.u32 %s212_s11, 4  ;;  %s4331_s15 = scalar_lea.sflag [#allocation3], %s208_s30  ;;  %s4325_s28 = int_to_ptr.vmem [resolvable:$true] %s219_s28 }
  0x49   : > { %s4040_s17 = scalar_lea.hbm %s4323_s10, 1024  ;;  %p4042_p0 = pneg %p4327_p11 }
  0x4a   : > { %p4041_p12 = scmp.ne.s32.totalorder %s4323_s10, %s4040_s17  ;;  %s4045_s6 = scalar_lea.hbm %s5756_s0, 2048 }
  0x4b   : > { %p4046_p13 = scmp.lt.u32.totalorder %s4323_s10, %s5756_s0  ;;  %p4047_p6 = scmp.lt.u32.totalorder %s4045_s6, %s4040_s17 }
  0x4c   : > { %p4043_p2 = pnand %p4042_p0, %p4041_p12  ;;  %p4049_p3 = scmp.lt.u32.totalorder %s4040_s17, %s4323_s10 }
  0x4d   : > { %p4048_p10 = por %p4047_p6, %p4046_p13 }
  0x4e   : > { %p4044_p1 = pneg %p4043_p2 }
  0x4f   : > { %p4050_p5 = por %p4049_p3, %p4048_p10 }
  0x51   : > { %p4051_p9 = pnand %p4050_p5, %p4044_p1 }
  0x53   : > { %4054 = shalt.err (!%p4051_p9)
}
  0x54   : > { %s4055_s30 = scalar_lea.vmem %s4325_s28, 1024  ;;  %s4148_s11 = smov [#allocation2]  }
  0x55   : > { %p4056_p12 = scmp.ne.s32.totalorder %s4325_s28, %s4055_s30  ;;  %s4060_s23 = sshll.u32 %s4148_s11, 4  ;;  %s4061_s23 = int_to_ptr.vmem [resolvable:$false] %s4060_s23 }
  0x56   : > { %s4062_s7 = scalar_lea.vmem %s4061_s23, 2048  ;;  %p4063_p4 = scmp.lt.s32.totalorder %s4325_s28, %s4061_s23 }
  0x57   : > { %p4058_p2 = pnand %p4056_p12, %p4042_p0  ;;  %p4064_p13 = scmp.lt.s32.totalorder %s4062_s7, %s4055_s30 }
  0x59   : > { %p4059_p7 = pneg %p4058_p2  ;;  %p4065_p6 = por %p4064_p13, %p4063_p4 }
  0x5b   : > { %p4066_p10 = pnand %p4065_p6, %p4059_p7 }
  0x5d   : > { %4069 = shalt.err (!%p4066_p10)
}
  0x5e   : > { %3624 = dma.hbm_to_vmem [thread:$0]  (!%p4327_p11), %s4323_s10, 1024, %s4325_s28, %s4331_s15, %s4146_s12, %s4146_s12, %s4147_s13  }
  0x5f   : > { %231 = sbr.rel (%p4227_p8) target bundleno = 2843 (0xb1b), region = 40 }
  0x66   : > { %s4365_s17 = sand.u32 1, %s4132_s19   ;;  %p5782_p4 = scmp.ne.s32.totalorder %s5775_s24, 0 }
  0x67   : > { %s2990_s6 = sshll.u32 %s4365_s17, 6  ;;  %s234_s8 = scalar_lea.sflag [#allocation3], %s4365_s17 }
  0x68   : > { %s4369_s9 = scalar_lea.vmem [#allocation2], %s2990_s6 }
  0x69   : > { %4115 = dma.done.wait (%p5782_p4), %s234_s8, 1024  }
  0x6a   : > { %4117 = vsyncadd (%p5782_p4), %s234_s8, 4294966272  ;;  %p5783_p7 = scmp.eq.s32.totalorder %s4208_s22, 0 }
  0x6c   : > { %4119 = dma.done.wait (%p5783_p7), [#allocation6], 4096   ;;  %p5784_p8 = pmov %p5783_p7 }
  0x6d   : > { %v4149_v0 = vmov 0   ;;  %v3680_v1 = vld [vmem:[#allocation5 + $0x4] ss:$12 sps:$4 sm:$0xff]   ;;  %v3682_v2 = vld [vmem:[#allocation5] ss:$12 sps:$4 sm:$0xff]   ;;  %v3707_v28 = vld [vmem:[%s4369_s9 + $0x18] sm:$0xff]   ;;  %v323_v33 = vlaneseq }
  0x6e   : > { %4121 = vsyncadd (%p5784_p8), [#allocation6], 4294963200  ;;  %546 = vmatprep.mubr.bf16.mxu0 %v4149_v0  ;;  %514 = vmatprep.subr.bf16.mxu0 %v3680_v1  ;;  %v3683_v3 = vld [vmem:[#allocation5 + $0x1c] ss:$12 sps:$4 sm:$0xff]   ;;  %v3685_v4 = vld [vmem:[#allocation5 + $0x18] ss:$12 sps:$4 sm:$0xff]  }
  0x6f   : > { %515 = vmatpush1.bf16.msra.mxu0 %v3682_v2  ;;  %v3686_v5 = vld [vmem:[#allocation5 + $0x34] ss:$12 sps:$4 sm:$0xff]   ;;  %v3688_v6 = vld [vmem:[#allocation5 + $0x30] ss:$12 sps:$4 sm:$0xff]   ;;  %v3689_v7 = vld [vmem:[#allocation5 + $0x4c] ss:$12 sps:$4 sm:$0xff]  }
  0x70   : > { %516 = vmatprep.subr.bf16.mxu0 %v3683_v3  ;;  %v3691_v8 = vld [vmem:[#allocation5 + $0x48] ss:$12 sps:$4 sm:$0xff]   ;;  %v3704_v9 = vld [vmem:[%s4369_s9] sm:$0xff]   ;;  %v3700_v18 = vld [vmem:[#allocation5 + $0x90] ss:$12 sps:$4 sm:$0xff]   ;;  %v324_v34 = vshrl.u32 %v323_v33, 7 }
  0x71   : > { %v3692_v10 = vld [vmem:[#allocation5 + $0x64] ss:$12 sps:$4 sm:$0xff]   ;;  %3250 = vmatprep.mubr.bf16.mxu1 %v3704_v9  ;;  %v3694_v11 = vld [vmem:[#allocation5 + $0x60] ss:$12 sps:$4 sm:$0xff]   ;;  %v3695_v12 = vld [vmem:[#allocation5 + $0x7c] ss:$12 sps:$4 sm:$0xff]  }
  0x72   : > { %v3697_v13 = vld [vmem:[#allocation5 + $0x78] ss:$12 sps:$4 sm:$0xff]   ;;  %v3711_v14 = vld [vmem:[#allocation5 + $0x8] ss:$12 sps:$4 sm:$0xff]   ;;  %v3713_v16 = vld [vmem:[#allocation5 + $0x20] ss:$12 sps:$4 sm:$0xff]  }
  0x73   : > { %517 = vmatpush1.bf16.msra.mxu0 %v3685_v4  ;;  %v3698_v15 = vld [vmem:[#allocation5 + $0x94] ss:$12 sps:$4 sm:$0xff]   ;;  %3234 = vmatprep.subr.bf16.mxu1 %v3711_v14  ;;  %v3714_v17 = vld [vmem:[#allocation5 + $0x38] ss:$12 sps:$4 sm:$0xff]   ;;  %v3715_v21 = vld [vmem:[#allocation5 + $0x50] ss:$12 sps:$4 sm:$0xff]  }
  0x74   : > { %518 = vmatprep.subr.bf16.mxu0 %v3686_v5  ;;  %3235 = vmatpush3.bf16.msra.mxu1 %v3711_v14  ;;  %v3701_v19 = vld [vmem:[#allocation5 + $0xac] ss:$12 sps:$4 sm:$0xff]   ;;  %v3703_v20 = vld [vmem:[#allocation5 + $0xa8] ss:$12 sps:$4 sm:$0xff]   ;;  %v3719_v26 = vld [vmem:[#allocation5 + $0xb0] ss:$12 sps:$4 sm:$0xff]  }
  0x75   : > { %3236 = vmatprep.subr.bf16.mxu1 %v3713_v16  ;;  %v3716_v22 = vld [vmem:[#allocation5 + $0x68] ss:$12 sps:$4 sm:$0xff]   ;;  %v3717_v23 = vld [vmem:[#allocation5 + $0x80] ss:$12 sps:$4 sm:$0xff]   ;;  %v3718_v25 = vld [vmem:[#allocation5 + $0x98] ss:$12 sps:$4 sm:$0xff]  }
  0x76   : > { %v3705_v24 = vld [vmem:[%s4369_s9 + $0x8] sm:$0xff]   ;;  %v3706_v27 = vld [vmem:[%s4369_s9 + $0x10] sm:$0xff]   ;;  %v3708_v29 = vld [vmem:[%s4369_s9 + $0x20] sm:$0xff]   ;;  %v325_v35 = vsub.s32 0, %v324_v34  ;;  %v329_v37 = vsub.s32 1, %v324_v34  ;;  %vm752_vm0 = vcmask 261120  }
  0x77   : > { %519 = vmatpush1.bf16.msra.mxu0 %v3688_v6  ;;  %v3709_v30 = vld [vmem:[%s4369_s9 + $0x28] sm:$0xff]   ;;  %v3710_v31 = vld [vmem:[%s4369_s9 + $0x30] sm:$0xff]   ;;  %v3712_v32 = vld [vmem:[%s4369_s9 + $0x38] sm:$0xff]   ;;  %s4150_s12 = smov 96   ;;  %v333_v59 = vsub.s32 2, %v324_v34  ;;  %s4152_s13 = smov 64  }
  0x78   : > { %520 = vmatprep.subr.bf16.mxu0 %v3689_v7  ;;  %3237 = vmatpush3.bf16.msra.mxu1 %v3713_v16  ;;  %v321_v36 = vld [vmem:[%s5758_s2] sm:$0x7]  ;;  %s4153_s10 = smov 32   ;;  %vm2649_vm2 = vcmask 523264   ;;  %vm2666_vm3 = vcmask 785408   ;;  %s2993_s28 = sshll.u32 %s4365_s17, 7 }
  0x79   : > { %3238 = vmatprep.subr.bf16.mxu1 %v3714_v17  ;;  %v4399_v38 = vrot.slane %v321_v36, %v325_v35  ;;  %v4401_v40 = vrot.slane %v321_v36, %v329_v37  ;;  %s5687_s30 = scalar_lea.vmem [#allocation8], %s2993_s28  ;;  %s3073_s11 = sshll.u32 %s4208_s22, 11 }
  0x7a   : > { %s2889_s23 = sshll.u32 %s5687_s30, 4  ;;  %s5707_s8 = scalar_lea.hbm %s5761_s5, %s3073_s11  ;;  %s5709_s23 = int_to_ptr.vmem [resolvable:$true] %s2889_s23 }
  0x7b   : > { %521 = vmatpush1.bf16.msra.mxu0 %v3691_v8  ;;  %s2876_s22 = scalar_lea.sflag [#allocation4], %s4365_s17  ;;  %s4070_s9 = scalar_lea.vmem %s5709_s23, 2048 }
  0x7c   : > { %522 = vmatprep.subr.bf16.mxu0 %v3692_v10  ;;  %3239 = vmatpush3.bf16.msra.mxu1 %v3714_v17  ;;  %p4071_p11 = scmp.ne.s32.totalorder %s5709_s23, %s4070_s9  ;;  %p5895_p0 = scmp.ne.s32.totalorder %s5780_s29, 0 }
  0x7d   : > { %3240 = vmatprep.subr.bf16.mxu1 %v3715_v21  ;;  %s4154_s24 = smov [#allocation8]  }
  0x7e   : > { %p4072_p1 = pnand %p4071_p11, %p5895_p0  ;;  %s4074_s26 = sshll.u32 %s4154_s24, 4  ;;  %s4075_s26 = int_to_ptr.vmem [resolvable:$false] %s4074_s26 }
  0x7f   : > { %523 = vmatpush1.bf16.msra.mxu0 %v3694_v11  ;;  %p4077_p5 = scmp.lt.s32.totalorder %s5709_s23, %s4075_s26 }
  0x80   : > { %524 = vmatprep.subr.bf16.mxu0 %v3695_v12  ;;  %3241 = vmatpush3.bf16.msra.mxu1 %v3715_v21  ;;  %p4073_p3 = pneg %p4072_p1 }
  0x81   : > { %3242 = vmatprep.subr.bf16.mxu1 %v3716_v22 }
  0x83   : > { %525 = vmatpush1.bf16.msra.mxu0 %v3697_v13 }
  0x84   : > { %526 = vmatprep.subr.bf16.mxu0 %v3698_v15  ;;  %3243 = vmatpush3.bf16.msra.mxu1 %v3716_v22 }
  0x85   : > { %3244 = vmatprep.subr.bf16.mxu1 %v3717_v23 }
  0x87   : > { %527 = vmatpush1.bf16.msra.mxu0 %v3700_v18 }
  0x88   : > { %528 = vmatprep.subr.bf16.mxu0 %v3701_v19  ;;  %3245 = vmatpush3.bf16.msra.mxu1 %v3717_v23 }
  0x89   : > { %3246 = vmatprep.subr.bf16.mxu1 %v3718_v25 }
  0x8b   : > { %529 = vmatpush1.bf16.msra.mxu0 %v3703_v20 }
  0x8c   : > { %3247 = vmatpush3.bf16.msra.mxu1 %v3718_v25 }
  0x8d   : > { %3248 = vmatprep.subr.bf16.mxu1 %v3719_v26 }
  0x8e   : > { %547 = vmatmul.mubr.bf16.vlgmr.msra.gmra.mrb[0].mxu0 %v3704_v9 }
  0x8f   : > { %556 = vmatprep.mubr.bf16.mxu0 %v4149_v0 }
  0x90   : > { %3249 = vmatpush3.bf16.msra.mxu1 %v3719_v26 }
  0x93   : > { %3251 = vmatmul.mubr.bf16.vlgmr.msra.gmra.mrb[0].mxu1 %v3705_v24 }
  0x94   : > { %3254 = vmatprep.mubr.bf16.mxu1 %v3706_v27 }
  0x96   : > { %557 = vmatmul.mubr.bf16.gmra.mrb[4].mxu0 %v3705_v24 }
  0x97   : > { %566 = vmatprep.mubr.bf16.mxu0 %v4149_v0 }
  0x9b   : > { %3255 = vmatmul.mubr.bf16.gmra.mrb[4].mxu1 %v3707_v28 }
  0x9c   : > { %3258 = vmatprep.mubr.bf16.mxu1 %v3708_v29 }
  0x9e   : > { %567 = vmatmul.mubr.bf16.gmra.mrb[8].mxu0 %v3706_v27 }
  0x9f   : > { %576 = vmatprep.mubr.bf16.mxu0 %v4149_v0 }
  0xa3   : > { %3259 = vmatmul.mubr.bf16.gmra.mrb[8].mxu1 %v3709_v30 }
  0xa4   : > { %3262 = vmatprep.mubr.bf16.mxu1 %v3710_v31 }
  0xa6   : > { %577 = vmatmul.mubr.bf16.gmra.mrb[12].mxu0 %v3707_v28 }
  0xa7   : > { %586 = vmatprep.mubr.bf16.mxu0 %v4149_v0 }
  0xab   : > { %3263 = vmatmul.mubr.bf16.gmra.mrb[12].mxu1 %v3712_v32 }
  0xae   : > { %587 = vmatmul.mubr.bf16.gmra.mrb[16].mxu0 %v3708_v29 }
  0xaf   : > { %596 = vmatprep.mubr.bf16.mxu0 %v4149_v0 }
  0xb6   : > { %597 = vmatmul.mubr.bf16.gmra.mrb[20].mxu0 %v3709_v30 }
  0xb7   : > { %606 = vmatprep.mubr.bf16.mxu0 %v4149_v0 }
  0xbe   : > { %607 = vmatmul.mubr.bf16.gmra.mrb[24].mxu0 %v3710_v31 }
  0xbf   : > { %616 = vmatprep.mubr.bf16.mxu0 %v4149_v0  ;;  %v4433_v0 = vrot.slane %v321_v36, %v333_v59 }
  0xc6   : > { %617 = vmatmul.mubr.bf16.gmra.mrb[28].mxu0 %v3712_v32 }
 0x161   : > { %v548_v39 = vpop.f32.mrb[0].mxu0 }
 0x162   : > { %v550_v41 = vpop.f32.mrb[1].mxu0  ;;  %v549_v43 = vadd.f32 %v548_v39, %v4399_v38 }
 0x163   : > { %v552_v42 = vpop.f32.mrb[2].mxu0  ;;  %v551_v46 = vadd.f32 %v550_v41, %v4401_v40 }
 0x164   : > { %v553_v44 = vadd.f32 %v552_v42, %v4399_v38  ;;  %v554_v45 = vpop.f32.mrb[3].mxu0 }
 0x165   : > { %v555_v47 = vadd.f32 %v554_v45, %v4401_v40 }
 0x166   : > { %v4407_v48 = vpack.c.bf16 %v553_v44, %v549_v43  ;;  %v3252_v4 = vpop.f32.mrb[0].mxu1 }
 0x167   : > { %v4409_v49 = vpack.c.bf16 %v555_v47, %v551_v46  ;;  %v670_v7 = vadd.f32 %v3252_v4, %v4433_v0  ;;  %v661_v8 = vpop.f32.mrb[1].mxu1 }
 0x168   : > { %3282 = vmatprep.mubr.msk.bf16.mxu0 %vm752_vm0, %v4407_v48  ;;  %v662_v11 = vadd.f32 %v661_v8, %v4433_v0  ;;  %v3253_v12 = vpop.f32.mrb[2].mxu1 }
 0x169   : > { %v558_v50 = vpop.f32.mrb[4].mxu0  ;;  %1187 = vrot.lane.b32.xlu0 %v4409_v49, %s4150_s12  ;;  %3570 = vmatprep.subr.msk.bf16.mxu0 %vm752_vm0, %v4409_v49  ;;  %v778_v51 = vsel %vm752_vm0, %v4409_v49, 0  ;;  %v673_v14 = vadd.f32 %v3253_v12, %v4433_v0  ;;  %v664_v15 = vpop.f32.mrb[3].mxu1 }
 0x16a   : > { %v559_v52 = vadd.f32 %v558_v50, %v4399_v38  ;;  %v560_v53 = vpop.f32.mrb[5].mxu0  ;;  %3267 = vmatpush3.bf16.xpose.msra.mxu0 %v778_v51  ;;  %v665_v17 = vadd.f32 %v664_v15, %v4433_v0 }
 0x16b   : > { %v562_v54 = vpop.f32.mrb[6].mxu0  ;;  %v561_v57 = vadd.f32 %v560_v53, %v4401_v40  ;;  %v4447_v18 = vpack.c.bf16 %v673_v14, %v670_v7 }
 0x16c   : > { %v563_v55 = vadd.f32 %v562_v54, %v4399_v38  ;;  %v564_v56 = vpop.f32.mrb[7].mxu0  ;;  %v4455_v21 = vpack.c.bf16 %v665_v17, %v662_v11 }
 0x16d   : > { %v565_v58 = vadd.f32 %v564_v56, %v4401_v40 }
 0x16e   : > { %v4423_v60 = vpack.c.bf16 %v563_v55, %v559_v52  ;;  %v3256_v25 = vpop.f32.mrb[4].mxu1  ;;  %3298 = vmatprep.subr.bf16.mxu1 %v4455_v21 }
 0x16f   : > { %v4425_v61 = vpack.c.bf16 %v565_v58, %v561_v57  ;;  %v686_v28 = vadd.f32 %v3256_v25, %v4433_v0  ;;  %v677_v29 = vpop.f32.mrb[5].mxu1  ;;  %3299 = vmatpush3.bf16.msra.mxu1 %v4455_v21 }
 0x170   : > { %v678_v32 = vadd.f32 %v677_v29, %v4433_v0  ;;  %v3257_v34 = vpop.f32.mrb[6].mxu1  ;;  %3300 = vmatprep.subr.bf16.mxu1 %v4447_v18 }
 0x171   : > { %v568_v62 = vpop.f32.mrb[8].mxu0  ;;  %1189 = vrot.lane.b32.xlu1 %v4425_v61, %s4150_s12  ;;  %3571 = vmatprep.subr.msk.bf16.mxu0 %vm752_vm0, %v4425_v61  ;;  %v781_v63 = vsel %vm752_vm0, %v4425_v61, 0  ;;  %v689_v36 = vadd.f32 %v3257_v34, %v4433_v0  ;;  %v680_v37 = vpop.f32.mrb[7].mxu1 }
 0x172   : > { %v569_v1 = vadd.f32 %v568_v62, %v4399_v38  ;;  %v570_v2 = vpop.f32.mrb[9].mxu0  ;;  %3269 = vmatpush3.bf16.xpose.msra.mxu0 %v781_v63  ;;  %v681_v41 = vadd.f32 %v680_v37, %v4433_v0 }
 0x173   : > { %v572_v3 = vpop.f32.mrb[10].mxu0  ;;  %v571_v9 = vadd.f32 %v570_v2, %v4401_v40  ;;  %v4472_v42 = vpack.c.bf16 %v689_v36, %v686_v28  ;;  %3301 = vmatpush3.bf16.msra.mxu1 %v4447_v18 }
 0x174   : > { %v573_v5 = vadd.f32 %v572_v3, %v4399_v38  ;;  %v574_v6 = vpop.f32.mrb[11].mxu0  ;;  %v4479_v45 = vpack.c.bf16 %v681_v41, %v678_v32 }
 0x175   : > { %v575_v10 = vadd.f32 %v574_v6, %v4401_v40 }
 0x176   : > { %v4441_v13 = vpack.c.bf16 %v573_v5, %v569_v1  ;;  %v3260_v51 = vpop.f32.mrb[8].mxu1  ;;  %3302 = vmatprep.subr.bf16.mxu1 %v4479_v45 }
 0x177   : > { %v4444_v16 = vpack.c.bf16 %v575_v10, %v571_v9  ;;  %v702_v54 = vadd.f32 %v3260_v51, %v4433_v0  ;;  %v693_v55 = vpop.f32.mrb[9].mxu1  ;;  %3303 = vmatpush3.bf16.msra.mxu1 %v4479_v45 }
 0x178   : > { %v694_v58 = vadd.f32 %v693_v55, %v4433_v0  ;;  %v3261_v59 = vpop.f32.mrb[10].mxu1  ;;  %3304 = vmatprep.subr.bf16.mxu1 %v4472_v42 }
 0x179   : > { %v578_v19 = vpop.f32.mrb[12].mxu0  ;;  %1191 = vrot.lane.b32.xlu0 %v4444_v16, %s4150_s12  ;;  %3572 = vmatprep.subr.msk.bf16.mxu0 %vm752_vm0, %v4444_v16  ;;  %v784_v20 = vsel %vm752_vm0, %v4444_v16, 0  ;;  %v705_v63 = vadd.f32 %v3261_v59, %v4433_v0  ;;  %v696_v1 = vpop.f32.mrb[11].mxu1 }
 0x17a   : > { %v579_v22 = vadd.f32 %v578_v19, %v4399_v38  ;;  %v580_v23 = vpop.f32.mrb[13].mxu0  ;;  %3271 = vmatpush3.bf16.xpose.msra.mxu0 %v784_v20  ;;  %v697_v3 = vadd.f32 %v696_v1, %v4433_v0 }
 0x17b   : > { %v582_v24 = vpop.f32.mrb[14].mxu0  ;;  %v581_v30 = vadd.f32 %v580_v23, %v4401_v40  ;;  %v4496_v4 = vpack.c.bf16 %v705_v63, %v702_v54  ;;  %3305 = vmatpush3.bf16.msra.mxu1 %v4472_v42 }
 0x17c   : > { %v583_v26 = vadd.f32 %v582_v24, %v4399_v38  ;;  %v584_v27 = vpop.f32.mrb[15].mxu0  ;;  %v4503_v7 = vpack.c.bf16 %v697_v3, %v694_v58  ;;  %v4151_v3 = vmov -1e+30  }
 0x17d   : > { %v585_v31 = vadd.f32 %v584_v27, %v4401_v40 }
 0x17e   : > { %v4466_v35 = vpack.c.bf16 %v583_v26, %v579_v22  ;;  %v3264_v11 = vpop.f32.mrb[12].mxu1  ;;  %3306 = vmatprep.subr.bf16.mxu1 %v4503_v7 }
 0x17f   : > { %v4469_v39 = vpack.c.bf16 %v585_v31, %v581_v30  ;;  %v718_v15 = vadd.f32 %v3264_v11, %v4433_v0  ;;  %v709_v17 = vpop.f32.mrb[13].mxu1  ;;  %3307 = vmatpush3.bf16.msra.mxu1 %v4503_v7 }
 0x180   : > { %v710_v22 = vadd.f32 %v709_v17, %v4433_v0  ;;  %v3265_v23 = vpop.f32.mrb[14].mxu1  ;;  %3308 = vmatprep.subr.bf16.mxu1 %v4496_v4 }
 0x181   : > { %v588_v43 = vpop.f32.mrb[16].mxu0  ;;  %3573 = vmatprep.subr.msk.bf16.mxu0 %vm752_vm0, %v4469_v39  ;;  %v787_v44 = vsel %vm752_vm0, %v4469_v39, 0  ;;  %v721_v25 = vadd.f32 %v3265_v23, %v4433_v0  ;;  %v712_v26 = vpop.f32.mrb[15].mxu1 }
 0x182   : > { %v589_v46 = vadd.f32 %v588_v43, %v4399_v38  ;;  %v590_v47 = vpop.f32.mrb[17].mxu0  ;;  %3273 = vmatpush3.bf16.xpose.msra.mxu0 %v787_v44  ;;  %v713_v28 = vadd.f32 %v712_v26, %v4433_v0 }
 0x183   : > { %v592_v50 = vpop.f32.mrb[18].mxu0  ;;  %v591_v56 = vadd.f32 %v590_v47, %v4401_v40  ;;  %v4520_v29 = vpack.c.bf16 %v721_v25, %v718_v15  ;;  %3309 = vmatpush3.bf16.msra.mxu1 %v4496_v4 }
 0x184   : > { %v593_v52 = vadd.f32 %v592_v50, %v4399_v38  ;;  %v594_v53 = vpop.f32.mrb[19].mxu0  ;;  %v4527_v32 = vpack.c.bf16 %v713_v28, %v710_v22 }
 0x185   : > { %v595_v57 = vadd.f32 %v594_v53, %v4401_v40 }
 0x186   : > { %v4490_v62 = vpack.c.bf16 %v593_v52, %v589_v46  ;;  %3310 = vmatprep.subr.bf16.mxu1 %v4527_v32 }
 0x187   : > { %v4493_v2 = vpack.c.bf16 %v595_v57, %v591_v56  ;;  %3311 = vmatpush3.bf16.msra.mxu1 %v4527_v32 }
 0x188   : > { %3312 = vmatprep.subr.bf16.mxu1 %v4520_v29 }
 0x189   : > { %v598_v5 = vpop.f32.mrb[20].mxu0  ;;  %3574 = vmatprep.subr.msk.bf16.mxu0 %vm752_vm0, %v4493_v2  ;;  %v790_v6 = vsel %vm752_vm0, %v4493_v2, 0 }
 0x18a   : > { %v599_v8 = vadd.f32 %v598_v5, %v4399_v38  ;;  %v600_v9 = vpop.f32.mrb[21].mxu0  ;;  %3275 = vmatpush3.bf16.xpose.msra.mxu0 %v790_v6 }
 0x18b   : > { %v602_v10 = vpop.f32.mrb[22].mxu0  ;;  %v601_v19 = vadd.f32 %v600_v9, %v4401_v40  ;;  %3313 = vmatpush3.bf16.msra.mxu1 %v4520_v29 }
 0x18c   : > { %v603_v12 = vadd.f32 %v602_v10, %v4399_v38  ;;  %v604_v14 = vpop.f32.mrb[23].mxu0 }
 0x18d   : > { %v605_v20 = vadd.f32 %v604_v14, %v4401_v40 }
 0x18e   : > { %v4514_v24 = vpack.c.bf16 %v603_v12, %v599_v8 }
 0x18f   : > { %v4517_v27 = vpack.c.bf16 %v605_v20, %v601_v19 }
 0x191   : > { %v608_v30 = vpop.f32.mrb[24].mxu0  ;;  %3575 = vmatprep.subr.msk.bf16.mxu0 %vm752_vm0, %v4517_v27  ;;  %v793_v31 = vsel %vm752_vm0, %v4517_v27, 0 }
 0x192   : > { %v609_v34 = vadd.f32 %v608_v30, %v4399_v38  ;;  %v610_v36 = vpop.f32.mrb[25].mxu0  ;;  %3277 = vmatpush3.bf16.xpose.msra.mxu0 %v793_v31 }
 0x193   : > { %v612_v37 = vpop.f32.mrb[26].mxu0  ;;  %v611_v43 = vadd.f32 %v610_v36, %v4401_v40 }
 0x194   : > { %v613_v0 = vadd.f32 %v612_v37, %v4399_v38  ;;  %v614_v41 = vpop.f32.mrb[27].mxu0 }
 0x195   : > { %v615_v44 = vadd.f32 %v614_v41, %v4401_v40 }
 0x196   : > { %v4536_v46 = vpack.c.bf16 %v613_v0, %v609_v34 }
 0x197   : > { %v4538_v47 = vpack.c.bf16 %v615_v44, %v611_v43 }
 0x199   : > { %v618_v50 = vpop.f32.mrb[28].mxu0  ;;  %3576 = vmatprep.subr.msk.bf16.mxu0 %vm752_vm0, %v4538_v47  ;;  %v796_v51 = vsel %vm752_vm0, %v4538_v47, 0 }
 0x19a   : > { %v619_v52 = vadd.f32 %v618_v50, %v4399_v38  ;;  %v620_v53 = vpop.f32.mrb[29].mxu0  ;;  %3279 = vmatpush3.bf16.xpose.msra.mxu0 %v796_v51 }
 0x19b   : > { %v622_v54 = vpop.f32.mrb[30].mxu0  ;;  %v621_v57 = vadd.f32 %v620_v53, %v4401_v40 }
 0x19c   : > { %v623_v55 = vadd.f32 %v622_v54, %v4399_v38  ;;  %v624_v56 = vpop.f32.mrb[31].mxu0 }
 0x19d   : > { %v625_v58 = vadd.f32 %v624_v56, %v4401_v40  ;;  %v749_v40 = vand.u32 127, %v323_v33 }
 0x19e   : > { %v4549_v59 = vpack.c.bf16 %v623_v55, %v619_v52 }
 0x19f   : > { %v4551_v63 = vpack.c.bf16 %v625_v58, %v621_v57  ;;  %vm750_vm1 = vcmp.lt.s32.totalorder %v749_v40, 16 }
 0x1a0   : > { %v4576_v5 = vsel %vm750_vm1, 0.0, %v4151_v3 }
 0x1a1   : > { %3577 = vmatprep.subr.msk.bf16.mxu0 %vm752_vm0, %v4551_v63  ;;  %v799_v1 = vsel %vm752_vm0, %v4551_v63, 0 }
 0x1a2   : > { %3281 = vmatpush3.bf16.xpose.msra.mxu0 %v799_v1 }
 0x1a9   : > { %3283 = vmatmul.mubr.msk.bf16.vlgmr.msra.gmra.mrb[32].mxu0 %vm752_vm0, %v4423_v60 }
 0x1aa   : > { %3286 = vmatprep.mubr.msk.bf16.mxu0 %vm752_vm0, %v4441_v13 }
 0x1b1   : > { %3287 = vmatmul.mubr.msk.bf16.gmra.mrb[36].mxu0 %vm752_vm0, %v4466_v35 }
 0x1b2   : > { %3290 = vmatprep.mubr.msk.bf16.mxu0 %vm752_vm0, %v4490_v62 }
 0x1b9   : > { %3291 = vmatmul.mubr.msk.bf16.gmra.mrb[40].mxu0 %vm752_vm0, %v4514_v24 }
 0x1ba   : > { %3294 = vmatprep.mubr.msk.bf16.mxu0 %vm752_vm0, %v4536_v46 }
 0x1c1   : > { %3295 = vmatmul.mubr.msk.bf16.gmra.mrb[44].mxu0 %vm752_vm0, %v4549_v59 }
 0x1db   : > { %v4571_v38 = vpop.permute.xlu0 %1187 }
 0x1dc   : > { %3578 = vmatprep.subr.msk.bf16.mxu1 %vm752_vm0, %v4571_v38 }
 0x1e3   : > { %v1190_v56 = vpop.permute.xlu1 %1189 }
 0x1eb   : > { %v1192_v57 = vpop.permute.xlu0 %1191 }
 0x27c   : > { %v3284_v6 = vpop.f32.mrb[32].mxu0 }
 0x27d   : > { %v4579_v8 = vadd.f32 %v3284_v6, %v4576_v5  ;;  %v835_v9 = vpop.f32.mrb[33].mxu0 }
 0x27e   : > { %v4582_v10 = vadd.f32 %v835_v9, %v4576_v5  ;;  %v3285_v11 = vpop.f32.mrb[34].mxu0 }
 0x27f   : > { %902 = vmax.xlane.f32.xlu1 %v4579_v8  ;;  %v838_v12 = vpop.f32.mrb[35].mxu0  ;;  %v4587_v33 = vadd.f32 %v3285_v11, %v4576_v5 }
 0x280   : > { %898 = vmax.xlane.f32.xlu0 %v4582_v10  ;;  %v4590_v14 = vadd.f32 %v838_v12, %v4576_v5 }
 0x283   : > { %904 = vmax.xlane.f32.xlu1 %v4587_v33 }
 0x284   : > { %v3288_v15 = vpop.f32.mrb[36].mxu0  ;;  %900 = vmax.xlane.f32.xlu0 %v4590_v14 }
 0x285   : > { %v851_v17 = vpop.f32.mrb[37].mxu0  ;;  %v4602_v37 = vadd.f32 %v3288_v15, %v4576_v5 }
 0x286   : > { %v3289_v19 = vpop.f32.mrb[38].mxu0  ;;  %v4599_v36 = vadd.f32 %v851_v17, %v4576_v5 }
 0x287   : > { %v854_v20 = vpop.f32.mrb[39].mxu0  ;;  %v4607_v0 = vadd.f32 %v3289_v19, %v4576_v5 }
 0x288   : > { %v4615_v43 = vadd.f32 %v854_v20, %v4576_v5 }
 0x28c   : > { %v3292_v22 = vpop.f32.mrb[40].mxu0 }
 0x28d   : > { %v867_v23 = vpop.f32.mrb[41].mxu0  ;;  %v4623_v50 = vadd.f32 %v3292_v22, %v4576_v5 }
 0x28e   : > { %v3293_v25 = vpop.f32.mrb[42].mxu0  ;;  %v4610_v41 = vadd.f32 %v867_v23, %v4576_v5 }
 0x28f   : > { %v870_v26 = vpop.f32.mrb[43].mxu0  ;;  %v4631_v52 = vadd.f32 %v3293_v25, %v4576_v5  ;;  %v1228_v25 = vsel %vm752_vm0, %v4571_v38, 0 }
 0x290   : > { %v4618_v44 = vadd.f32 %v870_v26, %v4576_v5  ;;  %v1231_v26 = vsel %vm752_vm0, %v1190_v56, 0 }
 0x294   : > { %1193 = vrot.lane.b32.xlu1 %v4469_v39, %s4150_s12  ;;  %v3296_v28 = vpop.f32.mrb[44].mxu0 }
 0x295   : > { %v883_v30 = vpop.f32.mrb[45].mxu0  ;;  %v4626_v51 = vadd.f32 %v3296_v28, %v4576_v5  ;;  %v1234_v28 = vsel %vm752_vm0, %v1192_v57, 0 }
 0x296   : > { %v3297_v31 = vpop.f32.mrb[46].mxu0  ;;  %v4635_v53 = vadd.f32 %v883_v30, %v4576_v5 }
 0x297   : > { %v886_v34 = vpop.f32.mrb[47].mxu0  ;;  %v4639_v54 = vadd.f32 %v3297_v31, %v4576_v5 }
 0x298   : > { %v4643_v55 = vadd.f32 %v886_v34, %v4576_v5 }
 0x29a   : > { %1195 = vrot.lane.b32.xlu0 %v4493_v2, %s4150_s12 }
 0x2b8   : > { %906 = vmax.xlane.f32.xlu1 %v4599_v36 }
 0x2b9   : > { %910 = vmax.xlane.f32.xlu0 %v4602_v37 }
 0x2bc   : > { %912 = vmax.xlane.f32.xlu1 %v4607_v0 }
 0x2bd   : > { %914 = vmax.xlane.f32.xlu0 %v4610_v41 }
 0x2c0   : > { %908 = vmax.xlane.f32.xlu1 %v4615_v43 }
 0x2c1   : > { %916 = vmax.xlane.f32.xlu0 %v4618_v44 }
 0x2c4   : > { %918 = vmax.xlane.f32.xlu1 %v4623_v50 }
 0x2c5   : > { %926 = vmax.xlane.f32.xlu0 %v4626_v51 }
 0x2c8   : > { %920 = vmax.xlane.f32.xlu1 %v4631_v52 }
 0x2cc   : > { %922 = vmax.xlane.f32.xlu1 %v4635_v53 }
 0x2d0   : > { %928 = vmax.xlane.f32.xlu1 %v4639_v54 }
 0x2d4   : > { %924 = vmax.xlane.f32.xlu1 %v4643_v55 }
 0x2db   : > { %1199 = vrot.lane.b32.xlu0 %v4538_v47, %s4150_s12 }
 0x2df   : > { %1201 = vrot.lane.b32.xlu0 %v4551_v63, %s4150_s12 }
 0x2e3   : > { %1163 = vrot.lane.b32.xlu0 %v4407_v48, %s4150_s12 }
 0x2e5   : > { %1197 = vrot.lane.b32.xlu1 %v4517_v27, %s4150_s12 }
 0x2e7   : > { %1167 = vrot.lane.b32.xlu0 %v4441_v13, %s4150_s12 }
 0x2e9   : > { %1165 = vrot.lane.b32.xlu1 %v4423_v60, %s4150_s12 }
 0x2eb   : > { %1171 = vrot.lane.b32.xlu0 %v4490_v62, %s4150_s12 }
 0x2ed   : > { %1169 = vrot.lane.b32.xlu1 %v4466_v35, %s4150_s12 }
 0x2ef   : > { %1175 = vrot.lane.b32.xlu0 %v4536_v46, %s4150_s12 }
 0x2f1   : > { %1173 = vrot.lane.b32.xlu1 %v4514_v24, %s4150_s12 }
 0x2f3   : > { %1476 = vrot.lane.b32.xlu0 %v4455_v21, %s4150_s12 }
 0x2f5   : > { %1177 = vrot.lane.b32.xlu1 %v4549_v59, %s4150_s12 }
 0x2f7   : > { %1480 = vrot.lane.b32.xlu0 %v4479_v45, %s4150_s12 }
 0x2f9   : > { %1478 = vrot.lane.b32.xlu1 %v4447_v18, %s4150_s12 }
 0x2fb   : > { %1488 = vrot.lane.b32.xlu0 %v4527_v32, %s4150_s12 }
 0x2fd   : > { %1482 = vrot.lane.b32.xlu1 %v4472_v42, %s4150_s12 }
 0x2ff   : > { %1653 = vrot.lane.b32.xlu0 %v4409_v49, %s4152_s13 }
 0x301   : > { %1484 = vrot.lane.b32.xlu1 %v4503_v7, %s4150_s12 }
 0x303   : > { %1655 = vrot.lane.b32.xlu0 %v4425_v61, %s4152_s13 }
 0x305   : > { %1486 = vrot.lane.b32.xlu1 %v4496_v4, %s4150_s12 }
 0x307   : > { %1659 = vrot.lane.b32.xlu0 %v4469_v39, %s4152_s13 }
 0x309   : > { %1490 = vrot.lane.b32.xlu1 %v4520_v29, %s4150_s12 }
 0x30c   : > { %v903_v58 = vpop.xlane.xlu1 %902 }
 0x30d   : > { %1657 = vrot.lane.b32.xlu1 %v4444_v16, %s4152_s13  ;;  %v899_v1 = vpop.xlane.xlu0 %898  ;;  %v932_v3 = vsub.f32 %v4579_v8, %v903_v58 }
 0x30e   : > { %v930_v40 = vsub.f32 %v4582_v10, %v899_v1 }
 0x30f   : > { %v950_v17 = vmul.f32 1.442695, %v932_v3 }
 0x310   : > { %v946_v6 = vmul.f32 1.442695, %v930_v40  ;;  %v905_v9 = vpop.xlane.xlu1 %904 }
 0x311   : > { %v933_v11 = vsub.f32 %v4587_v33, %v905_v9  ;;  %v901_v12 = vpop.xlane.xlu0 %900 }
 0x312   : > { %v931_v15 = vsub.f32 %v4590_v14, %v901_v12  ;;  %3728 = vpow2.f32 %v946_v6 }
 0x313   : > { %v952_v19 = vmul.f32 1.442695, %v933_v11 }
 0x314   : > { %v948_v20 = vmul.f32 1.442695, %v931_v15  ;;  %v1194_v30 = vpop.permute.xlu1 %1193 }
 0x315   : > { %3730 = vpow2.f32 %v952_v19  ;;  %v1237_v31 = vsel %vm752_vm0, %v1194_v30, 0  ;;  %v1196_v34 = vpop.permute.xlu0 %1195 }
 0x316   : > { %3732 = vpow2.f32 %v948_v20  ;;  %v1240_v38 = vsel %vm752_vm0, %v1196_v34, 0 }
 0x317   : > { %3734 = vpow2.f32 %v950_v17 }
 0x31c   : > { %v4696_v22 = vpop.eup %3728 }
 0x31f   : > { %v4698_v23 = vpop.eup %3730 }
 0x320   : > { %5785 = vst [vmem:[#allocation12_spill] sm:$0xff] %v4698_v23  ;;  %v4700_v10 = vpop.eup %3732 }
 0x321   : > { %v4702_v8 = vpop.eup %3734  ;;  %v1010_v33 = vpack.c.bf16 %v4700_v10, %v4696_v22 }
 0x322   : > { %v1011_v14 = vpack.c.bf16 %v4698_v23, %v4702_v8 }
 0x323   : > { %3314 = vmatprep.mubr.bf16.mxu1 %v1010_v33 }
 0x324   : > { %3315 = vmatmul.mubr.bf16.vlgmr.msra.gmra.mrb[16].mxu1 %v1011_v14 }
 0x325   : > { %3331 = vmatpush3.bf16.xpose.msra.mxu1 %v1228_v25 }
 0x326   : > { %3579 = vmatprep.subr.msk.bf16.mxu1 %vm752_vm0, %v1190_v56 }
 0x32d   : > { %3333 = vmatpush3.bf16.xpose.msra.mxu1 %v1231_v26 }
 0x32e   : > { %3580 = vmatprep.subr.msk.bf16.mxu1 %vm752_vm0, %v1192_v57 }
 0x335   : > { %3335 = vmatpush3.bf16.xpose.msra.mxu1 %v1234_v28 }
 0x336   : > { %3581 = vmatprep.subr.msk.bf16.mxu1 %vm752_vm0, %v1194_v30 }
 0x33d   : > { %3337 = vmatpush3.bf16.xpose.msra.mxu1 %v1237_v31 }
 0x33e   : > { %3582 = vmatprep.subr.msk.bf16.mxu1 %vm752_vm0, %v1196_v34 }
 0x345   : > { %3339 = vmatpush3.bf16.xpose.msra.mxu1 %v1240_v38  ;;  %v907_v58 = vpop.xlane.xlu1 %906 }
 0x346   : > { %v934_v56 = vsub.f32 %v4599_v36, %v907_v58  ;;  %v911_v1 = vpop.xlane.xlu0 %910 }
 0x347   : > { %v936_v40 = vsub.f32 %v4602_v37, %v911_v1 }
 0x348   : > { %v954_v3 = vmul.f32 1.442695, %v934_v56 }
 0x349   : > { %v913_v57 = vpop.xlane.xlu1 %912  ;;  %v958_v11 = vmul.f32 1.442695, %v936_v40 }
 0x34a   : > { %v937_v6 = vsub.f32 %v4607_v0, %v913_v57  ;;  %v915_v9 = vpop.xlane.xlu0 %914  ;;  %3736 = vpow2.f32 %v954_v3 }
 0x34b   : > { %v938_v12 = vsub.f32 %v4610_v41, %v915_v9  ;;  %3738 = vpow2.f32 %v958_v11 }
 0x34c   : > { %v960_v15 = vmul.f32 1.442695, %v937_v6 }
 0x34d   : > { %v962_v17 = vmul.f32 1.442695, %v938_v12  ;;  %v909_v19 = vpop.xlane.xlu1 %908 }
 0x34e   : > { %v935_v20 = vsub.f32 %v4615_v43, %v909_v19  ;;  %v917_v33 = vpop.xlane.xlu0 %916  ;;  %3740 = vpow2.f32 %v960_v15 }
 0x34f   : > { %v939_v36 = vsub.f32 %v4618_v44, %v917_v33  ;;  %3742 = vpow2.f32 %v962_v17 }
 0x350   : > { %v956_v37 = vmul.f32 1.442695, %v935_v20 }
 0x351   : > { %v964_v14 = vmul.f32 1.442695, %v939_v36  ;;  %v919_v25 = vpop.xlane.xlu1 %918 }
 0x352   : > { %3744 = vpow2.f32 %v956_v37  ;;  %v940_v0 = vsub.f32 %v4623_v50, %v919_v25  ;;  %v927_v26 = vpop.xlane.xlu0 %926 }
 0x353   : > { %3746 = vpow2.f32 %v964_v14  ;;  %v944_v15 = vsub.f32 %v4626_v51, %v927_v26 }
 0x354   : > { %v966_v41 = vmul.f32 1.442695, %v940_v0  ;;  %v4726_v43 = vpop.eup %3736 }
 0x355   : > { %v921_v28 = vpop.xlane.xlu1 %920  ;;  %5786 = vst [vmem:[#allocation13_spill] sm:$0xff] %v4726_v43  ;;  %v4728_v38 = vpop.eup %3738 }
 0x356   : > { %v941_v30 = vsub.f32 %v4631_v52, %v921_v28  ;;  %v1200_v31 = vpop.permute.xlu0 %1199  ;;  %5787 = vst [vmem:[#allocation14_spill] sm:$0xff] %v4728_v38  ;;  %3748 = vpow2.f32 %v966_v41 }
 0x358   : > { %v968_v34 = vmul.f32 1.442695, %v941_v30  ;;  %v4730_v58 = vpop.eup %3740 }
 0x359   : > { %v923_v44 = vpop.xlane.xlu1 %922  ;;  %5788 = vst [vmem:[#allocation15_spill] sm:$0xff] %v4730_v58  ;;  %v4732_v1 = vpop.eup %3742  ;;  %v1013_v11 = vpack.c.bf16 %v4730_v58, %v4728_v38 }
 0x35a   : > { %3750 = vpow2.f32 %v968_v34  ;;  %v1202_v56 = vpop.permute.xlu0 %1201  ;;  %v942_v40 = vsub.f32 %v4635_v53, %v923_v44  ;;  %v1246_v44 = vsel %vm752_vm0, %v1200_v31, 0 }
 0x35c   : > { %v4734_v50 = vpop.eup %3744  ;;  %v970_v17 = vmul.f32 1.442695, %v942_v40 }
 0x35d   : > { %5789 = vst [vmem:[#allocation16_spill] sm:$0xff] %v4734_v50  ;;  %v4737_v57 = vpop.eup %3746  ;;  %v929_v52 = vpop.xlane.xlu1 %928  ;;  %v1012_v3 = vpack.c.bf16 %v4734_v50, %v4726_v43 }
 0x35e   : > { %v945_v6 = vsub.f32 %v4639_v54, %v929_v52  ;;  %v1164_v9 = vpop.permute.xlu0 %1163  ;;  %v1014_v12 = vpack.c.bf16 %v4737_v57, %v4732_v1  ;;  %v974_v54 = vmul.f32 1.442695, %v944_v15  ;;  %3752 = vpow2.f32 %v970_v17 }
 0x35f   : > { %3318 = vmatprep.mubr.bf16.mxu1 %v1012_v3  ;;  %v1249_v15 = vsel %vm752_vm0, %v1202_v56, 0 }
 0x360   : > { %3319 = vmatmul.mubr.bf16.gmra.mrb[20].mxu1 %v1013_v11  ;;  %v976_v53 = vmul.f32 1.442695, %v945_v6  ;;  %v4748_v36 = vpop.eup %3748 }
 0x361   : > { %v925_v19 = vpop.xlane.xlu1 %924  ;;  %3322 = vmatprep.mubr.bf16.mxu1 %v1014_v12 }
 0x362   : > { %v943_v20 = vsub.f32 %v4643_v55, %v925_v19  ;;  %v1168_v33 = vpop.permute.xlu0 %1167  ;;  %3754 = vpow2.f32 %v976_v53 }
 0x364   : > { %v4750_v37 = vpop.eup %3750  ;;  %v972_v14 = vmul.f32 1.442695, %v943_v20 }
 0x365   : > { %5790 = vst [vmem:[#allocation17_spill] sm:$0xff] %v4750_v37  ;;  %v1198_v25 = vpop.permute.xlu1 %1197  ;;  %v1015_v51 = vpack.c.bf16 %v4750_v37, %v4748_v36 }
 0x366   : > { %3756 = vpow2.f32 %v972_v14  ;;  %3583 = vmatprep.subr.msk.bf16.mxu1 %vm752_vm0, %v1198_v25  ;;  %v1172_v0 = vpop.permute.xlu0 %1171  ;;  %v1243_v26 = vsel %vm752_vm0, %v1198_v25, 0 }
 0x367   : > { %3758 = vpow2.f32 %v974_v54  ;;  %3341 = vmatpush3.bf16.xpose.msra.mxu1 %v1243_v26 }
 0x368   : > { %3323 = vmatmul.mubr.bf16.gmra.mrb[24].mxu1 %v1015_v51  ;;  %3584 = vmatprep.subr.msk.bf16.mxu1 %vm752_vm0, %v1200_v31  ;;  %v4757_v30 = vpop.eup %3752 }
 0x369   : > { %v1166_v55 = vpop.permute.xlu1 %1165  ;;  %5791 = vst [vmem:[#allocation18_spill] sm:$0xff] %v4757_v30 }
 0x36a   : > { %v1176_v41 = vpop.permute.xlu0 %1175 }
 0x36c   : > { %v4760_v40 = vpop.eup %3754 }
 0x36d   : > { %v1170_v28 = vpop.permute.xlu1 %1169  ;;  %5792 = vst [vmem:[#allocation19_spill] sm:$0xff] %v4760_v40 }
 0x36e   : > { %v1477_v34 = vpop.permute.xlu0 %1476 }
 0x36f   : > { %3343 = vmatpush3.bf16.xpose.msra.mxu1 %v1246_v44  ;;  %3362 = vmatprep.subr.bf16.mxu0 %v1477_v34 }
 0x370   : > { %v4762_v52 = vpop.eup %3756  ;;  %3585 = vmatprep.subr.msk.bf16.mxu1 %vm752_vm0, %v1202_v56  ;;  %3363 = vmatpush3.bf16.msra.mxu0 %v1477_v34 }
 0x371   : > { %5793 = vst [vmem:[#allocation20_spill] sm:$0xff] %v4762_v52  ;;  %v4765_v3 = vpop.eup %3758  ;;  %v1174_v6 = vpop.permute.xlu1 %1173  ;;  %v1016_v11 = vpack.c.bf16 %v4762_v52, %v4757_v30 }
 0x372   : > { %5794 = vst [vmem:[#allocation21_spill] sm:$0xff] %v4765_v3  ;;  %v1017_v12 = vpack.c.bf16 %v4760_v40, %v4765_v3  ;;  %v1481_v53 = vpop.permute.xlu0 %1480 }
 0x373   : > { %3326 = vmatprep.mubr.bf16.mxu1 %v1016_v11 }
 0x374   : > { %3327 = vmatmul.mubr.bf16.gmra.mrb[28].mxu1 %v1017_v12 }
 0x375   : > { %v1178_v31 = vpop.permute.xlu1 %1177  ;;  %3346 = vmatprep.mubr.msk.bf16.mxu1 %vm752_vm0, %v1164_v9 }
 0x376   : > { %v1489_v56 = vpop.permute.xlu0 %1488 }
 0x377   : > { %3345 = vmatpush3.bf16.xpose.msra.mxu1 %v1249_v15 }
 0x379   : > { %v1479_v17 = vpop.permute.xlu1 %1478 }
 0x37a   : > { %3364 = vmatprep.subr.bf16.mxu0 %v1479_v17 }
 0x37b   : > { %3365 = vmatpush3.bf16.msra.mxu0 %v1479_v17 }
 0x37c   : > { %3366 = vmatprep.subr.bf16.mxu0 %v1481_v53 }
 0x37d   : > { %v1483_v19 = vpop.permute.xlu1 %1482 }
 0x37e   : > { %3347 = vmatmul.mubr.msk.bf16.vlgmr.msra.gmra.mrb[32].mxu1 %vm752_vm0, %v1166_v55 }
 0x37f   : > { %3350 = vmatprep.mubr.msk.bf16.mxu1 %vm752_vm0, %v1168_v33  ;;  %3367 = vmatpush3.bf16.msra.mxu0 %v1481_v53  ;;  %v4779_v33 = vpop.permute.xlu0 %1653 }
 0x380   : > { %3368 = vmatprep.subr.bf16.mxu0 %v1483_v19 }
 0x381   : > { %v1485_v20 = vpop.permute.xlu1 %1484 }
 0x383   : > { %3369 = vmatpush3.bf16.msra.mxu0 %v1483_v19 }
 0x384   : > { %3370 = vmatprep.subr.bf16.mxu0 %v1485_v20 }
 0x385   : > { %v1487_v9 = vpop.permute.xlu1 %1486 }
 0x386   : > { %3351 = vmatmul.mubr.msk.bf16.gmra.mrb[36].mxu1 %vm752_vm0, %v1170_v28 }
 0x387   : > { %3354 = vmatprep.mubr.msk.bf16.mxu1 %vm752_vm0, %v1172_v0  ;;  %3371 = vmatpush3.bf16.msra.mxu0 %v1485_v20 }
 0x388   : > { %3372 = vmatprep.subr.bf16.mxu0 %v1487_v9 }
 0x389   : > { %v1491_v54 = vpop.permute.xlu1 %1490 }
 0x38b   : > { %3373 = vmatpush3.bf16.msra.mxu0 %v1487_v9 }
 0x38c   : > { %3374 = vmatprep.subr.bf16.mxu0 %v1489_v56 }
 0x38e   : > { %3355 = vmatmul.mubr.msk.bf16.gmra.mrb[40].mxu1 %vm752_vm0, %v1174_v6 }
 0x38f   : > { %3358 = vmatprep.mubr.msk.bf16.mxu1 %vm752_vm0, %v1176_v41  ;;  %3375 = vmatpush3.bf16.msra.mxu0 %v1489_v56 }
 0x390   : > { %3376 = vmatprep.subr.bf16.mxu0 %v1491_v54 }
 0x393   : > { %3377 = vmatpush3.bf16.msra.mxu0 %v1491_v54 }
 0x394   : > { %3586 = vmatprep.subr.msk.bf16.mxu0 %vm752_vm0, %v4779_v33 }
 0x396   : > { %3359 = vmatmul.mubr.msk.bf16.gmra.mrb[44].mxu1 %vm752_vm0, %v1178_v31 }
 0x3f7   : > { %v4784_v14 = vpop.f32.mrb[16].mxu1 }
 0x3f8   : > { %5795 = vst [vmem:[#allocation22_spill] sm:$0xff] %v4784_v14  ;;  %v4786_v25 = vpop.f32.mrb[17].mxu1 }
 0x3f9   : > { %5796 = vst [vmem:[#allocation23_spill] sm:$0xff] %v4786_v25  ;;  %v4788_v51 = vpop.f32.mrb[18].mxu1 }
 0x3fa   : > { %5797 = vst [vmem:[#allocation24_spill] sm:$0xff] %v4788_v51  ;;  %v4790_v0 = vpop.f32.mrb[19].mxu1 }
 0x3fb   : > { %5798 = vst [vmem:[#allocation25_spill] sm:$0xff] %v4790_v0 }
 0x433   : > { %v4792_v26 = vpop.f32.mrb[20].mxu1 }
 0x434   : > { %5799 = vst [vmem:[#allocation26_spill] sm:$0xff] %v4792_v26  ;;  %v4794_v55 = vpop.f32.mrb[21].mxu1 }
 0x435   : > { %5800 = vst [vmem:[#allocation27_spill] sm:$0xff] %v4794_v55  ;;  %v4796_v41 = vpop.f32.mrb[22].mxu1 }
 0x436   : > { %5801 = vst [vmem:[#allocation28_spill] sm:$0xff] %v4796_v41  ;;  %v4798_v28 = vpop.f32.mrb[23].mxu1 }
 0x437   : > { %5802 = vst [vmem:[#allocation29_spill] sm:$0xff] %v4798_v28 }
 0x43b   : > { %v4800_v34 = vpop.f32.mrb[24].mxu1 }
 0x43c   : > { %5803 = vst [vmem:[#allocation30_spill] sm:$0xff] %v4800_v34  ;;  %v4802_v44 = vpop.f32.mrb[25].mxu1 }
 0x43d   : > { %5804 = vst [vmem:[#allocation31_spill] sm:$0xff] %v4802_v44  ;;  %v4804_v6 = vpop.f32.mrb[26].mxu1 }
 0x43e   : > { %5805 = vst [vmem:[#allocation32_spill] sm:$0xff] %v4804_v6  ;;  %v4806_v11 = vpop.f32.mrb[27].mxu1 }
 0x43f   : > { %5806 = vst [vmem:[#allocation33_spill] sm:$0xff] %v4806_v11 }
 0x447   : > { %v4808_v12 = vpop.f32.mrb[28].mxu1 }
 0x448   : > { %5807 = vst [vmem:[#allocation34_spill] sm:$0xff] %v4808_v12  ;;  %v4810_v31 = vpop.f32.mrb[29].mxu1 }
 0x449   : > { %5808 = vst [vmem:[#allocation35_spill] sm:$0xff] %v4810_v31  ;;  %v4812_v15 = vpop.f32.mrb[30].mxu1 }
 0x44a   : > { %5809 = vst [vmem:[#allocation36_spill] sm:$0xff] %v4812_v15  ;;  %v4814_v17 = vpop.f32.mrb[31].mxu1 }
 0x44b   : > { %5810 = vst [vmem:[#allocation37_spill] sm:$0xff] %v4814_v17 }
 0x451   : > { %v3348_v53 = vpop.f32.mrb[32].mxu1 }
 0x452   : > { %v4817_v19 = vadd.f32 %v3348_v53, %v4576_v5  ;;  %v1285_v20 = vpop.f32.mrb[33].mxu1 }
 0x453   : > { %v3349_v9 = vpop.f32.mrb[34].mxu1  ;;  %v4824_v12 = vadd.f32 %v1285_v20, %v4576_v5 }
 0x454   : > { %1352 = vmax.xlane.f32.xlu0 %v4817_v19  ;;  %v1288_v56 = vpop.f32.mrb[35].mxu1  ;;  %v4829_v41 = vadd.f32 %v3349_v9, %v4576_v5 }
 0x455   : > { %v4821_v54 = vadd.f32 %v1288_v56, %v4576_v5 }
 0x457   : > { %1350 = vmax.xlane.f32.xlu1 %v4821_v54 }
 0x458   : > { %1348 = vmax.xlane.f32.xlu0 %v4824_v12 }
 0x459   : > { %v3352_v26 = vpop.f32.mrb[36].mxu1 }
 0x45a   : > { %v4832_v53 = vadd.f32 %v3352_v26, %v4576_v5  ;;  %v1301_v31 = vpop.f32.mrb[37].mxu1 }
 0x45b   : > { %v3353_v55 = vpop.f32.mrb[38].mxu1  ;;  %v4840_v15 = vadd.f32 %v1301_v31, %v4576_v5 }
 0x45c   : > { %1354 = vmax.xlane.f32.xlu0 %v4829_v41  ;;  %1360 = vmax.xlane.f32.xlu1 %v4832_v53  ;;  %v1304_v56 = vpop.f32.mrb[39].mxu1  ;;  %v4845_v26 = vadd.f32 %v3353_v55, %v4576_v5 }
 0x45d   : > { %v4837_v20 = vadd.f32 %v1304_v56, %v4576_v5 }
 0x460   : > { %1358 = vmax.xlane.f32.xlu0 %v4837_v20  ;;  %1356 = vmax.xlane.f32.xlu1 %v4840_v15 }
 0x461   : > { %v3356_v9 = vpop.f32.mrb[40].mxu1 }
 0x462   : > { %v4848_v17 = vadd.f32 %v3356_v9, %v4576_v5  ;;  %v1317_v28 = vpop.f32.mrb[41].mxu1 }
 0x463   : > { %v3357_v6 = vpop.f32.mrb[42].mxu1  ;;  %v4853_v31 = vadd.f32 %v1317_v28, %v4576_v5 }
 0x464   : > { %1362 = vmax.xlane.f32.xlu1 %v4845_v26  ;;  %1368 = vmax.xlane.f32.xlu0 %v4848_v17  ;;  %v1320_v56 = vpop.f32.mrb[43].mxu1  ;;  %v4857_v11 = vadd.f32 %v3357_v6, %v4576_v5 }
 0x465   : > { %v4865_v14 = vadd.f32 %v1320_v56, %v4576_v5 }
 0x468   : > { %1364 = vmax.xlane.f32.xlu1 %v4853_v31 }
 0x469   : > { %v3360_v51 = vpop.f32.mrb[44].mxu1 }
 0x46a   : > { %v1333_v55 = vpop.f32.mrb[45].mxu1  ;;  %v4869_v28 = vadd.f32 %v3360_v51, %v4576_v5 }
 0x46b   : > { %v4860_v9 = vadd.f32 %v1333_v55, %v4576_v5  ;;  %v3361_v0 = vpop.f32.mrb[46].mxu1 }
 0x46c   : > { %1370 = vmax.xlane.f32.xlu1 %v4857_v11  ;;  %v1336_v34 = vpop.f32.mrb[47].mxu1  ;;  %v4873_v6 = vadd.f32 %v3361_v0, %v4576_v5 }
 0x46d   : > { %1372 = vmax.xlane.f32.xlu0 %v4860_v9  ;;  %v4891_v51 = vadd.f32 %v1336_v34, %v4576_v5  ;;  %v4928_v34 = vpop.permute.xlu1 %1657 }
 0x470   : > { %1366 = vmax.xlane.f32.xlu1 %v4865_v14 }
 0x474   : > { %1376 = vmax.xlane.f32.xlu1 %v4869_v28 }
 0x478   : > { %1378 = vmax.xlane.f32.xlu1 %v4873_v6 }
 0x483   : > { %1663 = vrot.lane.b32.xlu0 %v4517_v27, %s4152_s13 }
 0x489   : > { %1661 = vrot.lane.b32.xlu1 %v4493_v2, %s4152_s13 }
 0x48d   : > { %1639 = vrot.lane.b32.xlu1 %v4423_v60, %s4152_s13 }
 0x491   : > { %1643 = vrot.lane.b32.xlu1 %v4466_v35, %s4152_s13 }
 0x495   : > { %1647 = vrot.lane.b32.xlu1 %v4514_v24, %s4152_s13 }
 0x499   : > { %1651 = vrot.lane.b32.xlu1 %v4549_v59, %s4152_s13 }
 0x49d   : > { %1936 = vrot.lane.b32.xlu1 %v4447_v18, %s4152_s13 }
 0x4a1   : > { %1940 = vrot.lane.b32.xlu1 %v4472_v42, %s4152_s13 }
 0x4a2   : > { %1374 = vmax.xlane.f32.xlu0 %v4891_v51 }
 0x4a5   : > { %1942 = vrot.lane.b32.xlu1 %v4503_v7, %s4152_s13 }
 0x4a9   : > { %1944 = vrot.lane.b32.xlu1 %v4496_v4, %s4152_s13 }
 0x4ad   : > { %1948 = vrot.lane.b32.xlu1 %v4520_v29, %s4152_s13 }
 0x4b1   : > { %2115 = vrot.lane.b32.xlu1 %v4444_v16, %s4153_s10  ;;  %v4920_v16 = vpop.permute.xlu0 %1655 }
 0x4b5   : > { %v4926_v0 = vpop.permute.xlu0 %1659 }
 0x4b8   : > { %1665 = vrot.lane.b32.xlu0 %v4538_v47, %s4152_s13 }
 0x4bc   : > { %1667 = vrot.lane.b32.xlu0 %v4551_v63, %s4152_s13 }
 0x4c0   : > { %1637 = vrot.lane.b32.xlu0 %v4407_v48, %s4152_s13 }
 0x4c4   : > { %1641 = vrot.lane.b32.xlu0 %v4441_v13, %s4152_s13 }
 0x4c8   : > { %1645 = vrot.lane.b32.xlu0 %v4490_v62, %s4152_s13 }
 0x4cc   : > { %1649 = vrot.lane.b32.xlu0 %v4536_v46, %s4152_s13 }
 0x4d0   : > { %1934 = vrot.lane.b32.xlu0 %v4455_v21, %s4152_s13 }
 0x4d4   : > { %1938 = vrot.lane.b32.xlu0 %v4479_v45, %s4152_s13 }
 0x4d8   : > { %1946 = vrot.lane.b32.xlu0 %v4527_v32, %s4152_s13 }
 0x4dc   : > { %2111 = vrot.lane.b32.xlu0 %v4409_v49, %s4153_s10 }
 0x4e0   : > { %2113 = vrot.lane.b32.xlu0 %v4425_v61, %s4153_s10 }
 0x4e1   : > { %v1353_v56 = vpop.xlane.xlu0 %1352 }
 0x4e2   : > { %v1382_v3 = vsub.f32 %v4817_v19, %v1353_v56 }
 0x4e4   : > { %v1351_v55 = vpop.xlane.xlu1 %1350  ;;  %2117 = vrot.lane.b32.xlu0 %v4469_v39, %s4153_s10  ;;  %v1400_v58 = vmul.f32 1.442695, %v1382_v3 }
 0x4e5   : > { %v1381_v44 = vsub.f32 %v4821_v54, %v1351_v55  ;;  %v1349_v25 = vpop.xlane.xlu0 %1348 }
 0x4e6   : > { %v1380_v38 = vsub.f32 %v4824_v12, %v1349_v25 }
 0x4e7   : > { %v1398_v49 = vmul.f32 1.442695, %v1381_v44 }
 0x4e8   : > { %v1396_v30 = vmul.f32 1.442695, %v1380_v38 }
 0x4e9   : > { %3760 = vpow2.f32 %v1398_v49  ;;  %v1361_v43 = vpop.xlane.xlu1 %1360  ;;  %v1355_v40 = vpop.xlane.xlu0 %1354 }
 0x4ea   : > { %3762 = vpow2.f32 %v1396_v30  ;;  %v1383_v61 = vsub.f32 %v4829_v41, %v1355_v40  ;;  %v1386_v50 = vsub.f32 %v4832_v53, %v1361_v43 }
 0x4eb   : > { %3764 = vpow2.f32 %v1400_v58 }
 0x4ec   : > { %v1402_v52 = vmul.f32 1.442695, %v1383_v61  ;;  %v1408_v44 = vmul.f32 1.442695, %v1386_v50  ;;  %v1694_v61 = vsel %vm752_vm0, %v4779_v33, 0 }
 0x4ed   : > { %v1357_v39 = vpop.xlane.xlu1 %1356  ;;  %v1359_v37 = vpop.xlane.xlu0 %1358 }
 0x4ee   : > { %v1384_v54 = vsub.f32 %v4840_v15, %v1357_v39  ;;  %v1385_v19 = vsub.f32 %v4837_v20, %v1359_v37  ;;  %3766 = vpow2.f32 %v1402_v52 }
 0x4f0   : > { %v1404_v25 = vmul.f32 1.442695, %v1384_v54  ;;  %v1406_v38 = vmul.f32 1.442695, %v1385_v19 }
 0x4f1   : > { %v1363_v12 = vpop.xlane.xlu1 %1362  ;;  %v1369_v50 = vpop.xlane.xlu0 %1368 }
 0x4f2   : > { %3768 = vpow2.f32 %v1404_v25  ;;  %v1387_v30 = vsub.f32 %v4845_v26, %v1363_v12  ;;  %v1390_v56 = vsub.f32 %v4848_v17, %v1369_v50 }
 0x4f3   : > { %v4942_v3 = vpop.eup %3760  ;;  %3770 = vpow2.f32 %v1406_v38 }
 0x4f4   : > { %v4944_v40 = vpop.eup %3762  ;;  %v1410_v43 = vmul.f32 1.442695, %v1387_v30  ;;  %3772 = vpow2.f32 %v1408_v44  ;;  %v1416_v25 = vmul.f32 1.442695, %v1390_v56 }
 0x4f5   : > { %v1365_v58 = vpop.xlane.xlu1 %1364  ;;  %v1460_v41 = vpack.c.bf16 %v4942_v3, %v4944_v40  ;;  %v4948_v37 = vpop.eup %3764 }
 0x4f6   : > { %3774 = vpow2.f32 %v1410_v43  ;;  %v1388_v52 = vsub.f32 %v4853_v31, %v1365_v58 }
 0x4f7   : > { %3378 = vmatprep.mubr.bf16.mxu0 %v1460_v41  ;;  %v1700_v41 = vsel %vm752_vm0, %v4928_v34, 0 }
 0x4f8   : > { %v4951_v15 = vpop.eup %3766  ;;  %v1412_v49 = vmul.f32 1.442695, %v1388_v52 }
 0x4f9   : > { %v1371_v53 = vpop.xlane.xlu1 %1370  ;;  %v1461_v26 = vpack.c.bf16 %v4951_v15, %v4948_v37 }
 0x4fa   : > { %v1391_v20 = vsub.f32 %v4857_v11, %v1371_v53  ;;  %3776 = vpow2.f32 %v1412_v49 }
 0x4fb   : > { %3379 = vmatmul.mubr.bf16.vlgmr.msra.gmra.mrb[48].mxu0 %v1461_v26 }
 0x4fc   : > { %v4957_v55 = vpop.eup %3768  ;;  %v1418_v31 = vmul.f32 1.442695, %v1391_v20  ;;  %3395 = vmatpush3.bf16.xpose.msra.mxu0 %v1694_v61  ;;  %v1703_v20 = vsel %vm752_vm0, %v4926_v0, 0 }
 0x4fd   : > { %v4961_v39 = vpop.eup %3770  ;;  %v1367_v54 = vpop.xlane.xlu1 %1366  ;;  %3587 = vmatprep.subr.msk.bf16.mxu0 %vm752_vm0, %v4920_v16 }
 0x4fe   : > { %v1389_v11 = vsub.f32 %v4865_v14, %v1367_v54  ;;  %v1462_v17 = vpack.c.bf16 %v4961_v39, %v4957_v55  ;;  %v4968_v19 = vpop.eup %3772  ;;  %3778 = vpow2.f32 %v1418_v31  ;;  %v1697_v14 = vsel %vm752_vm0, %v4920_v16, 0 }
 0x500   : > { %v4970_v38 = vpop.eup %3774  ;;  %v1414_v33 = vmul.f32 1.442695, %v1389_v11  ;;  %3382 = vmatprep.mubr.bf16.mxu0 %v1462_v17 }
 0x501   : > { %v1463_v44 = vpack.c.bf16 %v4970_v38, %v4968_v19  ;;  %v1377_v12 = vpop.xlane.xlu1 %1376 }
 0x502   : > { %3780 = vpow2.f32 %v1414_v33 }
 0x503   : > { %3782 = vpow2.f32 %v1416_v25  ;;  %3383 = vmatmul.mubr.bf16.gmra.mrb[52].mxu0 %v1463_v44 }
 0x504   : > { %3397 = vmatpush3.bf16.xpose.msra.mxu0 %v1697_v14  ;;  %v4978_v30 = vpop.eup %3776 }
 0x505   : > { %3588 = vmatprep.subr.msk.bf16.mxu0 %vm752_vm0, %v4928_v34  ;;  %v1379_v53 = vpop.xlane.xlu1 %1378  ;;  %v1373_v34 = vpop.xlane.xlu0 %1372 }
 0x506   : > { %v1392_v31 = vsub.f32 %v4860_v9, %v1373_v34  ;;  %v1395_v54 = vsub.f32 %v4873_v6, %v1379_v53 }
 0x508   : > { %v4980_v43 = vpop.eup %3778  ;;  %v1420_v11 = vmul.f32 1.442695, %v1392_v31  ;;  %v1426_v17 = vmul.f32 1.442695, %v1395_v54 }
 0x509   : > { %v1662_v26 = vpop.permute.xlu1 %1661  ;;  %v1664_v49 = vpop.permute.xlu0 %1663 }
 0x50a   : > { %v1706_v56 = vsel %vm752_vm0, %v1662_v26, 0  ;;  %v1709_v61 = vsel %vm752_vm0, %v1664_v49, 0  ;;  %3784 = vpow2.f32 %v1420_v11 }
 0x50b   : > { %3786 = vpow2.f32 %v1426_v17 }
 0x50c   : > { %v4982_v58 = vpop.eup %3780  ;;  %3399 = vmatpush3.bf16.xpose.msra.mxu0 %v1700_v41 }
 0x50d   : > { %v4986_v50 = vpop.eup %3782  ;;  %v1464_v16 = vpack.c.bf16 %v4982_v58, %v4978_v30  ;;  %3589 = vmatprep.subr.msk.bf16.mxu0 %vm752_vm0, %v4926_v0  ;;  %v1394_v0 = vsub.f32 %v4869_v28, %v1377_v12  ;;  %v1640_v41 = vpop.permute.xlu1 %1639 }
 0x50e   : > { %v1465_v52 = vpack.c.bf16 %v4980_v43, %v4986_v50 }
 0x50f   : > { %3386 = vmatprep.mubr.bf16.mxu0 %v1464_v16  ;;  %v1424_v44 = vmul.f32 1.442695, %v1394_v0 }
 0x510   : > { %3387 = vmatmul.mubr.bf16.gmra.mrb[56].mxu0 %v1465_v52 }
 0x511   : > { %v1644_v28 = vpop.permute.xlu1 %1643 }
 0x514   : > { %3401 = vmatpush3.bf16.xpose.msra.mxu0 %v1703_v20  ;;  %v5007_v52 = vpop.eup %3784 }
 0x515   : > { %3590 = vmatprep.subr.msk.bf16.mxu0 %vm752_vm0, %v1662_v26  ;;  %v5010_v53 = vpop.eup %3786  ;;  %v1648_v34 = vpop.permute.xlu1 %1647 }
 0x519   : > { %v1652_v54 = vpop.permute.xlu1 %1651 }
 0x51c   : > { %3403 = vmatpush3.bf16.xpose.msra.mxu0 %v1706_v56 }
 0x51d   : > { %3591 = vmatprep.subr.msk.bf16.mxu0 %vm752_vm0, %v1664_v49  ;;  %v1937_v11 = vpop.permute.xlu1 %1936 }
 0x524   : > { %3405 = vmatpush3.bf16.xpose.msra.mxu0 %v1709_v61 }
 0x52f   : > { %v1375_v25 = vpop.xlane.xlu0 %1374 }
 0x530   : > { %v1393_v33 = vsub.f32 %v4891_v51, %v1375_v25  ;;  %v1941_v25 = vpop.permute.xlu1 %1940 }
 0x532   : > { %v1422_v14 = vmul.f32 1.442695, %v1393_v33 }
 0x533   : > { %v1666_v16 = vpop.permute.xlu0 %1665 }
 0x534   : > { %3788 = vpow2.f32 %v1422_v14  ;;  %3592 = vmatprep.subr.msk.bf16.mxu0 %vm752_vm0, %v1666_v16  ;;  %v1712_v9 = vsel %vm752_vm0, %v1666_v16, 0 }
 0x535   : > { %3790 = vpow2.f32 %v1424_v44  ;;  %3407 = vmatpush3.bf16.xpose.msra.mxu0 %v1712_v9  ;;  %v1943_v44 = vpop.permute.xlu1 %1942 }
 0x537   : > { %v1668_v6 = vpop.permute.xlu0 %1667 }
 0x538   : > { %3593 = vmatprep.subr.msk.bf16.mxu0 %vm752_vm0, %v1668_v6  ;;  %v1715_v51 = vsel %vm752_vm0, %v1668_v6, 0 }
 0x539   : > { %v1945_v14 = vpop.permute.xlu1 %1944 }
 0x53b   : > { %v1638_v12 = vpop.permute.xlu0 %1637 }
 0x53d   : > { %3409 = vmatpush3.bf16.xpose.msra.mxu0 %v1715_v51  ;;  %v1949_v16 = vpop.permute.xlu1 %1948 }
 0x53e   : > { %v5012_v20 = vpop.eup %3788 }
 0x53f   : > { %v5014_v26 = vpop.eup %3790  ;;  %v1642_v56 = vpop.permute.xlu0 %1641  ;;  %v1466_v49 = vpack.c.bf16 %v5012_v20, %v5007_v52 }
 0x540   : > { %v1467_v61 = vpack.c.bf16 %v5010_v53, %v5014_v26 }
 0x541   : > { %3390 = vmatprep.mubr.bf16.mxu0 %v1466_v49 }
 0x542   : > { %3391 = vmatmul.mubr.bf16.gmra.mrb[60].mxu0 %v1467_v61 }
 0x543   : > { %3410 = vmatprep.mubr.msk.bf16.mxu0 %vm752_vm0, %v1638_v12  ;;  %v1646_v31 = vpop.permute.xlu0 %1645 }
 0x547   : > { %v1650_v0 = vpop.permute.xlu0 %1649 }
 0x54a   : > { %3411 = vmatmul.mubr.msk.bf16.vlgmr.msra.gmra.mrb[64].mxu0 %vm752_vm0, %v1640_v41 }
 0x54b   : > { %3414 = vmatprep.mubr.msk.bf16.mxu0 %vm752_vm0, %v1642_v56  ;;  %v1935_v17 = vpop.permute.xlu0 %1934 }
 0x54c   : > { %3426 = vmatprep.subr.bf16.mxu1 %v1935_v17 }
 0x54d   : > { %3427 = vmatpush3.bf16.msra.mxu1 %v1935_v17 }
 0x54e   : > { %3428 = vmatprep.subr.bf16.mxu1 %v1937_v11 }
 0x54f   : > { %v1939_v33 = vpop.permute.xlu0 %1938 }
 0x551   : > { %3429 = vmatpush3.bf16.msra.mxu1 %v1937_v11 }
 0x552   : > { %3415 = vmatmul.mubr.msk.bf16.gmra.mrb[68].mxu0 %vm752_vm0, %v1644_v28  ;;  %3430 = vmatprep.subr.bf16.mxu1 %v1939_v33 }
 0x553   : > { %3418 = vmatprep.mubr.msk.bf16.mxu0 %vm752_vm0, %v1646_v31  ;;  %v1947_v41 = vpop.permute.xlu0 %1946 }
 0x555   : > { %3431 = vmatpush3.bf16.msra.mxu1 %v1939_v33 }
 0x556   : > { %3432 = vmatprep.subr.bf16.mxu1 %v1941_v25 }
 0x557   : > { %v5028_v9 = vpop.permute.xlu0 %2111 }
 0x559   : > { %3433 = vmatpush3.bf16.msra.mxu1 %v1941_v25 }
 0x55a   : > { %3419 = vmatmul.mubr.msk.bf16.gmra.mrb[72].mxu0 %vm752_vm0, %v1648_v34  ;;  %3434 = vmatprep.subr.bf16.mxu1 %v1943_v44 }
 0x55b   : > { %3422 = vmatprep.mubr.msk.bf16.mxu0 %vm752_vm0, %v1650_v0 }
 0x55d   : > { %3435 = vmatpush3.bf16.msra.mxu1 %v1943_v44 }
 0x55e   : > { %3436 = vmatprep.subr.bf16.mxu1 %v1945_v14 }
 0x561   : > { %3437 = vmatpush3.bf16.msra.mxu1 %v1945_v14 }
 0x562   : > { %3423 = vmatmul.mubr.msk.bf16.gmra.mrb[76].mxu0 %vm752_vm0, %v1652_v54  ;;  %3438 = vmatprep.subr.bf16.mxu1 %v1947_v41 }
 0x565   : > { %3439 = vmatpush3.bf16.msra.mxu1 %v1947_v41 }
 0x566   : > { %3440 = vmatprep.subr.bf16.mxu1 %v1949_v16 }
 0x569   : > { %3441 = vmatpush3.bf16.msra.mxu1 %v1949_v16 }
 0x56a   : > { %3594 = vmatprep.subr.msk.bf16.mxu1 %vm752_vm0, %v5028_v9 }
 0x5ce   : > { %v5032_v6 = vpop.f32.mrb[48].mxu0 }
 0x5cf   : > { %5811 = vst [vmem:[#allocation38_spill] sm:$0xff] %v5032_v6  ;;  %v5034_v28 = vpop.f32.mrb[49].mxu0 }
 0x5d0   : > { %5812 = vst [vmem:[#allocation39_spill] sm:$0xff] %v5034_v28  ;;  %v5036_v12 = vpop.f32.mrb[50].mxu0 }
 0x5d1   : > { %5813 = vst [vmem:[#allocation40_spill] sm:$0xff] %v5036_v12  ;;  %v5038_v51 = vpop.f32.mrb[51].mxu0 }
 0x5d2   : > { %5814 = vst [vmem:[#allocation41_spill] sm:$0xff] %v5038_v51 }
 0x5d6   : > { %v5040_v34 = vpop.f32.mrb[52].mxu0 }
 0x5d7   : > { %5815 = vst [vmem:[#allocation42_spill] sm:$0xff] %v5040_v34  ;;  %v5042_v56 = vpop.f32.mrb[53].mxu0 }
 0x5d8   : > { %5816 = vst [vmem:[#allocation43_spill] sm:$0xff] %v5042_v56  ;;  %v5044_v49 = vpop.f32.mrb[54].mxu0 }
 0x5d9   : > { %5817 = vst [vmem:[#allocation44_spill] sm:$0xff] %v5044_v49  ;;  %v5046_v61 = vpop.f32.mrb[55].mxu0 }
 0x5da   : > { %5818 = vst [vmem:[#allocation45_spill] sm:$0xff] %v5046_v61 }
 0x5e3   : > { %v5048_v31 = vpop.f32.mrb[56].mxu0 }
 0x5e4   : > { %5819 = vst [vmem:[#allocation46_spill] sm:$0xff] %v5048_v31  ;;  %v5050_v54 = vpop.f32.mrb[57].mxu0 }
 0x5e5   : > { %5820 = vst [vmem:[#allocation47_spill] sm:$0xff] %v5050_v54  ;;  %v5052_v0 = vpop.f32.mrb[58].mxu0 }
 0x5e6   : > { %5821 = vst [vmem:[#allocation48_spill] sm:$0xff] %v5052_v0  ;;  %v5054_v11 = vpop.f32.mrb[59].mxu0 }
 0x5e7   : > { %5822 = vst [vmem:[#allocation49_spill] sm:$0xff] %v5054_v11 }
 0x615   : > { %v5056_v17 = vpop.f32.mrb[60].mxu0 }
 0x616   : > { %5823 = vst [vmem:[#allocation50_spill] sm:$0xff] %v5056_v17  ;;  %v5058_v25 = vpop.f32.mrb[61].mxu0 }
 0x617   : > { %5824 = vst [vmem:[#allocation51_spill] sm:$0xff] %v5058_v25  ;;  %v5060_v33 = vpop.f32.mrb[62].mxu0 }
 0x618   : > { %5825 = vst [vmem:[#allocation52_spill] sm:$0xff] %v5060_v33  ;;  %v5062_v44 = vpop.f32.mrb[63].mxu0 }
 0x619   : > { %5826 = vst [vmem:[#allocation53_spill] sm:$0xff] %v5062_v44 }
 0x61d   : > { %v3412_v14 = vpop.f32.mrb[64].mxu0 }
 0x61e   : > { %v5065_v41 = vadd.f32 %v3412_v14, %v4576_v5  ;;  %v1751_v16 = vpop.f32.mrb[65].mxu0 }
 0x61f   : > { %v3413_v49 = vpop.f32.mrb[66].mxu0  ;;  %v5072_v17 = vadd.f32 %v1751_v16, %v4576_v5 }
 0x620   : > { %1818 = vmax.xlane.f32.xlu0 %v5065_v41  ;;  %v1754_v34 = vpop.f32.mrb[67].mxu0  ;;  %v5077_v44 = vadd.f32 %v3413_v49, %v4576_v5 }
 0x621   : > { %v5069_v61 = vadd.f32 %v1754_v34, %v4576_v5 }
 0x623   : > { %1816 = vmax.xlane.f32.xlu1 %v5069_v61 }
 0x624   : > { %1814 = vmax.xlane.f32.xlu0 %v5072_v17 }
 0x625   : > { %v3416_v33 = vpop.f32.mrb[68].mxu0 }
 0x626   : > { %v5080_v14 = vadd.f32 %v3416_v33, %v4576_v5  ;;  %v1767_v25 = vpop.f32.mrb[69].mxu0 }
 0x627   : > { %v3417_v56 = vpop.f32.mrb[70].mxu0  ;;  %v5088_v0 = vadd.f32 %v1767_v25, %v4576_v5 }
 0x628   : > { %1820 = vmax.xlane.f32.xlu0 %v5077_v44  ;;  %1826 = vmax.xlane.f32.xlu1 %v5080_v14  ;;  %v1770_v34 = vpop.f32.mrb[71].mxu0  ;;  %v5093_v33 = vadd.f32 %v3417_v56, %v4576_v5 }
 0x629   : > { %v5085_v16 = vadd.f32 %v1770_v34, %v4576_v5 }
 0x62c   : > { %1824 = vmax.xlane.f32.xlu0 %v5085_v16  ;;  %1822 = vmax.xlane.f32.xlu1 %v5088_v0 }
 0x62d   : > { %v3420_v49 = vpop.f32.mrb[72].mxu0 }
 0x62e   : > { %v5096_v31 = vadd.f32 %v3420_v49, %v4576_v5  ;;  %v1783_v12 = vpop.f32.mrb[73].mxu0 }
 0x62f   : > { %v3421_v6 = vpop.f32.mrb[74].mxu0  ;;  %v5101_v25 = vadd.f32 %v1783_v12, %v4576_v5 }
 0x630   : > { %1828 = vmax.xlane.f32.xlu1 %v5093_v33  ;;  %1834 = vmax.xlane.f32.xlu0 %v5096_v31  ;;  %v1786_v34 = vpop.f32.mrb[75].mxu0  ;;  %v5105_v54 = vadd.f32 %v3421_v6, %v4576_v5 }
 0x631   : > { %v5113_v23 = vadd.f32 %v1786_v34, %v4576_v5 }
 0x634   : > { %1830 = vmax.xlane.f32.xlu1 %v5101_v25 }
 0x635   : > { %v3424_v11 = vpop.f32.mrb[76].mxu0 }
 0x636   : > { %v1799_v56 = vpop.f32.mrb[77].mxu0  ;;  %v5117_v12 = vadd.f32 %v3424_v11, %v4576_v5 }
 0x637   : > { %v5108_v49 = vadd.f32 %v1799_v56, %v4576_v5  ;;  %v3425_v51 = vpop.f32.mrb[78].mxu0 }
 0x638   : > { %1836 = vmax.xlane.f32.xlu1 %v5105_v54  ;;  %v1802_v28 = vpop.f32.mrb[79].mxu0  ;;  %v5121_v6 = vadd.f32 %v3425_v51, %v4576_v5 }
 0x639   : > { %1838 = vmax.xlane.f32.xlu0 %v5108_v49 }
 0x63c   : > { %1832 = vmax.xlane.f32.xlu1 %v5113_v23 }
 0x640   : > { %1842 = vmax.xlane.f32.xlu1 %v5117_v12 }
 0x644   : > { %1844 = vmax.xlane.f32.xlu1 %v5121_v6 }
 0x64f   : > { %2121 = vrot.lane.b32.xlu0 %v4517_v27, %s4153_s10  ;;  %v5139_v27 = vadd.f32 %v1802_v28, %v4576_v5 }
 0x655   : > { %2119 = vrot.lane.b32.xlu1 %v4493_v2, %s4153_s10 }
 0x659   : > { %2097 = vrot.lane.b32.xlu1 %v4423_v60, %s4153_s10  ;;  %v5160_v60 = vpop.permute.xlu0 %2113 }
 0x65d   : > { %2101 = vrot.lane.b32.xlu1 %v4466_v35, %s4153_s10 }
 0x661   : > { %2105 = vrot.lane.b32.xlu1 %v4514_v24, %s4153_s10 }
 0x665   : > { %2109 = vrot.lane.b32.xlu1 %v4549_v59, %s4153_s10 }
 0x669   : > { %2394 = vrot.lane.b32.xlu1 %v4447_v18, %s4153_s10 }
 0x66d   : > { %2400 = vrot.lane.b32.xlu1 %v4503_v7, %s4153_s10 }
 0x66e   : > { %1840 = vmax.xlane.f32.xlu0 %v5139_v27 }
 0x684   : > { %2123 = vrot.lane.b32.xlu0 %v4538_v47, %s4153_s10 }
 0x688   : > { %2125 = vrot.lane.b32.xlu0 %v4551_v63, %s4153_s10 }
 0x68c   : > { %2095 = vrot.lane.b32.xlu0 %v4407_v48, %s4153_s10  ;;  %v5166_v48 = vpop.permute.xlu0 %2117 }
 0x690   : > { %2099 = vrot.lane.b32.xlu0 %v4441_v13, %s4153_s10  ;;  %v5168_v13 = vpop.permute.xlu1 %2115 }
 0x694   : > { %2103 = vrot.lane.b32.xlu0 %v4490_v62, %s4153_s10 }
 0x698   : > { %2107 = vrot.lane.b32.xlu0 %v4536_v46, %s4153_s10 }
 0x69c   : > { %2392 = vrot.lane.b32.xlu0 %v4455_v21, %s4153_s10 }
 0x6a0   : > { %2396 = vrot.lane.b32.xlu0 %v4479_v45, %s4153_s10 }
 0x6a4   : > { %2398 = vrot.lane.b32.xlu0 %v4472_v42, %s4153_s10 }
 0x6a8   : > { %2402 = vrot.lane.b32.xlu0 %v4496_v4, %s4153_s10 }
 0x6ad   : > { %v1819_v18 = vpop.xlane.xlu0 %1818 }
 0x6ae   : > { %v1848_v2 = vsub.f32 %v5065_v41, %v1819_v18 }
 0x6b0   : > { %v1817_v35 = vpop.xlane.xlu1 %1816  ;;  %v1866_v47 = vmul.f32 1.442695, %v1848_v2 }
 0x6b1   : > { %v1847_v62 = vsub.f32 %v5069_v61, %v1817_v35  ;;  %v1815_v21 = vpop.xlane.xlu0 %1814 }
 0x6b2   : > { %v1846_v45 = vsub.f32 %v5072_v17, %v1815_v21 }
 0x6b3   : > { %v1864_v7 = vmul.f32 1.442695, %v1847_v62 }
 0x6b4   : > { %v1862_v24 = vmul.f32 1.442695, %v1846_v45 }
 0x6b5   : > { %3792 = vpow2.f32 %v1864_v7  ;;  %v1827_v42 = vpop.xlane.xlu1 %1826  ;;  %v1821_v46 = vpop.xlane.xlu0 %1820 }
 0x6b6   : > { %3794 = vpow2.f32 %v1862_v24  ;;  %v1849_v4 = vsub.f32 %v5077_v44, %v1821_v46  ;;  %v1852_v63 = vsub.f32 %v5080_v14, %v1827_v42 }
 0x6b7   : > { %3796 = vpow2.f32 %v1866_v47 }
 0x6b8   : > { %v1868_v59 = vmul.f32 1.442695, %v1849_v4  ;;  %v1874_v34 = vmul.f32 1.442695, %v1852_v63  ;;  %v2152_v4 = vsel %vm752_vm0, %v5028_v9, 0 }
 0x6b9   : > { %v1823_v28 = vpop.xlane.xlu1 %1822  ;;  %v1825_v51 = vpop.xlane.xlu0 %1824 }
 0x6ba   : > { %v1850_v61 = vsub.f32 %v5088_v0, %v1823_v28  ;;  %v1851_v11 = vsub.f32 %v5085_v16, %v1825_v51  ;;  %3798 = vpow2.f32 %v1868_v59 }
 0x6bc   : > { %v1870_v17 = vmul.f32 1.442695, %v1850_v61  ;;  %v1872_v41 = vmul.f32 1.442695, %v1851_v11 }
 0x6bd   : > { %v1829_v56 = vpop.xlane.xlu1 %1828  ;;  %v1835_v21 = vpop.xlane.xlu0 %1834 }
 0x6be   : > { %3800 = vpow2.f32 %v1870_v17  ;;  %v1853_v18 = vsub.f32 %v5093_v33, %v1829_v56  ;;  %v1856_v42 = vsub.f32 %v5096_v31, %v1835_v21  ;;  %v2161_v21 = vsel %vm752_vm0, %v5166_v48, 0 }
 0x6bf   : > { %v5178_v35 = vpop.eup %3792  ;;  %3802 = vpow2.f32 %v1872_v41 }
 0x6c0   : > { %v5180_v44 = vpop.eup %3794  ;;  %v1876_v14 = vmul.f32 1.442695, %v1853_v18  ;;  %3804 = vpow2.f32 %v1874_v34  ;;  %v1882_v51 = vmul.f32 1.442695, %v1856_v42  ;;  %v2158_v18 = vsel %vm752_vm0, %v5168_v13, 0 }
 0x6c1   : > { %v1831_v62 = vpop.xlane.xlu1 %1830  ;;  %v1926_v0 = vpack.c.bf16 %v5178_v35, %v5180_v44  ;;  %v5184_v16 = vpop.eup %3796 }
 0x6c2   : > { %3806 = vpow2.f32 %v1876_v14  ;;  %v1854_v2 = vsub.f32 %v5101_v25, %v1831_v62 }
 0x6c3   : > { %3442 = vmatprep.mubr.bf16.mxu1 %v1926_v0 }
 0x6c4   : > { %v5187_v45 = vpop.eup %3798  ;;  %v1878_v47 = vmul.f32 1.442695, %v1854_v2 }
 0x6c5   : > { %v1837_v33 = vpop.xlane.xlu1 %1836  ;;  %v1927_v24 = vpack.c.bf16 %v5187_v45, %v5184_v16 }
 0x6c6   : > { %v1857_v7 = vsub.f32 %v5105_v54, %v1837_v33  ;;  %3808 = vpow2.f32 %v1878_v47 }
 0x6c7   : > { %3443 = vmatmul.mubr.bf16.vlgmr.msra.gmra.mrb[48].mxu1 %v1927_v24 }
 0x6c8   : > { %v5193_v46 = vpop.eup %3800  ;;  %v1884_v25 = vmul.f32 1.442695, %v1857_v7  ;;  %3459 = vmatpush3.bf16.xpose.msra.mxu1 %v2152_v4 }
 0x6c9   : > { %v5197_v59 = vpop.eup %3802  ;;  %v1833_v63 = vpop.xlane.xlu1 %1832  ;;  %3595 = vmatprep.subr.msk.bf16.mxu1 %vm752_vm0, %v5160_v60 }
 0x6ca   : > { %v1855_v54 = vsub.f32 %v5113_v23, %v1833_v63  ;;  %v1928_v31 = vpack.c.bf16 %v5197_v59, %v5193_v46  ;;  %v5204_v28 = vpop.eup %3804  ;;  %3810 = vpow2.f32 %v1884_v25  ;;  %v2155_v23 = vsel %vm752_vm0, %v5160_v60, 0 }
 0x6cc   : > { %v5206_v61 = vpop.eup %3806  ;;  %v1880_v9 = vmul.f32 1.442695, %v1855_v54  ;;  %3446 = vmatprep.mubr.bf16.mxu1 %v1928_v31 }
 0x6cd   : > { %v1929_v11 = vpack.c.bf16 %v5206_v61, %v5204_v28  ;;  %v1843_v17 = vpop.xlane.xlu1 %1842 }
 0x6ce   : > { %3812 = vpow2.f32 %v1880_v9 }
 0x6cf   : > { %3814 = vpow2.f32 %v1882_v51  ;;  %3447 = vmatmul.mubr.bf16.gmra.mrb[52].mxu1 %v1929_v11 }
 0x6d0   : > { %3461 = vmatpush3.bf16.xpose.msra.mxu1 %v2155_v23  ;;  %v5214_v41 = vpop.eup %3808 }
 0x6d1   : > { %3596 = vmatprep.subr.msk.bf16.mxu1 %vm752_vm0, %v5168_v13  ;;  %v1845_v0 = vpop.xlane.xlu1 %1844  ;;  %v1839_v13 = vpop.xlane.xlu0 %1838 }
 0x6d2   : > { %v1858_v42 = vsub.f32 %v5108_v49, %v1839_v13  ;;  %v1861_v47 = vsub.f32 %v5121_v6, %v1845_v0 }
 0x6d4   : > { %v5216_v34 = vpop.eup %3810  ;;  %v1886_v4 = vmul.f32 1.442695, %v1858_v42  ;;  %v1892_v25 = vmul.f32 1.442695, %v1861_v47 }
 0x6d5   : > { %v2120_v2 = vpop.permute.xlu1 %2119  ;;  %v2122_v7 = vpop.permute.xlu0 %2121 }
 0x6d6   : > { %v2164_v33 = vsel %vm752_vm0, %v2120_v2, 0  ;;  %v2167_v24 = vsel %vm752_vm0, %v2122_v7, 0  ;;  %3816 = vpow2.f32 %v1886_v4 }
 0x6d7   : > { %3818 = vpow2.f32 %v1892_v25 }
 0x6d8   : > { %v5218_v56 = vpop.eup %3812  ;;  %3463 = vmatpush3.bf16.xpose.msra.mxu1 %v2158_v18 }
 0x6d9   : > { %v5222_v14 = vpop.eup %3814  ;;  %v1930_v60 = vpack.c.bf16 %v5218_v56, %v5214_v41  ;;  %3597 = vmatprep.subr.msk.bf16.mxu1 %vm752_vm0, %v5166_v48  ;;  %v1860_v48 = vsub.f32 %v5117_v12, %v1843_v17  ;;  %v2098_v49 = vpop.permute.xlu1 %2097 }
 0x6da   : > { %v1931_v62 = vpack.c.bf16 %v5216_v34, %v5222_v14 }
 0x6db   : > { %3450 = vmatprep.mubr.bf16.mxu1 %v1930_v60  ;;  %v1890_v31 = vmul.f32 1.442695, %v1860_v48 }
 0x6dc   : > { %3451 = vmatmul.mubr.bf16.gmra.mrb[56].mxu1 %v1931_v62 }
 0x6dd   : > { %v2102_v12 = vpop.permute.xlu1 %2101 }
 0x6e0   : > { %3465 = vmatpush3.bf16.xpose.msra.mxu1 %v2161_v21  ;;  %v5243_v17 = vpop.eup %3816 }
 0x6e1   : > { %3598 = vmatprep.subr.msk.bf16.mxu1 %vm752_vm0, %v2120_v2  ;;  %v5246_v18 = vpop.eup %3818  ;;  %v2106_v13 = vpop.permute.xlu1 %2105 }
 0x6e8   : > { %3467 = vmatpush3.bf16.xpose.msra.mxu1 %v2164_v33 }
 0x6e9   : > { %3599 = vmatprep.subr.msk.bf16.mxu1 %vm752_vm0, %v2122_v7  ;;  %v2110_v7 = vpop.permute.xlu1 %2109 }
 0x6ed   : > { %v2395_v47 = vpop.permute.xlu1 %2394 }
 0x6f0   : > { %3469 = vmatpush3.bf16.xpose.msra.mxu1 %v2167_v24 }
 0x6f1   : > { %v2401_v25 = vpop.permute.xlu1 %2400 }
 0x6fb   : > { %v1841_v63 = vpop.xlane.xlu0 %1840 }
 0x6fc   : > { %v1859_v54 = vsub.f32 %v5139_v27, %v1841_v63 }
 0x6fe   : > { %v1888_v51 = vmul.f32 1.442695, %v1859_v54 }
 0x6ff   : > { %v2124_v9 = vpop.permute.xlu0 %2123 }
 0x700   : > { %3820 = vpow2.f32 %v1888_v51  ;;  %3600 = vmatprep.subr.msk.bf16.mxu1 %vm752_vm0, %v2124_v9  ;;  %v2170_v11 = vsel %vm752_vm0, %v2124_v9, 0 }
 0x701   : > { %3822 = vpow2.f32 %v1890_v31  ;;  %3471 = vmatpush3.bf16.xpose.msra.mxu1 %v2170_v11 }
 0x703   : > { %v2126_v6 = vpop.permute.xlu0 %2125 }
 0x704   : > { %3601 = vmatprep.subr.msk.bf16.mxu1 %vm752_vm0, %v2126_v6  ;;  %v2173_v27 = vsel %vm752_vm0, %v2126_v6, 0 }
 0x707   : > { %v2096_v23 = vpop.permute.xlu0 %2095 }
 0x709   : > { %3473 = vmatpush3.bf16.xpose.msra.mxu1 %v2173_v27 }
 0x70a   : > { %v5248_v60 = vpop.eup %3820 }
 0x70b   : > { %v5250_v62 = vpop.eup %3822  ;;  %v2100_v0 = vpop.permute.xlu0 %2099  ;;  %v1932_v21 = vpack.c.bf16 %v5248_v60, %v5243_v17 }
 0x70c   : > { %v1933_v2 = vpack.c.bf16 %v5246_v18, %v5250_v62 }
 0x70d   : > { %3454 = vmatprep.mubr.bf16.mxu1 %v1932_v21 }
 0x70e   : > { %3455 = vmatmul.mubr.bf16.gmra.mrb[60].mxu1 %v1933_v2 }
 0x70f   : > { %3474 = vmatprep.mubr.msk.bf16.mxu1 %vm752_vm0, %v2096_v23  ;;  %v2104_v33 = vpop.permute.xlu0 %2103 }
 0x713   : > { %v2108_v24 = vpop.permute.xlu0 %2107 }
 0x716   : > { %3475 = vmatmul.mubr.msk.bf16.vlgmr.msra.gmra.mrb[64].mxu1 %vm752_vm0, %v2098_v49 }
 0x717   : > { %3478 = vmatprep.mubr.msk.bf16.mxu1 %vm752_vm0, %v2100_v0  ;;  %v2393_v42 = vpop.permute.xlu0 %2392 }
 0x718   : > { %3490 = vmatprep.subr.bf16.mxu0 %v2393_v42 }
 0x719   : > { %3491 = vmatpush3.bf16.msra.mxu0 %v2393_v42 }
 0x71a   : > { %3492 = vmatprep.subr.bf16.mxu0 %v2395_v47 }
 0x71b   : > { %v2397_v48 = vpop.permute.xlu0 %2396 }
 0x71d   : > { %3493 = vmatpush3.bf16.msra.mxu0 %v2395_v47 }
 0x71e   : > { %3479 = vmatmul.mubr.msk.bf16.gmra.mrb[68].mxu1 %vm752_vm0, %v2102_v12  ;;  %3494 = vmatprep.subr.bf16.mxu0 %v2397_v48 }
 0x71f   : > { %3482 = vmatprep.mubr.msk.bf16.mxu1 %vm752_vm0, %v2104_v33  ;;  %v2399_v4 = vpop.permute.xlu0 %2398 }
 0x721   : > { %3495 = vmatpush3.bf16.msra.mxu0 %v2397_v48 }
 0x722   : > { %3496 = vmatprep.subr.bf16.mxu0 %v2399_v4 }
 0x723   : > { %v2403_v63 = vpop.permute.xlu0 %2402 }
 0x725   : > { %3497 = vmatpush3.bf16.msra.mxu0 %v2399_v4 }
 0x726   : > { %3483 = vmatmul.mubr.msk.bf16.gmra.mrb[72].mxu1 %vm752_vm0, %v2106_v13  ;;  %3498 = vmatprep.subr.bf16.mxu0 %v2401_v25 }
 0x727   : > { %3486 = vmatprep.mubr.msk.bf16.mxu1 %vm752_vm0, %v2108_v24 }
 0x729   : > { %3499 = vmatpush3.bf16.msra.mxu0 %v2401_v25 }
 0x72a   : > { %3500 = vmatprep.subr.bf16.mxu0 %v2403_v63 }
 0x72d   : > { %3501 = vmatpush3.bf16.msra.mxu0 %v2403_v63 }
 0x72e   : > { %3487 = vmatmul.mubr.msk.bf16.gmra.mrb[76].mxu1 %vm752_vm0, %v2110_v7 }
 0x79a   : > { %v5264_v54 = vpop.f32.mrb[48].mxu1 }
 0x79b   : > { %5827 = vst [vmem:[#allocation54_spill] sm:$0xff] %v5264_v54  ;;  %v5266_v31 = vpop.f32.mrb[49].mxu1 }
 0x79c   : > { %v5268_v51 = vpop.f32.mrb[50].mxu1 }
 0x79d   : > { %5828 = vst [vmem:[#allocation55_spill] sm:$0xff] %v5268_v51  ;;  %v5270_v9 = vpop.f32.mrb[51].mxu1 }
 0x7a2   : > { %v5272_v11 = vpop.f32.mrb[52].mxu1 }
 0x7a3   : > { %5829 = vst [vmem:[#allocation56_spill] sm:$0xff] %v5272_v11  ;;  %v5274_v49 = vpop.f32.mrb[53].mxu1 }
 0x7a4   : > { %5830 = vst [vmem:[#allocation57_spill] sm:$0xff] %v5274_v49  ;;  %v5276_v6 = vpop.f32.mrb[54].mxu1 }
 0x7a5   : > { %5831 = vst [vmem:[#allocation58_spill] sm:$0xff] %v5276_v6  ;;  %v5278_v12 = vpop.f32.mrb[55].mxu1 }
 0x7a6   : > { %5832 = vst [vmem:[#allocation59_spill] sm:$0xff] %v5278_v12 }
 0x7af   : > { %v5280_v23 = vpop.f32.mrb[56].mxu1 }
 0x7b0   : > { %5833 = vst [vmem:[#allocation60_spill] sm:$0xff] %v5280_v23  ;;  %v5282_v27 = vpop.f32.mrb[57].mxu1 }
 0x7b1   : > { %v5284_v0 = vpop.f32.mrb[58].mxu1 }
 0x7b2   : > { %5834 = vst [vmem:[#allocation61_spill] sm:$0xff] %v5284_v0  ;;  %v5286_v21 = vpop.f32.mrb[59].mxu1 }
 0x7b3   : > { %5835 = vst [vmem:[#allocation62_spill] sm:$0xff] %v5286_v21 }
 0x7e1   : > { %v5288_v2 = vpop.f32.mrb[60].mxu1 }
 0x7e2   : > { %5836 = vst [vmem:[#allocation63_spill] sm:$0xff] %v5288_v2  ;;  %v5290_v13 = vpop.f32.mrb[61].mxu1 }
 0x7e3   : > { %5837 = vst [vmem:[#allocation64_spill] sm:$0xff] %v5290_v13  ;;  %v5292_v33 = vpop.f32.mrb[62].mxu1 }
 0x7e4   : > { %5838 = vst [vmem:[#allocation65_spill] sm:$0xff] %v5292_v33  ;;  %v5294_v7 = vpop.f32.mrb[63].mxu1 }
 0x7e5   : > { %5839 = vst [vmem:[#allocation66_spill] sm:$0xff] %v5294_v7 }
 0x7e9   : > { %v3476_v24 = vpop.f32.mrb[64].mxu1 }
 0x7ea   : > { %v5297_v42 = vadd.f32 %v3476_v24, %v4576_v5  ;;  %v2209_v47 = vpop.f32.mrb[65].mxu1 }
 0x7eb   : > { %v5300_v48 = vadd.f32 %v2209_v47, %v4576_v5  ;;  %v3477_v4 = vpop.f32.mrb[66].mxu1 }
 0x7ec   : > { %2276 = vmax.xlane.f32.xlu1 %v5297_v42  ;;  %v2212_v25 = vpop.f32.mrb[67].mxu1  ;;  %v5305_v63 = vadd.f32 %v3477_v4, %v4576_v5 }
 0x7ed   : > { %2272 = vmax.xlane.f32.xlu0 %v5300_v48  ;;  %v5309_v2 = vadd.f32 %v2212_v25, %v4576_v5 }
 0x7f0   : > { %2278 = vmax.xlane.f32.xlu1 %v5305_v63 }
 0x7f1   : > { %v3480_v33 = vpop.f32.mrb[68].mxu1 }
 0x7f2   : > { %v2225_v24 = vpop.f32.mrb[69].mxu1  ;;  %v5317_v7 = vadd.f32 %v3480_v33, %v4576_v5 }
 0x7f3   : > { %v5312_v6 = vadd.f32 %v2225_v24, %v4576_v5  ;;  %v3481_v47 = vpop.f32.mrb[70].mxu1 }
 0x7f4   : > { %2274 = vmax.xlane.f32.xlu1 %v5309_v2  ;;  %v2228_v11 = vpop.f32.mrb[71].mxu1  ;;  %v5321_v13 = vadd.f32 %v3481_v47, %v4576_v5 }
 0x7f5   : > { %2280 = vmax.xlane.f32.xlu0 %v5312_v6  ;;  %v5328_v0 = vadd.f32 %v2228_v11, %v4576_v5 }
 0x7f8   : > { %2284 = vmax.xlane.f32.xlu1 %v5317_v7 }
 0x7f9   : > { %v3484_v4 = vpop.f32.mrb[72].mxu1 }
 0x7fa   : > { %v2241_v25 = vpop.f32.mrb[73].mxu1  ;;  %v5336_v23 = vadd.f32 %v3484_v4, %v4576_v5 }
 0x7fb   : > { %v3485_v12 = vpop.f32.mrb[74].mxu1  ;;  %v5344_v21 = vadd.f32 %v2241_v25, %v4576_v5 }
 0x7fc   : > { %v5324_v24 = vadd.f32 %v3485_v12, %v4576_v5  ;;  %2286 = vmax.xlane.f32.xlu1 %v5321_v13  ;;  %v2244_v49 = vpop.f32.mrb[75].mxu1 }
 0x7fd   : > { %v5332_v33 = vadd.f32 %v2244_v49, %v4576_v5 }
 0x7fe   : > { %2294 = vmax.xlane.f32.xlu0 %v5324_v24 }
 0x800   : > { %2282 = vmax.xlane.f32.xlu1 %v5328_v0 }
 0x801   : > { %v3488_v47 = vpop.f32.mrb[76].mxu1 }
 0x802   : > { %2290 = vmax.xlane.f32.xlu0 %v5332_v33  ;;  %v2257_v12 = vpop.f32.mrb[77].mxu1  ;;  %v5361_v4 = vadd.f32 %v3488_v47, %v4576_v5 }
 0x803   : > { %v3489_v51 = vpop.f32.mrb[78].mxu1 }
 0x804   : > { %v5340_v54 = vadd.f32 %v3489_v51, %v4576_v5  ;;  %2292 = vmax.xlane.f32.xlu1 %v5336_v23  ;;  %v2260_v11 = vpop.f32.mrb[79].mxu1  ;;  %v5357_v51 = vadd.f32 %v2257_v12, %v4576_v5 }
 0x805   : > { %v5348_v49 = vadd.f32 %v2260_v11, %v4576_v5 }
 0x806   : > { %2302 = vmax.xlane.f32.xlu0 %v5340_v54 }
 0x808   : > { %2288 = vmax.xlane.f32.xlu1 %v5344_v21 }
 0x80a   : > { %2298 = vmax.xlane.f32.xlu0 %v5348_v49 }
 0x819   : > { %2404 = vrot.lane.b32.xlu1 %v4527_v32, %s4153_s10 }
 0x820   : > { %2406 = vrot.lane.b32.xlu0 %v4520_v29, %s4153_s10 }
 0x83d   : > { %2296 = vmax.xlane.f32.xlu1 %v5357_v51 }
 0x83f   : > { %1430 = vadd.xlane.f32.xlu0 %v4942_v3 }
 0x841   : > { %2300 = vmax.xlane.f32.xlu1 %v5361_v4 }
 0x843   : > { %1910 = vadd.xlane.f32.xlu0 %v5214_v41 }
 0x845   : > { %1428 = vadd.xlane.f32.xlu1 %v4944_v40 }
 0x847   : > { %1898 = vadd.xlane.f32.xlu0 %v5184_v16 }
 0x849   : > { %1444 = vadd.xlane.f32.xlu1 %v4978_v30 }
 0x84b   : > { %1914 = vadd.xlane.f32.xlu0 %v5222_v14 }
 0x84d   : > { %1446 = vadd.xlane.f32.xlu1 %v4982_v58 }
 0x84f   : > { %1436 = vadd.xlane.f32.xlu0 %v4957_v55 }
 0x851   : > { %1432 = vadd.xlane.f32.xlu1 %v4948_v37 }
 0x853   : > { %1452 = vadd.xlane.f32.xlu0 %v5007_v52 }
 0x855   : > { %1434 = vadd.xlane.f32.xlu1 %v4951_v15 }
 0x857   : > { %1440 = vadd.xlane.f32.xlu0 %v4968_v19 }
 0x859   : > { %1448 = vadd.xlane.f32.xlu1 %v4986_v50 }
 0x85b   : > { %1456 = vadd.xlane.f32.xlu0 %v5014_v26 }
 0x85d   : > { %1450 = vadd.xlane.f32.xlu1 %v4980_v43 }
 0x85f   : > { %1902 = vadd.xlane.f32.xlu0 %v5193_v46 }
 0x861   : > { %1894 = vadd.xlane.f32.xlu1 %v5180_v44 }
 0x863   : > { %1918 = vadd.xlane.f32.xlu0 %v5243_v17 }
 0x865   : > { %1896 = vadd.xlane.f32.xlu1 %v5178_v35 }
 0x867   : > { %1906 = vadd.xlane.f32.xlu0 %v5204_v28 }
 0x869   : > { %1912 = vadd.xlane.f32.xlu1 %v5218_v56 }
 0x86b   : > { %1922 = vadd.xlane.f32.xlu0 %v5250_v62 }
 0x86d   : > { %1900 = vadd.xlane.f32.xlu1 %v5187_v45 }
 0x86f   : > { %978 = vadd.xlane.f32.xlu0 %v4696_v22 }
 0x871   : > { %1916 = vadd.xlane.f32.xlu1 %v5216_v34 }
 0x873   : > { %994 = vadd.xlane.f32.xlu0 %v4732_v1 }
 0x875   : > { %1438 = vadd.xlane.f32.xlu1 %v4961_v39 }
 0x877   : > { %982 = vadd.xlane.f32.xlu0 %v4702_v8 }
 0x879   : > { %v2277_v29 = vpop.xlane.xlu1 %2276  ;;  %1454 = vadd.xlane.f32.xlu1 %v5012_v20 }
 0x87a   : > { %v2306_v32 = vsub.f32 %v5297_v42, %v2277_v29  ;;  %v2273_v5 = vpop.xlane.xlu0 %2272  ;;  %v5840_v42 = vld [vmem:[#allocation12_spill] sm:$0xff] }
 0x87b   : > { %v2304_v3 = vsub.f32 %v5300_v48, %v2273_v5  ;;  %998 = vadd.xlane.f32.xlu0 %v4748_v36 }
 0x87c   : > { %v2324_v40 = vmul.f32 1.442695, %v2306_v32 }
 0x87d   : > { %v2279_v22 = vpop.xlane.xlu1 %2278  ;;  %1442 = vadd.xlane.f32.xlu1 %v4970_v38  ;;  %v2320_v1 = vmul.f32 1.442695, %v2304_v3 }
 0x87e   : > { %3824 = vpow2.f32 %v2324_v40  ;;  %v2307_v50 = vsub.f32 %v5305_v63, %v2279_v22 }
 0x87f   : > { %3826 = vpow2.f32 %v2320_v1 }
 0x880   : > { %v2326_v35 = vmul.f32 1.442695, %v2307_v50  ;;  %v5845_v50 = vld [vmem:[#allocation19_spill] sm:$0xff] }
 0x881   : > { %v2275_v37 = vpop.xlane.xlu1 %2274  ;;  %1458 = vadd.xlane.f32.xlu1 %v5010_v53 }
 0x882   : > { %v2305_v8 = vsub.f32 %v5309_v2, %v2275_v37  ;;  %v2281_v15 = vpop.xlane.xlu0 %2280  ;;  %v5842_v37 = vld [vmem:[#allocation16_spill] sm:$0xff] }
 0x883   : > { %v2308_v36 = vsub.f32 %v5312_v6, %v2281_v15 }
 0x884   : > { %v2322_v55 = vmul.f32 1.442695, %v2305_v8  ;;  %v5843_v8 = vld [vmem:[#allocation20_spill] sm:$0xff] }
 0x885   : > { %v2285_v39 = vpop.xlane.xlu1 %2284  ;;  %1904 = vadd.xlane.f32.xlu1 %v5197_v59  ;;  %v2328_v58 = vmul.f32 1.442695, %v2308_v36 }
 0x886   : > { %3828 = vpow2.f32 %v2322_v55  ;;  %v2310_v19 = vsub.f32 %v5317_v7, %v2285_v39 }
 0x888   : > { %v3825_v30 = vpop.eup %3824  ;;  %v2332_v38 = vmul.f32 1.442695, %v2310_v19 }
 0x889   : > { %v2287_v43 = vpop.xlane.xlu1 %2286  ;;  %2356 = vadd.xlane.f32.xlu0 %v3825_v30  ;;  %1920 = vadd.xlane.f32.xlu1 %v5248_v60  ;;  %v3827_v53 = vpop.eup %3826 }
 0x88a   : > { %3830 = vpow2.f32 %v2332_v38  ;;  %v2311_v41 = vsub.f32 %v5321_v13, %v2287_v43 }
 0x88b   : > { %v2295_v52 = vpop.xlane.xlu0 %2294  ;;  %3832 = vpow2.f32 %v2328_v58 }
 0x88c   : > { %3834 = vpow2.f32 %v2326_v35  ;;  %v2334_v60 = vmul.f32 1.442695, %v2311_v41  ;;  %v2315_v7 = vsub.f32 %v5324_v24, %v2295_v52  ;;  %v5846_v41 = vld [vmem:[#allocation39_spill] sm:$0xff] }
 0x88d   : > { %v2283_v20 = vpop.xlane.xlu1 %2282  ;;  %1908 = vadd.xlane.f32.xlu1 %v5206_v61  ;;  %2352 = vadd.xlane.f32.xlu0 %v3827_v53 }
 0x88e   : > { %v2309_v26 = vsub.f32 %v5328_v0, %v2283_v20  ;;  %v2342_v25 = vmul.f32 1.442695, %v2315_v7 }
 0x88f   : > { %v2291_v44 = vpop.xlane.xlu0 %2290 }
 0x890   : > { %v3829_v16 = vpop.eup %3828  ;;  %v2330_v45 = vmul.f32 1.442695, %v2309_v26  ;;  %v2313_v17 = vsub.f32 %v5332_v33, %v2291_v44 }
 0x891   : > { %v2293_v46 = vpop.xlane.xlu1 %2292  ;;  %1924 = vadd.xlane.f32.xlu1 %v5246_v18  ;;  %v2384_v59 = vpack.c.bf16 %v3829_v16, %v3827_v53 }
 0x892   : > { %v2314_v28 = vsub.f32 %v5336_v23, %v2293_v46  ;;  %3836 = vpow2.f32 %v2330_v45  ;;  %v2338_v2 = vmul.f32 1.442695, %v2313_v17 }
 0x893   : > { %3506 = vmatprep.mubr.bf16.mxu0 %v2384_v59  ;;  %v2303_v34 = vpop.xlane.xlu0 %2302 }
 0x894   : > { %v3831_v61 = vpop.eup %3830  ;;  %v2340_v56 = vmul.f32 1.442695, %v2314_v28  ;;  %v2319_v3 = vsub.f32 %v5340_v54, %v2303_v34 }
 0x895   : > { %v2289_v14 = vpop.xlane.xlu1 %2288  ;;  %980 = vadd.xlane.f32.xlu1 %v4700_v10  ;;  %2364 = vadd.xlane.f32.xlu0 %v3831_v61  ;;  %v3833_v6 = vpop.eup %3832 }
 0x896   : > { %3838 = vpow2.f32 %v2340_v56  ;;  %v2312_v18 = vsub.f32 %v5344_v21, %v2289_v14  ;;  %v3835_v13 = vpop.eup %3834  ;;  %v2350_v40 = vmul.f32 1.442695, %v2319_v3 }
 0x897   : > { %v2299_v62 = vpop.xlane.xlu0 %2298  ;;  %v2385_v63 = vpack.c.bf16 %v3835_v13, %v3825_v30  ;;  %v5844_v30 = vld [vmem:[#allocation15_spill] sm:$0xff] }
 0x898   : > { %v2336_v23 = vmul.f32 1.442695, %v2312_v18  ;;  %v2317_v22 = vsub.f32 %v5348_v49, %v2299_v62 }
 0x899   : > { %v2405_v0 = vpop.permute.xlu1 %2404  ;;  %996 = vadd.xlane.f32.xlu1 %v4737_v57  ;;  %2360 = vadd.xlane.f32.xlu0 %v3833_v6  ;;  %v5841_v57 = vld [vmem:[#allocation17_spill] sm:$0xff] }
 0x89a   : > { %3840 = vpow2.f32 %v2336_v23  ;;  %3502 = vmatprep.subr.bf16.mxu0 %v2405_v0  ;;  %v2346_v1 = vmul.f32 1.442695, %v2317_v22  ;;  %v5855_v22 = vld [vmem:[#allocation21_spill] sm:$0xff] }
 0x89b   : > { %3842 = vpow2.f32 %v2334_v60  ;;  %3503 = vmatpush3.bf16.msra.mxu0 %v2405_v0  ;;  %v2407_v10 = vpop.permute.xlu0 %2406  ;;  %v5848_v0 = vld [vmem:[#allocation13_spill] sm:$0xff] }
 0x89c   : > { %3504 = vmatprep.subr.bf16.mxu0 %v2407_v10  ;;  %v3837_v21 = vpop.eup %3836  ;;  %3844 = vpow2.f32 %v2338_v2  ;;  %v5849_v2 = vld [vmem:[#allocation47_spill] sm:$0xff] }
 0x89d   : > { %984 = vadd.xlane.f32.xlu1 %v5840_v42  ;;  %v2386_v33 = vpack.c.bf16 %v3837_v21, %v3833_v6  ;;  %3846 = vpow2.f32 %v2342_v25 }
 0x89e   : > { %3848 = vpow2.f32 %v2350_v40 }
 0x89f   : > { %3505 = vmatpush3.bf16.msra.mxu0 %v2407_v10  ;;  %3850 = vpow2.f32 %v2346_v1 }
 0x8a0   : > { %v3839_v48 = vpop.eup %3838 }
 0x8a1   : > { %1000 = vadd.xlane.f32.xlu1 %v5841_v57  ;;  %2372 = vadd.xlane.f32.xlu0 %v3839_v48 }
 0x8a2   : > { %3507 = vmatmul.mubr.bf16.vlgmr.msra.gmra.mrb[80].mxu0 %v2385_v63  ;;  %v5851_v63 = vld [vmem:[#allocation18_spill] sm:$0xff] }
 0x8a3   : > { %3510 = vmatprep.mubr.bf16.mxu0 %v2386_v33 }
 0x8a4   : > { %v3841_v47 = vpop.eup %3840 }
 0x8a5   : > { %v3843_v12 = vpop.eup %3842  ;;  %2358 = vadd.xlane.f32.xlu1 %v3835_v13  ;;  %2368 = vadd.xlane.f32.xlu0 %v3841_v47  ;;  %v5850_v13 = vld [vmem:[#allocation49_spill] sm:$0xff] }
 0x8a6   : > { %v3845_v24 = vpop.eup %3844  ;;  %v2387_v11 = vpack.c.bf16 %v3843_v12, %v3831_v61  ;;  %v5847_v61 = vld [vmem:[#allocation41_spill] sm:$0xff] }
 0x8a7   : > { %v2388_v29 = vpack.c.bf16 %v3845_v24, %v3841_v47  ;;  %v3847_v32 = vpop.eup %3846 }
 0x8a8   : > { %v2389_v5 = vpack.c.bf16 %v3847_v32, %v3839_v48  ;;  %v3849_v15 = vpop.eup %3848 }
 0x8a9   : > { %2354 = vadd.xlane.f32.xlu1 %v3829_v16  ;;  %v3851_v55 = vpop.eup %3850 }
 0x8aa   : > { %3511 = vmatmul.mubr.bf16.gmra.mrb[84].mxu0 %v2387_v11 }
 0x8ab   : > { %3514 = vmatprep.mubr.bf16.mxu0 %v2388_v29  ;;  %v5854_v29 = vld [vmem:[#allocation40_spill] sm:$0xff] }
 0x8ad   : > { %2366 = vadd.xlane.f32.xlu1 %v3843_v12  ;;  %v5852_v12 = vld [vmem:[#allocation14_spill] sm:$0xff] }
 0x8b1   : > { %2362 = vadd.xlane.f32.xlu1 %v3837_v21 }
 0x8b2   : > { %3515 = vmatmul.mubr.bf16.gmra.mrb[88].mxu0 %v2389_v5 }
 0x8b5   : > { %2374 = vadd.xlane.f32.xlu1 %v3847_v32 }
 0x8b9   : > { %2370 = vadd.xlane.f32.xlu1 %v3845_v24  ;;  %v5853_v24 = vld [vmem:[#allocation38_spill] sm:$0xff] }
 0x8bd   : > { %988 = vadd.xlane.f32.xlu1 %v5842_v37 }
 0x8c1   : > { %1004 = vadd.xlane.f32.xlu1 %v5843_v8 }
 0x8c5   : > { %2382 = vadd.xlane.f32.xlu1 %v3849_v15 }
 0x8c9   : > { %2378 = vadd.xlane.f32.xlu1 %v3851_v55 }
 0x8ca   : > { %v2297_v39 = vpop.xlane.xlu1 %2296 }
 0x8cb   : > { %v2316_v54 = vsub.f32 %v5357_v51, %v2297_v39 }
 0x8cc   : > { %v1431_v36 = vpop.xlane.xlu0 %1430 }
 0x8cd   : > { %v2344_v19 = vmul.f32 1.442695, %v2316_v54  ;;  %992 = vadd.xlane.f32.xlu1 %v5844_v30  ;;  %v5857_v54 = vld [vmem:[#allocation48_spill] sm:$0xff] }
 0x8ce   : > { %v2301_v49 = vpop.xlane.xlu1 %2300 }
 0x8cf   : > { %3852 = vpow2.f32 %v2344_v19  ;;  %v2318_v38 = vsub.f32 %v5361_v4, %v2301_v49 }
 0x8d0   : > { %v1911_v43 = vpop.xlane.xlu0 %1910  ;;  %3854 = vrcp.f32 %v1431_v36 }
 0x8d1   : > { %v2348_v58 = vmul.f32 1.442695, %v2318_v38  ;;  %1008 = vadd.xlane.f32.xlu1 %v5845_v50 }
 0x8d2   : > { %v1429_v52 = vpop.xlane.xlu1 %1428 }
 0x8d3   : > { %3856 = vpow2.f32 %v2348_v58 }
 0x8d4   : > { %3858 = vrcp.f32 %v1429_v52  ;;  %v5424_v53 = vpop.xlane.xlu0 %1898 }
 0x8d6   : > { %v1445_v20 = vpop.xlane.xlu1 %1444 }
 0x8d7   : > { %3860 = vrcp.f32 %v1445_v20 }
 0x8d8   : > { %v5426_v51 = vpop.xlane.xlu0 %1914 }
 0x8d9   : > { %v3853_v26 = vpop.eup %3852 }
 0x8da   : > { %v1447_v35 = vpop.xlane.xlu1 %1446  ;;  %v2390_v44 = vpack.c.bf16 %v3851_v55, %v3853_v26  ;;  %v3855_v16 = vpop.eup %3854  ;;  %v5856_v55 = vld [vmem:[#allocation46_spill] sm:$0xff] }
 0x8db   : > { %3862 = vrcp.f32 %v1447_v35  ;;  %v5434_v56 = vmul.f32 %v3855_v16, %v5847_v61  ;;  %v5859_v61 = vld [vmem:[#allocation54_spill] sm:$0xff] }
 0x8dc   : > { %3518 = vmatprep.mubr.bf16.mxu0 %v2390_v44  ;;  %v5428_v4 = vpop.xlane.xlu0 %1436 }
 0x8dd   : > { %v3857_v45 = vpop.eup %3856 }
 0x8de   : > { %v3859_v46 = vpop.eup %3858  ;;  %v1433_v59 = vpop.xlane.xlu1 %1432  ;;  %2380 = vadd.xlane.f32.xlu0 %v3857_v45  ;;  %v2391_v28 = vpack.c.bf16 %v3849_v15, %v3857_v45  ;;  %v5858_v45 = vld [vmem:[#allocation62_spill] sm:$0xff] }
 0x8df   : > { %v5431_v34 = vmul.f32 %v3859_v46, %v5846_v41  ;;  %3864 = vrcp.f32 %v1433_v59 }
 0x8e0   : > { %3519 = vmatmul.mubr.bf16.gmra.mrb[92].mxu0 %v2391_v28  ;;  %v5436_v14 = vpop.xlane.xlu0 %1452 }
 0x8e1   : > { %v1629_v17 = vpack.c.bf16 %v5434_v56, %v5431_v34  ;;  %v3861_v60 = vpop.eup %3860  ;;  %v5864_v56 = vld [vmem:[#allocation31_spill] sm:$0xff] }
 0x8e2   : > { %v1435_v18 = vpop.xlane.xlu1 %1434  ;;  %2376 = vadd.xlane.f32.xlu0 %v3853_v26  ;;  %v1621_v10 = vmul.f32 %v3861_v60, %v5849_v2  ;;  %v5860_v60 = vld [vmem:[#allocation55_spill] sm:$0xff] }
 0x8e3   : > { %3866 = vrcp.f32 %v1435_v18 }
 0x8e4   : > { %v5440_v62 = vpop.xlane.xlu0 %1440 }
 0x8e5   : > { %v3863_v6 = vpop.eup %3862 }
 0x8e6   : > { %v1449_v23 = vpop.xlane.xlu1 %1448  ;;  %986 = vadd.xlane.f32.xlu0 %v5848_v0  ;;  %v1622_v7 = vmul.f32 %v3863_v6, %v5850_v13  ;;  %v5861_v0 = vld [vmem:[#allocation23_spill] sm:$0xff] }
 0x8e7   : > { %3868 = vrcp.f32 %v1449_v23 }
 0x8e8   : > { %v5445_v42 = vpop.xlane.xlu0 %1456  ;;  %v1633_v21 = vpack.c.bf16 %v1622_v7, %v1621_v10 }
 0x8e9   : > { %v3865_v25 = vpop.eup %3864 }
 0x8ea   : > { %v1451_v48 = vpop.xlane.xlu1 %1450  ;;  %1002 = vadd.xlane.f32.xlu0 %v5851_v63  ;;  %2569 = vrot.lane.b32.xlu1 %v1633_v21, %s4153_s10  ;;  %v1615_v11 = vmul.f32 %v3865_v25, %v5853_v24  ;;  %v5862_v21 = vld [vmem:[#allocation60_spill] sm:$0xff]  ;;  %v5863_v63 = vld [vmem:[#allocation61_spill] sm:$0xff]  ;;  %v5865_v24 = vld [vmem:[#allocation43_spill] sm:$0xff] }
 0x8eb   : > { %3870 = vrcp.f32 %v1451_v48 }
 0x8ec   : > { %v5449_v57 = vpop.xlane.xlu0 %1902 }
 0x8ed   : > { %v3867_v33 = vpop.eup %3866 }
 0x8ee   : > { %v1895_v47 = vpop.xlane.xlu1 %1894  ;;  %990 = vadd.xlane.f32.xlu0 %v5852_v12  ;;  %v1616_v32 = vmul.f32 %v3867_v33, %v5854_v29  ;;  %v5866_v29 = vld [vmem:[#allocation45_spill] sm:$0xff] }
 0x8ef   : > { %3872 = vrcp.f32 %v1895_v47 }
 0x8f0   : > { %v5454_v5 = vpop.xlane.xlu0 %1918  ;;  %v1630_v3 = vpack.c.bf16 %v1616_v32, %v1615_v11 }
 0x8f1   : > { %v3869_v1 = vpop.eup %3868 }
 0x8f2   : > { %v1897_v40 = vpop.xlane.xlu1 %1896  ;;  %1006 = vadd.xlane.f32.xlu0 %v5855_v22  ;;  %2563 = vrot.lane.b32.xlu1 %v1630_v3, %s4153_s10  ;;  %v1623_v39 = vmul.f32 %v3869_v1, %v5856_v55  ;;  %v5867_v22 = vld [vmem:[#allocation22_spill] sm:$0xff] }
 0x8f3   : > { %3874 = vrcp.f32 %v1897_v40 }
 0x8f4   : > { %v5458_v37 = vpop.xlane.xlu0 %1906  ;;  %3876 = vrcp.f32 %v1911_v43 }
 0x8f5   : > { %v3871_v8 = vpop.eup %3870 }
 0x8f6   : > { %v1913_v15 = vpop.xlane.xlu1 %1912  ;;  %v1624_v36 = vmul.f32 %v3871_v8, %v5857_v54  ;;  %v5869_v54 = vld [vmem:[#allocation53_spill] sm:$0xff] }
 0x8f7   : > { %3878 = vrcp.f32 %v1913_v15 }
 0x8f8   : > { %v5462_v19 = vpop.xlane.xlu0 %1922  ;;  %v1634_v30 = vpack.c.bf16 %v1624_v36, %v1623_v39  ;;  %3880 = vrcp.f32 %v5424_v53 }
 0x8f9   : > { %v3873_v38 = vpop.eup %3872 }
 0x8fa   : > { %v1901_v49 = vpop.xlane.xlu1 %1900  ;;  %v2071_v52 = vmul.f32 %v3873_v38, %v5266_v31  ;;  %v5870_v38 = vld [vmem:[#allocation30_spill] sm:$0xff] }
 0x8fb   : > { %3882 = vrcp.f32 %v1901_v49 }
 0x8fc   : > { %3884 = vrcp.f32 %v5426_v51  ;;  %v979_v58 = vpop.xlane.xlu0 %978 }
 0x8fd   : > { %v3875_v50 = vpop.eup %3874  ;;  %3886 = vrcp.f32 %v979_v58 }
 0x8fe   : > { %v1917_v43 = vpop.xlane.xlu1 %1916  ;;  %v2072_v20 = vmul.f32 %v3875_v50, %v5270_v9  ;;  %v3877_v26 = vpop.eup %3876 }
 0x8ff   : > { %3888 = vrcp.f32 %v1917_v43  ;;  %v2079_v51 = vmul.f32 %v3877_v26, %v5282_v27  ;;  %v5871_v43 = vld [vmem:[#allocation42_spill] sm:$0xff] }
 0x900   : > { %3890 = vrcp.f32 %v5428_v4  ;;  %v995_v35 = vpop.xlane.xlu0 %994  ;;  %v2087_v44 = vpack.c.bf16 %v2072_v20, %v2071_v52  ;;  %v5872_v20 = vld [vmem:[#allocation44_spill] sm:$0xff] }
 0x901   : > { %v3879_v53 = vpop.eup %3878  ;;  %3892 = vrcp.f32 %v995_v35 }
 0x902   : > { %v1439_v16 = vpop.xlane.xlu1 %1438  ;;  %2585 = vrot.lane.b32.xlu1 %v2087_v44, %s4152_s13  ;;  %v2080_v46 = vmul.f32 %v3879_v53, %v5858_v45  ;;  %v3881_v59 = vpop.eup %3880 }
 0x903   : > { %3894 = vrcp.f32 %v1439_v16  ;;  %v2073_v18 = vmul.f32 %v3881_v59, %v5859_v61  ;;  %v5876_v61 = vld [vmem:[#allocation59_spill] sm:$0xff] }
 0x904   : > { %3896 = vrcp.f32 %v5436_v14  ;;  %v983_v31 = vpop.xlane.xlu0 %982  ;;  %v2091_v9 = vpack.c.bf16 %v2080_v46, %v2079_v51  ;;  %v5873_v51 = vld [vmem:[#allocation50_spill] sm:$0xff]  ;;  %v5874_v46 = vld [vmem:[#allocation52_spill] sm:$0xff] }
 0x905   : > { %v3883_v28 = vpop.eup %3882  ;;  %3898 = vrcp.f32 %v983_v31 }
 0x906   : > { %v3885_v4 = vpop.eup %3884  ;;  %v1455_v41 = vpop.xlane.xlu1 %1454  ;;  %v2074_v6 = vmul.f32 %v3883_v28, %v5860_v60 }
 0x907   : > { %v3887_v23 = vpop.eup %3886  ;;  %3900 = vrcp.f32 %v1455_v41  ;;  %v2081_v48 = vmul.f32 %v3885_v4, %v5862_v21  ;;  %v5875_v4 = vld [vmem:[#allocation57_spill] sm:$0xff] }
 0x908   : > { %3902 = vrcp.f32 %v5440_v62  ;;  %2561 = vrot.lane.b32.xlu0 %v1629_v17, %s4153_s10  ;;  %v999_v27 = vpop.xlane.xlu0 %998  ;;  %v2088_v14 = vpack.c.bf16 %v2074_v6, %v2073_v18  ;;  %v5481_v2 = vmul.f32 %v3887_v23, %v5861_v0  ;;  %v5878_v0 = vld [vmem:[#allocation66_spill] sm:$0xff] }
 0x909   : > { %v3889_v10 = vpop.eup %3888  ;;  %3904 = vrcp.f32 %v999_v27  ;;  %v5877_v27 = vld [vmem:[#allocation64_spill] sm:$0xff] }
 0x90a   : > { %v3891_v13 = vpop.eup %3890  ;;  %v1443_v7 = vpop.xlane.xlu1 %1442  ;;  %2587 = vrot.lane.b32.xlu1 %v2088_v14, %s4152_s13  ;;  %v2082_v62 = vmul.f32 %v3889_v10, %v5863_v63 }
 0x90b   : > { %v3893_v25 = vpop.eup %3892  ;;  %3906 = vrcp.f32 %v1443_v7  ;;  %v1617_v11 = vmul.f32 %v3891_v13, %v5865_v24 }
 0x90c   : > { %2571 = vrot.lane.b32.xlu0 %v1634_v30, %s4153_s10  ;;  %v2092_v34 = vpack.c.bf16 %v2082_v62, %v2081_v48  ;;  %v5488_v17 = vmul.f32 %v3893_v25, %v5864_v56  ;;  %3908 = vrcp.f32 %v5445_v42  ;;  %v5868_v42 = vld [vmem:[#allocation51_spill] sm:$0xff]  ;;  %v5879_v48 = vld [vmem:[#allocation56_spill] sm:$0xff]  ;;  %v5880_v62 = vld [vmem:[#allocation58_spill] sm:$0xff] }
 0x90d   : > { %v3895_v33 = vpop.eup %3894 }
 0x90e   : > { %v3897_v47 = vpop.eup %3896  ;;  %v1459_v12 = vpop.xlane.xlu1 %1458  ;;  %v1618_v32 = vmul.f32 %v3895_v33, %v5866_v29 }
 0x90f   : > { %v3899_v3 = vpop.eup %3898  ;;  %3910 = vrcp.f32 %v1459_v12  ;;  %v1625_v39 = vmul.f32 %v3897_v47, %v5868_v42  ;;  %v5881_v12 = vld [vmem:[#allocation63_spill] sm:$0xff] }
 0x910   : > { %2593 = vrot.lane.b32.xlu0 %v2091_v9, %s4152_s13  ;;  %v1631_v40 = vpack.c.bf16 %v1618_v32, %v1617_v11  ;;  %v5495_v1 = vmul.f32 %v3899_v3, %v5867_v22  ;;  %3912 = vrcp.f32 %v5449_v57  ;;  %v5882_v11 = vld [vmem:[#allocation65_spill] sm:$0xff] }
 0x911   : > { %v3901_v8 = vpop.eup %3900  ;;  %v5883_v22 = vld [vmem:[#allocation25_spill] sm:$0xff] }
 0x912   : > { %v3903_v15 = vpop.eup %3902  ;;  %v1905_v55 = vpop.xlane.xlu1 %1904  ;;  %2565 = vrot.lane.b32.xlu1 %v1631_v40, %s4153_s10  ;;  %v1626_v36 = vmul.f32 %v3901_v8, %v5869_v54 }
 0x913   : > { %v3905_v30 = vpop.eup %3904  ;;  %3914 = vrcp.f32 %v1905_v55  ;;  %v1619_v52 = vmul.f32 %v3903_v15, %v5871_v43 }
 0x914   : > { %2595 = vrot.lane.b32.xlu0 %v2092_v34, %s4152_s13  ;;  %v1635_v49 = vpack.c.bf16 %v1626_v36, %v1625_v39  ;;  %v5503_v58 = vmul.f32 %v3905_v30, %v5870_v38  ;;  %3916 = vrcp.f32 %v5454_v5  ;;  %v5884_v39 = vld [vmem:[#allocation33_spill] sm:$0xff]  ;;  %v5885_v38 = vld [vmem:[#allocation24_spill] sm:$0xff] }
 0x915   : > { %v3907_v50 = vpop.eup %3906 }
 0x916   : > { %v1921_v57 = vpop.xlane.xlu1 %1920  ;;  %v1620_v26 = vmul.f32 %v3907_v50, %v5872_v20  ;;  %v3909_v35 = vpop.eup %3908  ;;  %v5886_v20 = vld [vmem:[#allocation32_spill] sm:$0xff] }
 0x917   : > { %3918 = vrcp.f32 %v1921_v57  ;;  %v1627_v45 = vmul.f32 %v3909_v35, %v5873_v51 }
 0x918   : > { %2573 = vrot.lane.b32.xlu0 %v1635_v49, %s4153_s10  ;;  %v1632_v44 = vpack.c.bf16 %v1620_v26, %v1619_v52  ;;  %3920 = vrcp.f32 %v5458_v37 }
 0x919   : > { %v3911_v53 = vpop.eup %3910 }
 0x91a   : > { %v1909_v16 = vpop.xlane.xlu1 %1908  ;;  %2567 = vrot.lane.b32.xlu1 %v1632_v44, %s4153_s10  ;;  %v1628_v5 = vmul.f32 %v3911_v53, %v5874_v46  ;;  %v3913_v59 = vpop.eup %3912  ;;  %v3720_v53 = vld [vmem:[#allocation7] sm:$0xff]  }
 0x91b   : > { %3922 = vrcp.f32 %v1909_v16  ;;  %v2075_v41 = vmul.f32 %v3913_v59, %v5875_v4  ;;  %v3721_v16 = vld [vmem:[#allocation7 + $0x8] sm:$0xff]   ;;  %3522 = vmatprep.subr.bf16.mxu0 %v3720_v53  ;;  %3554 = vmatprep.subr.bf16.mxu1 %v3720_v53 }
 0x91c   : > { %v1636_v31 = vpack.c.bf16 %v1628_v5, %v1627_v45  ;;  %3924 = vrcp.f32 %v5462_v19  ;;  %3523 = vmatpush3.bf16.msra.mxu0 %v3720_v53  ;;  %3562 = vmatpush3.bf16.msra.mxu1 %v3720_v53  ;;  %v3722_v45 = vld [vmem:[#allocation7 + $0x10] sm:$0xff]   ;;  %v3723_v5 = vld [vmem:[#allocation7 + $0x18] sm:$0xff]   ;;  %v3725_v4 = vld [vmem:[#allocation7 + $0x28] sm:$0xff]  }
 0x91d   : > { %v3915_v9 = vpop.eup %3914  ;;  %3524 = vmatprep.subr.bf16.mxu0 %v3721_v16  ;;  %3555 = vmatprep.subr.bf16.mxu1 %v3721_v16 }
 0x91e   : > { %v1925_v28 = vpop.xlane.xlu1 %1924  ;;  %2575 = vrot.lane.b32.xlu0 %v1636_v31, %s4153_s10  ;;  %v2076_v37 = vmul.f32 %v3915_v9, %v5876_v61  ;;  %v3917_v18 = vpop.eup %3916  ;;  %v3724_v31 = vld [vmem:[#allocation7 + $0x20] sm:$0xff]  }
 0x91f   : > { %3926 = vrcp.f32 %v1925_v28  ;;  %v2083_v14 = vmul.f32 %v3917_v18, %v5877_v27  ;;  %v2357_v9 = vpop.xlane.xlu0 %2356 }
 0x920   : > { %v2089_v60 = vpack.c.bf16 %v2076_v37, %v2075_v41  ;;  %3525 = vmatpush3.bf16.msra.mxu0 %v3721_v16  ;;  %3563 = vmatpush3.bf16.msra.mxu1 %v3721_v16  ;;  %v3726_v37 = vld [vmem:[#allocation7 + $0x30] sm:$0xff]  }
 0x921   : > { %v3919_v6 = vpop.eup %3918  ;;  %3526 = vmatprep.subr.bf16.mxu0 %v3722_v45  ;;  %3556 = vmatprep.subr.bf16.mxu1 %v3722_v45 }
 0x922   : > { %v981_v23 = vpop.xlane.xlu1 %980  ;;  %2589 = vrot.lane.b32.xlu1 %v2089_v60, %s4152_s13  ;;  %v2084_v10 = vmul.f32 %v3919_v6, %v5878_v0  ;;  %v3921_v13 = vpop.eup %3920  ;;  %v5887_v6 = vld [vmem:[#allocation29_spill] sm:$0xff] }
 0x923   : > { %3928 = vrcp.f32 %v981_v23  ;;  %v5522_v63 = vmul.f32 %v3921_v13, %v5879_v48  ;;  %v2353_v61 = vpop.xlane.xlu0 %2352 }
 0x924   : > { %v2093_v19 = vpack.c.bf16 %v2084_v10, %v2083_v14  ;;  %3527 = vmatpush3.bf16.msra.mxu0 %v3722_v45  ;;  %3564 = vmatpush3.bf16.msra.mxu1 %v3722_v45  ;;  %v5888_v10 = vld [vmem:[#allocation37_spill] sm:$0xff] }
 0x925   : > { %v3923_v7 = vpop.eup %3922  ;;  %3528 = vmatprep.subr.bf16.mxu0 %v3723_v5  ;;  %3557 = vmatprep.subr.bf16.mxu1 %v3723_v5 }
 0x926   : > { %v997_v21 = vpop.xlane.xlu1 %996  ;;  %2597 = vrot.lane.b32.xlu0 %v2093_v19, %s4152_s13  ;;  %v5525_v25 = vmul.f32 %v3923_v7, %v5880_v62  ;;  %v3925_v34 = vpop.eup %3924 }
 0x927   : > { %3930 = vrcp.f32 %v997_v21  ;;  %v5530_v24 = vmul.f32 %v3925_v34, %v5881_v12  ;;  %v2365_v27 = vpop.xlane.xlu0 %2364  ;;  %v5889_v34 = vld [vmem:[#allocation36_spill] sm:$0xff] }
 0x928   : > { %v2090_v56 = vpack.c.bf16 %v5525_v25, %v5522_v63  ;;  %3529 = vmatpush3.bf16.msra.mxu0 %v3723_v5  ;;  %3565 = vmatpush3.bf16.msra.mxu1 %v3723_v5 }
 0x929   : > { %v3927_v33 = vpop.eup %3926  ;;  %3530 = vmatprep.subr.bf16.mxu0 %v3724_v31  ;;  %3558 = vmatprep.subr.bf16.mxu1 %v3724_v31 }
 0x92a   : > { %v985_v47 = vpop.xlane.xlu1 %984  ;;  %v5533_v29 = vmul.f32 %v3927_v33, %v5882_v11  ;;  %v3727_v11 = vld [vmem:[#allocation7 + $0x38] sm:$0xff]  }
 0x92b   : > { %3932 = vrcp.f32 %v985_v47  ;;  %v2361_v19 = vpop.xlane.xlu0 %2360 }
 0x92c   : > { %v2094_v32 = vpack.c.bf16 %v5533_v29, %v5530_v24  ;;  %3531 = vmatpush3.bf16.msra.mxu0 %v3724_v31  ;;  %3566 = vmatpush3.bf16.msra.mxu1 %v3724_v31 }
 0x92d   : > { %v3929_v3 = vpop.eup %3928  ;;  %3532 = vmatprep.subr.bf16.mxu0 %v3725_v4  ;;  %3559 = vmatprep.subr.bf16.mxu1 %v3725_v4 }
 0x92e   : > { %v1001_v40 = vpop.xlane.xlu1 %1000  ;;  %v5538_v8 = vmul.f32 %v3929_v3, %v5883_v22 }
 0x92f   : > { %3934 = vrcp.f32 %v1001_v40  ;;  %v2373_v21 = vpop.xlane.xlu0 %2372 }
 0x930   : > { %v1147_v15 = vpack.c.bf16 %v5538_v8, %v5481_v2  ;;  %3533 = vmatpush3.bf16.msra.mxu0 %v3725_v4  ;;  %3567 = vmatpush3.bf16.msra.mxu1 %v3725_v4 }
 0x931   : > { %v3931_v55 = vpop.eup %3930  ;;  %3534 = vmatprep.subr.bf16.mxu0 %v3726_v37  ;;  %3560 = vmatprep.subr.bf16.mxu1 %v3726_v37 }
 0x932   : > { %v5542_v42 = vpop.xlane.xlu1 %2358  ;;  %v5545_v54 = vmul.f32 %v3931_v55, %v5884_v39 }
 0x933   : > { %v2369_v48 = vpop.xlane.xlu0 %2368 }
 0x934   : > { %v1151_v36 = vpack.c.bf16 %v5545_v54, %v5488_v17  ;;  %3535 = vmatpush3.bf16.msra.mxu0 %v3726_v37  ;;  %3568 = vmatpush3.bf16.msra.mxu1 %v3726_v37 }
 0x935   : > { %v3933_v30 = vpop.eup %3932  ;;  %3536 = vmatprep.subr.bf16.mxu0 %v3727_v11  ;;  %3561 = vmatprep.subr.bf16.mxu1 %v3727_v11 }
 0x936   : > { %v5549_v49 = vpop.xlane.xlu1 %2354  ;;  %v5552_v50 = vmul.f32 %v3933_v30, %v5885_v38 }
 0x938   : > { %v1148_v57 = vpack.c.bf16 %v5552_v50, %v5495_v1  ;;  %3537 = vmatpush3.bf16.msra.mxu0 %v3727_v11  ;;  %3569 = vmatpush3.bf16.msra.mxu1 %v3727_v11  ;;  %v5891_v11 = vld [vmem:[#allocation35_spill] sm:$0xff] }
 0x939   : > { %v3935_v43 = vpop.eup %3934 }
 0x93a   : > { %v5556_v52 = vpop.xlane.xlu1 %2366  ;;  %v5559_v26 = vmul.f32 %v3935_v43, %v5886_v20 }
 0x93c   : > { %v1152_v35 = vpack.c.bf16 %v5559_v26, %v5503_v58 }
 0x93e   : > { %v5563_v44 = vpop.xlane.xlu1 %2362 }
 0x942   : > { %v5565_v51 = vpop.xlane.xlu1 %2374 }
 0x946   : > { %v5567_v46 = vpop.xlane.xlu1 %2370 }
 0x94a   : > { %v989_v59 = vpop.xlane.xlu1 %988 }
 0x94b   : > { %3936 = vrcp.f32 %v989_v59 }
 0x94e   : > { %v1005_v28 = vpop.xlane.xlu1 %1004 }
 0x94f   : > { %3938 = vrcp.f32 %v1005_v28 }
 0x952   : > { %v5569_v41 = vpop.xlane.xlu1 %2382 }
 0x955   : > { %v3937_v18 = vpop.eup %3936 }
 0x956   : > { %v5571_v60 = vpop.xlane.xlu1 %2378  ;;  %v5574_v23 = vmul.f32 %v3937_v18, %v5887_v6  ;;  %v5890_v6 = vld [vmem:[#allocation27_spill] sm:$0xff] }
 0x959   : > { %v3939_v14 = vpop.eup %3938 }
 0x95a   : > { %v993_v0 = vpop.xlane.xlu1 %992  ;;  %v5577_v13 = vmul.f32 %v3939_v14, %v5888_v10 }
 0x95e   : > { %v1009_v7 = vpop.xlane.xlu1 %1008 }
 0x95f   : > { %3940 = vrcp.f32 %v1009_v7 }
 0x960   : > { %3942 = vrcp.f32 %v2357_v9 }
 0x961   : > { %3944 = vrcp.f32 %v2353_v61 }
 0x962   : > { %3946 = vrcp.f32 %v5542_v42 }
 0x963   : > { %3948 = vrcp.f32 %v5549_v49 }
 0x964   : > { %3950 = vrcp.f32 %v2365_v27 }
 0x965   : > { %3952 = vrcp.f32 %v2361_v19 }
 0x969   : > { %v3941_v62 = vpop.eup %3940 }
 0x96a   : > { %v5580_v33 = vmul.f32 %v3941_v62, %v5889_v34  ;;  %v3943_v40 = vpop.eup %3942 }
 0x96b   : > { %v5582_v47 = vpop.xlane.xlu0 %2380  ;;  %v3945_v55 = vpop.eup %3944 }
 0x96c   : > { %v3947_v39 = vpop.eup %3946 }
 0x96d   : > { %v3949_v38 = vpop.eup %3948 }
 0x96e   : > { %v3951_v31 = vpop.eup %3950 }
 0x96f   : > { %v5586_v12 = vpop.xlane.xlu0 %2376 }
 0x973   : > { %v987_v3 = vpop.xlane.xlu0 %986 }
 0x974   : > { %3954 = vrcp.f32 %v987_v3 }
 0x975   : > { %3956 = vrcp.f32 %v5556_v52  ;;  %v3508_v22 = vpop.f32.mrb[80].mxu0 }
 0x976   : > { %3958 = vrcp.f32 %v5563_v44  ;;  %v2450_v42 = vpop.f32.mrb[81].mxu0  ;;  %v2531_v43 = vmul.f32 %v3943_v40, %v3508_v22  ;;  %v3953_v44 = vpop.eup %3952 }
 0x977   : > { %v3509_v30 = vpop.f32.mrb[82].mxu0  ;;  %v1003_v49 = vpop.xlane.xlu0 %1002  ;;  %v2529_v16 = vmul.f32 %v3945_v55, %v2450_v42 }
 0x978   : > { %v2532_v20 = vmul.f32 %v3947_v39, %v3509_v30  ;;  %3960 = vrcp.f32 %v1003_v49  ;;  %v2453_v53 = vpop.f32.mrb[83].mxu0 }
 0x979   : > { %3962 = vrcp.f32 %v2373_v21  ;;  %v2530_v45 = vmul.f32 %v3949_v38, %v2453_v53  ;;  %v5893_v53 = vld [vmem:[#allocation26_spill] sm:$0xff] }
 0x97a   : > { %3964 = vrcp.f32 %v993_v0  ;;  %v2546_v5 = vpack.c.bf16 %v2532_v20, %v2531_v43  ;;  %v5892_v43 = vld [vmem:[#allocation28_spill] sm:$0xff] }
 0x97b   : > { %3966 = vrcp.f32 %v2369_v48  ;;  %v2545_v52 = vpack.c.bf16 %v2530_v45, %v2529_v16  ;;  %v991_v59 = vpop.xlane.xlu0 %990 }
 0x97c   : > { %3968 = vrcp.f32 %v991_v59  ;;  %2611 = vrot.lane.b32.xlu1 %v2546_v5, %s4150_s12 }
 0x97d   : > { %3970 = vrcp.f32 %v5565_v51  ;;  %v3512_v9 = vpop.f32.mrb[84].mxu0 }
 0x97e   : > { %v3955_v28 = vpop.eup %3954  ;;  %3972 = vrcp.f32 %v5567_v46  ;;  %v2466_v4 = vpop.f32.mrb[85].mxu0  ;;  %v2535_v0 = vmul.f32 %v3951_v31, %v3512_v9 }
 0x97f   : > { %v3957_v61 = vpop.eup %3956  ;;  %v3513_v37 = vpop.f32.mrb[86].mxu0  ;;  %v5594_v27 = vmul.f32 %v3955_v28, %v5890_v6  ;;  %v2533_v7 = vmul.f32 %v3953_v44, %v2466_v4  ;;  %v5894_v28 = vld [vmem:[#allocation34_spill] sm:$0xff] }
 0x980   : > { %v1007_v18 = vpop.xlane.xlu0 %1006  ;;  %v3959_v14 = vpop.eup %3958  ;;  %v2536_v10 = vmul.f32 %v3957_v61, %v3513_v37  ;;  %2609 = vrot.lane.b32.xlu1 %v2545_v52, %s4150_s12 }
 0x981   : > { %3974 = vrcp.f32 %v1007_v18  ;;  %v2469_v19 = vpop.f32.mrb[87].mxu0  ;;  %v1149_v21 = vpack.c.bf16 %v5574_v23, %v5594_v27 }
 0x982   : > { %v2534_v51 = vmul.f32 %v3959_v14, %v2469_v19  ;;  %v3961_v46 = vpop.eup %3960  ;;  %v2548_v48 = vpack.c.bf16 %v2536_v10, %v2535_v0  ;;  %3976 = vrcp.f32 %v5569_v41 }
 0x983   : > { %v3963_v62 = vpop.eup %3962  ;;  %v5600_v3 = vmul.f32 %v3961_v46, %v5891_v11  ;;  %3978 = vrcp.f32 %v5571_v60  ;;  %v2570_v60 = vpop.permute.xlu1 %2569 }
 0x984   : > { %v2547_v34 = vpack.c.bf16 %v2534_v51, %v2533_v7  ;;  %v3965_v40 = vpop.eup %3964  ;;  %2591 = vrot.lane.b32.xlu1 %v2090_v56, %s4152_s13  ;;  %3980 = vrcp.f32 %v5582_v47  ;;  %v2639_v27 = vsel %vm752_vm0, %v1151_v36, %v2570_v60 }
 0x985   : > { %v3967_v22 = vpop.eup %3966  ;;  %v3516_v55 = vpop.f32.mrb[88].mxu0  ;;  %v1153_v42 = vpack.c.bf16 %v5577_v13, %v5600_v3  ;;  %v5609_v20 = vmul.f32 %v3965_v40, %v5892_v43  ;;  %3982 = vrcp.f32 %v5586_v12  ;;  %v3058_v13 = vld [vmem:[%s5760_s4] ss:$0 sm:$0xff] }
 0x986   : > { %v3969_v39 = vpop.eup %3968  ;;  %v2482_v30 = vpop.f32.mrb[89].mxu0  ;;  %v2539_v5 = vmul.f32 %v3963_v62, %v3516_v55 }
 0x987   : > { %v3971_v49 = vpop.eup %3970  ;;  %v3517_v38 = vpop.f32.mrb[90].mxu0  ;;  %v5612_v16 = vmul.f32 %v3969_v39, %v5893_v53  ;;  %v2537_v25 = vmul.f32 %v3967_v22, %v2482_v30 }
 0x988   : > { %v3973_v45 = vpop.eup %3972  ;;  %v2540_v52 = vmul.f32 %v3971_v49, %v3517_v38  ;;  %v2485_v63 = vpop.f32.mrb[91].mxu0  ;;  %2613 = vrot.lane.b32.xlu1 %v2547_v34, %s4150_s12 }
 0x989   : > { %v2538_v56 = vmul.f32 %v3973_v45, %v2485_v63  ;;  %v1150_v59 = vpack.c.bf16 %v5609_v20, %v5612_v16  ;;  %v2564_v47 = vpop.permute.xlu1 %2563  ;;  %v2562_v12 = vpop.permute.xlu0 %2561 }
 0x98a   : > { %v2550_v44 = vpack.c.bf16 %v2540_v52, %v2539_v5  ;;  %v2627_v38 = vsel %vm752_vm0, %v1147_v15, %v2562_v12  ;;  %v2630_v43 = vsel %vm752_vm0, %v1148_v57, %v2564_v47 }
 0x98b   : > { %v3975_v31 = vpop.eup %3974  ;;  %v2549_v9 = vpack.c.bf16 %v2538_v56, %v2537_v25 }
 0x98c   : > { %v5618_v4 = vmul.f32 %v3975_v31, %v5894_v28  ;;  %2615 = vrot.lane.b32.xlu1 %v2548_v48, %s4150_s12  ;;  %2619 = vrot.lane.b32.xlu0 %v2550_v44, %s4150_s12  ;;  %v3977_v37 = vpop.eup %3976 }
 0x98d   : > { %v3979_v6 = vpop.eup %3978  ;;  %v2586_v48 = vpop.permute.xlu1 %2585 }
 0x98e   : > { %v1154_v61 = vpack.c.bf16 %v5580_v33, %v5618_v4  ;;  %v3981_v0 = vpop.eup %3980  ;;  %v2572_v62 = vpop.permute.xlu0 %2571  ;;  %v2651_v45 = vsel %vm2649_vm2, %v2627_v38, %v2586_v48 }
 0x98f   : > { %v3983_v19 = vpop.eup %3982 }
 0x990   : > { %2617 = vrot.lane.b32.xlu0 %v2549_v9, %s4150_s12 }
 0x991   : > { %v2588_v34 = vpop.permute.xlu1 %2587 }
 0x992   : > { %v2594_v40 = vpop.permute.xlu0 %2593  ;;  %v2653_v5 = vsel %vm2649_vm2, %v2630_v43, %v2588_v34 }
 0x993   : > { %v2659_v20 = vsel %vm2649_vm2, %v2639_v27, %v2594_v40 }
 0x994   : > { %2599 = vrot.lane.b32.xlu0 %v2094_v32, %s4152_s13 }
 0x995   : > { %v2566_v11 = vpop.permute.xlu1 %2565 }
 0x996   : > { %v2596_v55 = vpop.permute.xlu0 %2595  ;;  %v2633_v1 = vsel %vm752_vm0, %v1149_v21, %v2566_v11  ;;  %v2642_v21 = vsel %vm752_vm0, %v1152_v35, %v2572_v62 }
 0x999   : > { %v2568_v22 = vpop.permute.xlu1 %2567 }
 0x99a   : > { %v2574_v30 = vpop.permute.xlu0 %2573  ;;  %v2636_v56 = vsel %vm752_vm0, %v1150_v59, %v2568_v22  ;;  %v2661_v59 = vsel %vm2649_vm2, %v2642_v21, %v2596_v55 }
 0x99b   : > { %v2645_v58 = vsel %vm752_vm0, %v1153_v42, %v2574_v30 }
 0x99d   : > { %v2590_v39 = vpop.permute.xlu1 %2589 }
 0x99e   : > { %v2576_v63 = vpop.permute.xlu0 %2575  ;;  %v2655_v8 = vsel %vm2649_vm2, %v2633_v1, %v2590_v39 }
 0x99f   : > { %v2648_v35 = vsel %vm752_vm0, %v1154_v61, %v2576_v63 }
 0x9a2   : > { %v2598_v15 = vpop.permute.xlu0 %2597 }
 0x9a3   : > { %v2663_v54 = vsel %vm2649_vm2, %v2645_v58, %v2598_v15 }
 0x9b3   : > { %v3520_v18 = vpop.f32.mrb[92].mxu0 }
 0x9b4   : > { %v2498_v14 = vpop.f32.mrb[93].mxu0  ;;  %v2543_v7 = vmul.f32 %v3981_v0, %v3520_v18 }
 0x9b5   : > { %v3521_v10 = vpop.f32.mrb[94].mxu0  ;;  %v2541_v24 = vmul.f32 %v3983_v19, %v2498_v14 }
 0x9b6   : > { %v2544_v51 = vmul.f32 %v3977_v37, %v3521_v10  ;;  %v2501_v46 = vpop.f32.mrb[95].mxu0 }
 0x9b7   : > { %v2542_v29 = vmul.f32 %v3979_v6, %v2501_v46 }
 0x9b8   : > { %v2552_v32 = vpack.c.bf16 %v2544_v51, %v2543_v7 }
 0x9b9   : > { %v2551_v41 = vpack.c.bf16 %v2542_v29, %v2541_v24 }
 0x9bb   : > { %2621 = vrot.lane.b32.xlu0 %v2551_v41, %s4150_s12 }
 0x9bf   : > { %2623 = vrot.lane.b32.xlu0 %v2552_v32, %s4150_s12  ;;  %s4076_s12 = scalar_lea.vmem %s4075_s26, 4096 }
 0x9c0   : > { %p4078_p9 = scmp.lt.s32.totalorder %s4076_s12, %s4070_s9 }
 0x9c2   : > { %p4079_p12 = por %p4078_p9, %p4077_p5 }
 0x9c4   : > { %p4080_p2 = pnand %p4079_p12, %p4073_p3 }
 0x9ee   : > { %v2612_v49 = vpop.permute.xlu1 %2611 }
 0x9ef   : > { %v2671_v25 = vsel %vm2666_vm3, %v2653_v5, %v2612_v49 }
 0x9f2   : > { %v2610_v53 = vpop.permute.xlu1 %2609 }
 0x9f3   : > { %v2668_v52 = vsel %vm2666_vm3, %v2651_v45, %v2610_v53 }
 0x9f4   : > { %3538 = vmatprep.mubr.bf16.mxu0 %v2668_v52 }
 0x9f5   : > { %3539 = vmatmul.mubr.bf16.vlgmr.msra.gmra.mrb[96].mxu0 %v2671_v25 }
 0x9f6   : > { %v2592_v2 = vpop.permute.xlu1 %2591 }
 0x9f7   : > { %v2657_v31 = vsel %vm2649_vm2, %v2636_v56, %v2592_v2 }
 0x9fa   : > { %v2614_v50 = vpop.permute.xlu1 %2613 }
 0x9fb   : > { %v2674_v57 = vsel %vm2666_vm3, %v2655_v8, %v2614_v50 }
 0x9fc   : > { %3542 = vmatprep.mubr.bf16.mxu0 %v2674_v57 }
 0x9fe   : > { %v2616_v44 = vpop.permute.xlu1 %2615  ;;  %v2620_v9 = vpop.permute.xlu0 %2619 }
 0x9ff   : > { %v2677_v23 = vsel %vm2666_vm3, %v2657_v31, %v2616_v44  ;;  %v2683_v37 = vsel %vm2666_vm3, %v2661_v59, %v2620_v9 }
 0xa00   : > { %3543 = vmatmul.mubr.bf16.gmra.mrb[100].mxu0 %v2677_v23 }
 0xa02   : > { %v2618_v16 = vpop.permute.xlu0 %2617 }
 0xa03   : > { %v2680_v28 = vsel %vm2666_vm3, %v2659_v20, %v2618_v16 }
 0xa04   : > { %3546 = vmatprep.mubr.bf16.mxu1 %v2680_v28 }
 0xa05   : > { %3547 = vmatmul.mubr.bf16.vlgmr.msra.gmra.mrb[80].mxu1 %v2683_v37 }
 0xa06   : > { %v2600_v17 = vpop.permute.xlu0 %2599 }
 0xa07   : > { %v2665_v18 = vsel %vm2649_vm2, %v2648_v35, %v2600_v17 }
 0xa2d   : > { %v2622_v36 = vpop.permute.xlu0 %2621 }
 0xa2e   : > { %v2686_v26 = vsel %vm2666_vm3, %v2663_v54, %v2622_v36 }
 0xa2f   : > { %3550 = vmatprep.mubr.bf16.mxu1 %v2686_v26 }
 0xa31   : > { %v2624_v6 = vpop.permute.xlu0 %2623 }
 0xa32   : > { %v2689_v14 = vsel %vm2666_vm3, %v2665_v18, %v2624_v6 }
 0xa33   : > { %3551 = vmatmul.mubr.bf16.gmra.mrb[84].mxu1 %v2689_v14 }
 0xac8   : > { %v3540_v3 = vpop.f32.mrb[96].mxu0 }
 0xac9   : > { %v2805_v42 = vadd.f32 %v3540_v3, %v3058_v13  ;;  %v2796_v0 = vpop.f32.mrb[97].mxu0 }
 0xaca   : > { %v2797_v10 = vadd.f32 %v3058_v13, %v2796_v0  ;;  %v3541_v19 = vpop.f32.mrb[98].mxu0 }
 0xacb   : > { %2861 = vst [vmem:[%s5687_s30 + $0x10] sm:$0xff] %v2805_v42  ;;  %v2808_v33 = vadd.f32 %v3541_v19, %v3058_v13  ;;  %v2799_v4 = vpop.f32.mrb[99].mxu0 }
 0xacc   : > { %2859 = vst [vmem:[%s5687_s30] sm:$0xff] %v2797_v10  ;;  %v2800_v61 = vadd.f32 %v3058_v13, %v2799_v4 }
 0xacd   : > { %2862 = vst [vmem:[%s5687_s30 + $0x18] sm:$0xff] %v2808_v33 }
 0xace   : > { %2860 = vst [vmem:[%s5687_s30 + $0x8] sm:$0xff] %v2800_v61 }
 0xad3   : > { %v3544_v7 = vpop.f32.mrb[100].mxu0 }
 0xad4   : > { %v2821_v51 = vadd.f32 %v3544_v7, %v3058_v13  ;;  %v2812_v46 = vpop.f32.mrb[101].mxu0 }
 0xad5   : > { %v2813_v24 = vadd.f32 %v3058_v13, %v2812_v46  ;;  %v3545_v29 = vpop.f32.mrb[102].mxu0 }
 0xad6   : > { %2865 = vst [vmem:[%s5687_s30 + $0x30] sm:$0xff] %v2821_v51  ;;  %v2824_v32 = vadd.f32 %v3545_v29, %v3058_v13  ;;  %v2815_v41 = vpop.f32.mrb[103].mxu0 }
 0xad7   : > { %2863 = vst [vmem:[%s5687_s30 + $0x20] sm:$0xff] %v2813_v24  ;;  %v2816_v60 = vadd.f32 %v3058_v13, %v2815_v41 }
 0xad8   : > { %2866 = vst [vmem:[%s5687_s30 + $0x38] sm:$0xff] %v2824_v32  ;;  %v3548_v47 = vpop.f32.mrb[80].mxu1 }
 0xad9   : > { %2864 = vst [vmem:[%s5687_s30 + $0x28] sm:$0xff] %v2816_v60  ;;  %v2837_v12 = vadd.f32 %v3548_v47, %v3058_v13  ;;  %v2828_v48 = vpop.f32.mrb[81].mxu1 }
 0xada   : > { %v2829_v62 = vadd.f32 %v3058_v13, %v2828_v48  ;;  %v3549_v34 = vpop.f32.mrb[82].mxu1 }
 0xadb   : > { %2869 = vst [vmem:[%s5687_s30 + $0x50] sm:$0xff] %v2837_v12  ;;  %v2840_v11 = vadd.f32 %v3549_v34, %v3058_v13  ;;  %v2831_v40 = vpop.f32.mrb[83].mxu1 }
 0xadc   : > { %2867 = vst [vmem:[%s5687_s30 + $0x40] sm:$0xff] %v2829_v62  ;;  %v2832_v22 = vadd.f32 %v3058_v13, %v2831_v40 }
 0xadd   : > { %2870 = vst [vmem:[%s5687_s30 + $0x58] sm:$0xff] %v2840_v11 }
 0xade   : > { %2868 = vst [vmem:[%s5687_s30 + $0x48] sm:$0xff] %v2832_v22 }
 0xb06   : > { %v3552_v55 = vpop.f32.mrb[84].mxu1 }
 0xb07   : > { %v2853_v39 = vadd.f32 %v3552_v55, %v3058_v13  ;;  %v2844_v30 = vpop.f32.mrb[85].mxu1 }
 0xb08   : > { %v2845_v49 = vadd.f32 %v3058_v13, %v2844_v30  ;;  %v3553_v38 = vpop.f32.mrb[86].mxu1 }
 0xb09   : > { %2873 = vst [vmem:[%s5687_s30 + $0x70] sm:$0xff] %v2853_v39  ;;  %v2856_v43 = vadd.f32 %v3553_v38, %v3058_v13  ;;  %v2847_v53 = vpop.f32.mrb[87].mxu1 }
 0xb0a   : > { %2871 = vst [vmem:[%s5687_s30 + $0x60] sm:$0xff] %v2845_v49  ;;  %v2848_v45 = vadd.f32 %v3058_v13, %v2847_v53 }
 0xb0b   : > { %2874 = vst [vmem:[%s5687_s30 + $0x78] sm:$0xff] %v2856_v43 }
 0xb0c   : > { %2872 = vst [vmem:[%s5687_s30 + $0x68] sm:$0xff] %v2848_v45 }
 0xb0d   : > { %4083 = shalt.err (!%p4080_p2)
}
 0xb0e   : > { %s4084_s13 = scalar_lea.hbm %s5707_s8, 2048  ;;  %s4088_s14 = scalar_lea.hbm %s5761_s5, 4096 }
 0xb0f   : > { %p4085_p13 = scmp.ne.s32.totalorder %s5707_s8, %s4084_s13  ;;  %p4089_p4 = scmp.lt.u32.totalorder %s5707_s8, %s5761_s5 }
 0xb10   : > { %p4090_p7 = scmp.lt.u32.totalorder %s4088_s14, %s4084_s13  ;;  %p4092_p11 = scmp.lt.u32.totalorder %s4084_s13, %s5707_s8 }
 0xb11   : > { %p4086_p6 = pnand %p4085_p13, %p5895_p0 }
 0xb12   : > { %p4091_p8 = por %p4090_p7, %p4089_p4 }
 0xb13   : > { %p4087_p10 = pneg %p4086_p6 }
 0xb14   : > { %p4093_p1 = por %p4092_p11, %p4091_p8 }
 0xb16   : > { %p4094_p3 = pnand %p4093_p1, %p4087_p10 }
 0xb18   : > { %4097 = shalt.err (!%p4094_p3)
}
 0xb19   : > { %s4155_s11 = smov 128   ;;  %s4156_s7 = smov 8  }
 0xb1a   : > { %3612 = dma.vmem_to_hbm [thread:$0]  (%p5895_p0), %s5709_s23, 2048, %s5707_s8, %s2876_s22, %s4155_s11, %s4155_s11, %s4156_s7  }
 0xb1b PF: > { %s2904_s6 = sand.u32 1, %s4128_s18   ;;  %p5896_p5 = scmp.ne.s32.totalorder %s5776_s25, 0 }
 0xb1c   : > { %p5897_p9 = scmp.ge.s32.totalorder %s4140_s21, 2  ;;  %s2905_s9 = scalar_lea.sflag [#allocation4], %s2904_s6 }
 0xb1e   : > { %p3626_p12 = pnand %p5897_p9, %p5896_p5 }
 0xb20   : > { %4123 = dma.done.wait (!%p3626_p12), %s2905_s9, 2048  }
 0xb21   : > { %4125 = vsyncadd (!%p3626_p12), %s2905_s9, 4294965248  ;;  %p19_p2 = scmp.ge.s32.totalorder %s4300_s16, 4   ;;  %s5898_s18 = smov %s4132_s19 }
 0xb22   : > { %s5899_s19 = smov %s4136_s20  ;;  %s5900_s20 = smov %s4309_s27 }
 0xb23   : > { %s5901_s21 = smov %s4300_s16  ;;  %21 = sbr.rel (!%p19_p2) target bundleno = 6 (0x6), region = 93 }
 0xb2a   :  { %2910 = vsyncpa [#allocation3], 1 }
 0xb2b   :  { %2912 = vsyncpa [#allocation3 + $0x1], 1 }
 0xb2c   :  { %2913 = vsyncpa [#allocation6], 1 }
 0xb2d   :  { %2914 = vsyncpa [#allocation4], 1 }
 0xb2e   :  { %2916 = vsyncpa [#allocation4 + $0x1], 1 }

</bundles_post_ra>
